<compile_context>
chip_gen: v7x
topology: tpu7x:2x2x1
jax: 0.10.0
libtpu: 0.0.40
codegen_flags: <defaults>
</compile_context>

<pallas_src>
import jax
import jax.numpy as jnp
from jax import lax
from jax.experimental import pallas as pl
from jax.experimental.pallas import tpu as pltpu

HOP = 256            # codec.hop_length
LATENT_DIM = 32      # encoder latent channels D
N_CODEBOOKS = 4      # RVQ depth
CODEBOOK_SIZE = 128  # entries per codebook K
TILE_N = 2048        # frames per grid step (multiple of 256: 8-sublane aligned
                     # frame tile, 128-lane aligned codes output)


def _round_up(x, m):
    return ((x + m - 1) // m) * m


def _encode_kernel(frames_ref, w_ref, b_ref, cb_aug_ref, cbt2_ref, codes_ref):
    """Fused encoder + RVQ for one tile of frames.

    frames_ref: (TILE_N, HOP)        f32 audio frames
    w_ref     : (HOP, D)             bf16 analysis filter (strided conv)
    b_ref     : (1, D)               f32 bias
    cb_aug_ref: (n_q, K, D+1)        bf16 codebooks, last column = ||c||^2
    cbt2_ref  : (n_q, D+1, K)        bf16 2*codebooks^T, last row = 0
    codes_ref : (n_q, TILE_N)        i32 output codes (lane-dense)
    """
    tile_n = frames_ref.shape[0]
    k = cb_aug_ref.shape[1]

    # Analysis encoder: bf16 MXU matmul, f32 accumulation, f32 bias + tanh.
    z = jnp.tanh(
        jnp.dot(frames_ref[...].astype(jnp.bfloat16), w_ref[...],
                preferred_element_type=jnp.float32)
        + b_ref[...]
    )                                                   # (TILE_N, D) f32

    # Move frames to the lane axis once (small (TILE_N, 32) transpose; expected
    # to lower to XLU vxpose - check bundle dump if step time regresses) and
    # work in r2 = -2*residual space with an appended ones row so ||c||^2 and
    # the -2 scale ride the MXU contraction instead of the VPU.
    r2 = jnp.concatenate(
        [(-2.0) * z.T, jnp.ones((1, tile_n), jnp.float32)], axis=0
    )                                                   # (D+1, TILE_N) f32

    # NOTE: assumes finite inputs; all-NaN frames fall through to code k-1.
    iota_k = lax.broadcasted_iota(jnp.int32, (k, tile_n), 0)   # sublane index
    for q in range(N_CODEBOOKS):        # small static depth -> unrolled
        # dist_q = ||c||^2 - 2 c.residual  (per-frame constant dropped)
        dist = jnp.dot(cb_aug_ref[q], r2.astype(jnp.bfloat16),
                       preferred_element_type=jnp.float32)     # (K, TILE_N)
        min_d = jnp.min(dist, axis=0, keepdims=True)           # (1, TILE_N)
        idx = jnp.min(jnp.where(dist <= min_d, iota_k, k),
                      axis=0, keepdims=True)                   # first argmin
        idx = jnp.minimum(idx, k - 1)   # keep codes in-range even on NaN rows
        codes_ref[pl.ds(q, 1), :] = idx                        # immediate row store
        if q < N_CODEBOOKS - 1:         # last stage: only the index is needed
            onehot = (iota_k == idx).astype(jnp.bfloat16)      # (K, TILE_N)
            # residual' = residual - c_idx  <=>  r2' = r2 + 2*c_idx
            # (cbt2 last row is zero, so the appended ones row is preserved)
            r2 = r2 + jnp.dot(cbt2_ref[q], onehot,
                              preferred_element_type=jnp.float32)


def codec_encode(audio, params, tile_n=TILE_N):
    """audio: (B, 1, T) float32 -> codes: (B, n_codebooks, T // HOP) int32."""
    B, C, T = audio.shape
    assert C == 1, "codec expects mono NCL audio"
    assert T % HOP == 0, "expected_samples must be a multiple of hop_length"
    frames_per = T // HOP
    n = B * frames_per
    frames = audio.reshape(n, HOP).astype(jnp.float32)

    # Shrink the tile for short inputs so padded work stays bounded; keep the
    # frame axis a multiple of 256 (sublane/lane alignment for the frames tile
    # and the lane-dense codes output).
    tile_n = min(tile_n, _round_up(n, 256))
    n_pad = pl.cdiv(n, tile_n) * tile_n
    if n_pad != n:
        frames = jnp.pad(frames, ((0, n_pad - n), (0, 0)))

    codes = pl.pallas_call(
        _encode_kernel,
        out_shape=jax.ShapeDtypeStruct((N_CODEBOOKS, n_pad), jnp.int32),
        grid=(n_pad // tile_n,),
        in_specs=[
            pl.BlockSpec((tile_n, HOP), lambda i: (i, 0)),                    # frames tile
            pl.BlockSpec((HOP, LATENT_DIM), lambda i: (0, 0)),                # w (resident)
            pl.BlockSpec((1, LATENT_DIM), lambda i: (0, 0)),                  # b (resident)
            pl.BlockSpec((N_CODEBOOKS, CODEBOOK_SIZE, LATENT_DIM + 1),
                         lambda i: (0, 0, 0)),                                # codebooks | ||c||^2
            pl.BlockSpec((N_CODEBOOKS, LATENT_DIM + 1, CODEBOOK_SIZE),
                         lambda i: (0, 0, 0)),                                # 2*codebooks^T | 0
        ],
        out_specs=pl.BlockSpec((N_CODEBOOKS, tile_n), lambda i: (0, i)),      # lane-dense codes
        compiler_params=pltpu.CompilerParams(
            dimension_semantics=("parallel",),       # megacore sharding on v7x
            vmem_limit_bytes=32 * 1024 * 1024,
        ),
    )(frames, params["w"], params["b"], params["cb_aug"], params["cbt2"])

    # (n_q, n_pad) -> (n_q, B, frames) -> (B, n_q, frames)
    codes = codes[:, :n].reshape(N_CODEBOOKS, B, frames_per)
    return jnp.transpose(codes, (1, 0, 2))


def codec_encode_ref(audio, params):
    """Pure-JAX reference of the same synthetic codec (same bf16 numerics)."""
    B, _, T = audio.shape
    frames_per = T // HOP
    n = B * frames_per
    frames = audio.reshape(n, HOP).astype(jnp.float32)
    z = jnp.tanh(
        jnp.dot(frames.astype(jnp.bfloat16), params["w"],
                preferred_element_type=jnp.float32) + params["b"])
    r2 = jnp.concatenate([-2.0 * z, jnp.ones((n, 1), jnp.float32)], axis=1)
    codes = []
    for q in range(N_CODEBOOKS):
        dist = jnp.dot(r2.astype(jnp.bfloat16),
                       jnp.transpose(params["cb_aug"][q]),
                       preferred_element_type=jnp.float32)          # (n, K)
        idx = jnp.argmin(dist, axis=-1).astype(jnp.int32)
        codes.append(idx)
        if q < N_CODEBOOKS - 1:
            onehot = (idx[:, None] == jnp.arange(CODEBOOK_SIZE)[None, :]
                      ).astype(jnp.bfloat16)
            r2 = r2 + jnp.dot(onehot, jnp.transpose(params["cbt2"][q]),
                              preferred_element_type=jnp.float32)
    codes = jnp.stack(codes, axis=0).reshape(N_CODEBOOKS, B, frames_per)
    return jnp.transpose(codes, (1, 0, 2))


class FixedSizeEncoder:
    """Encoder for a specific input size (mirrors the PyTorch module)."""

    def __init__(self, params, expected_samples):
        self.params = params
        self.expected_samples = expected_samples
        self.hop_length = HOP

    def __call__(self, audio):
        assert audio.shape[2] == self.expected_samples, (
            f"Expected {self.expected_samples} samples, got {audio.shape[2]}")
        return codec_encode(audio, self.params)


def init_params(key):
    k_w, k_b, k_cb = jax.random.split(key, 3)
    w = (jax.random.normal(k_w, (HOP, LATENT_DIM), jnp.float32) * 0.05
         ).astype(jnp.bfloat16)
    b = jax.random.normal(k_b, (1, LATENT_DIM), jnp.float32) * 0.01
    codebooks = (jax.random.normal(
        k_cb, (N_CODEBOOKS, CODEBOOK_SIZE, LATENT_DIM), jnp.float32) * 0.5
                 ).astype(jnp.bfloat16)
    cb_f32 = codebooks.astype(jnp.float32)
    cb_sq = jnp.sum(cb_f32 * cb_f32, axis=-1, keepdims=True)      # (n_q, K, 1)
    # Augmented codebook: last column carries ||c||^2 (folds bias into the MXU).
    cb_aug = jnp.concatenate([cb_f32, cb_sq], axis=-1).astype(jnp.bfloat16)
    # 2*codebook^T with a zero row so the r2 ones-row survives residual updates.
    cbt2 = jnp.concatenate(
        [2.0 * jnp.transpose(cb_f32, (0, 2, 1)),
         jnp.zeros((N_CODEBOOKS, 1, CODEBOOK_SIZE), jnp.float32)],
        axis=1).astype(jnp.bfloat16)
    return {
        "w": w,                  # (HOP, D)        bf16
        "b": b,                  # (1, D)          f32
        "cb_aug": cb_aug,        # (n_q, K, D+1)   bf16
        "cbt2": cbt2,            # (n_q, D+1, K)   bf16
    }


if __name__ == "__main__":
    key = jax.random.PRNGKey(0)
    k_param, k_audio = jax.random.split(key)

    params = init_params(k_param)

    batch = 2
    expected_samples = 2048          # -> 8 frames at hop_length = 256
    audio = jax.random.normal(k_audio, (batch, 1, expected_samples), jnp.float32)

    encoder = FixedSizeEncoder(params, expected_samples)
    codes = jax.block_until_ready(encoder(audio))

    frames_per = expected_samples // HOP
    assert codes.shape == (batch, N_CODEBOOKS, frames_per), codes.shape
    assert codes.dtype == jnp.int32
    assert bool(jnp.all(codes >= 0)) and bool(jnp.all(codes < CODEBOOK_SIZE))

    ref = jax.block_until_ready(codec_encode_ref(audio, params))
    match = float(jnp.mean((codes == ref).astype(jnp.float32)))
    assert match >= 0.95, f"code match vs reference too low: {match}"

    print("KERNEL_OK")
</pallas_src>

<mosaic_0001>
module attributes {stable_mosaic.version = 11 : i64} {
  func.func @_encode_kernel(%arg0: i32, %arg1: memref<256x256xf32, #tpu.memory_space<vmem>>, %arg2: memref<256x32xbf16, #tpu.memory_space<vmem>>, %arg3: memref<1x32xf32, #tpu.memory_space<vmem>>, %arg4: memref<4x128x33xbf16, #tpu.memory_space<vmem>>, %arg5: memref<4x33x128xbf16, #tpu.memory_space<vmem>>, %arg6: memref<4x256xi32, #tpu.memory_space<vmem>>) attributes {dimension_semantics = [#tpu.dimension_semantics<parallel>], iteration_bounds = array<i64: 1>, scalar_prefetch = 0 : i64, scratch_operands = 0 : i64, tpu.core_type = #tpu.core_type<tc>, window_params = [{transform_indices = @transform_0, window_bounds = array<i64: 256, 256>}, {pipeline_mode = #tpu.pipeline_mode<synchronous>, transform_indices = @transform_1, window_bounds = array<i64: 256, 32>}, {pipeline_mode = #tpu.pipeline_mode<synchronous>, transform_indices = @transform_2, window_bounds = array<i64: 1, 32>}, {pipeline_mode = #tpu.pipeline_mode<synchronous>, transform_indices = @transform_3, window_bounds = array<i64: 4, 128, 33>}, {pipeline_mode = #tpu.pipeline_mode<synchronous>, transform_indices = @transform_4, window_bounds = array<i64: 4, 33, 128>}, {transform_indices = @transform_5, window_bounds = array<i64: 4, 256>}]} {
    %c0 = arith.constant 0 : index
    %c0_0 = arith.constant 0 : index
    %0 = vector.load %arg1[%c0, %c0_0] : memref<256x256xf32, #tpu.memory_space<vmem>>, vector<256x256xf32>
    %1 = arith.truncf %0 : vector<256x256xf32> to vector<256x256xbf16>
    %c0_1 = arith.constant 0 : index
    %c0_2 = arith.constant 0 : index
    %2 = vector.load %arg2[%c0_1, %c0_2] : memref<256x32xbf16, #tpu.memory_space<vmem>>, vector<256x32xbf16>
    %cst = arith.constant dense<0.000000e+00> : vector<256x32xf32>
    %3 = tpu.matmul %1, %2, %cst {dimension_numbers = #tpu.dot_dimension_numbers<[1], [0], [0], [1], [0, 0, 1, 1], [], []>} : vector<256x256xbf16>, vector<256x32xbf16>, vector<256x32xf32> -> vector<256x32xf32>
    %c0_3 = arith.constant 0 : index
    %c0_4 = arith.constant 0 : index
    %4 = vector.load %arg3[%c0_3, %c0_4] : memref<1x32xf32, #tpu.memory_space<vmem>>, vector<1x32xf32>
    %5 = vector.broadcast %4 : vector<1x32xf32> to vector<256x32xf32>
    %6 = arith.addf %3, %5 : vector<256x32xf32>
    %7 = math.tanh %6 : vector<256x32xf32>
    %8 = tpu.transpose %7, [1, 0] : vector<256x32xf32> -> vector<32x256xf32>
    %cst_5 = arith.constant -2.000000e+00 : f32
    %9 = vector.broadcast %cst_5 : f32 to vector<32x256xf32>
    %10 = arith.mulf %9, %8 : vector<32x256xf32>
    %cst_6 = arith.constant 1.000000e+00 : f32
    %11 = vector.broadcast %cst_6 : f32 to vector<1x256xf32>
    %12 = tpu.concatenate %10, %11 in 0 : vector<32x256xf32>, vector<1x256xf32> -> vector<33x256xf32>
    %13 = tpu.iota {dimensions = array<i32: 0>} : vector<128x256xi32>
    %c0_7 = arith.constant 0 : index
    %c0_8 = arith.constant 0 : index
    %c0_9 = arith.constant 0 : index
    %14 = vector.load %arg4[%c0_7, %c0_8, %c0_9] : memref<4x128x33xbf16, #tpu.memory_space<vmem>>, vector<1x128x33xbf16>
    %15 = vector.shape_cast %14 : vector<1x128x33xbf16> to vector<128x33xbf16>
    %16 = arith.truncf %12 : vector<33x256xf32> to vector<33x256xbf16>
    %cst_10 = arith.constant dense<0.000000e+00> : vector<128x256xf32>
    %17 = tpu.matmul %15, %16, %cst_10 {dimension_numbers = #tpu.dot_dimension_numbers<[1], [0], [0], [1], [0, 0, 1, 1], [], []>} : vector<128x33xbf16>, vector<33x256xbf16>, vector<128x256xf32> -> vector<128x256xf32>
    %cst_11 = arith.constant dense<0x7F800000> : vector<256xf32>
    %18 = vector.multi_reduction <minimumf>, %17, %cst_11 [0] : vector<128x256xf32> to vector<256xf32>
    %19 = vector.shape_cast %18 : vector<256xf32> to vector<1x256xf32>
    %20 = vector.broadcast %19 : vector<1x256xf32> to vector<128x256xf32>
    %21 = arith.cmpf ole, %17, %20 : vector<128x256xf32>
    %c128_i32 = arith.constant 128 : i32
    %22 = vector.broadcast %c128_i32 : i32 to vector<128x256xi32>
    %23 = arith.select %21, %13, %22 : vector<128x256xi1>, vector<128x256xi32>
    %cst_12 = arith.constant dense<2147483647> : vector<256xi32>
    %24 = vector.multi_reduction <minsi>, %23, %cst_12 [0] : vector<128x256xi32> to vector<256xi32>
    %25 = vector.shape_cast %24 : vector<256xi32> to vector<1x256xi32>
    %c127_i32 = arith.constant 127 : i32
    %26 = vector.broadcast %c127_i32 : i32 to vector<1x256xi32>
    %27 = arith.minsi %25, %26 : vector<1x256xi32>
    %c0_13 = arith.constant 0 : index
    %c0_14 = arith.constant 0 : index
    %28 = vector.load %arg6[%c0_13, %c0_14] : memref<4x256xi32, #tpu.memory_space<vmem>>, vector<1x256xi32>
    tpu.vector_store %arg6[%c0_13, %c0_14], %27 {strides = array<i32>} : memref<4x256xi32, #tpu.memory_space<vmem>>, vector<1x256xi32>,
    %29 = vector.broadcast %27 : vector<1x256xi32> to vector<128x256xi32>
    %30 = arith.cmpi eq, %13, %29 : vector<128x256xi32>
    %31 = arith.extui %30 : vector<128x256xi1> to vector<128x256xi32>
    %32 = arith.sitofp %31 : vector<128x256xi32> to vector<128x256xf32>
    %33 = arith.truncf %32 : vector<128x256xf32> to vector<128x256xbf16>
    %c0_15 = arith.constant 0 : index
    %c0_16 = arith.constant 0 : index
    %c0_17 = arith.constant 0 : index
    %34 = vector.load %arg5[%c0_15, %c0_16, %c0_17] : memref<4x33x128xbf16, #tpu.memory_space<vmem>>, vector<1x33x128xbf16>
    %35 = vector.shape_cast %34 : vector<1x33x128xbf16> to vector<33x128xbf16>
    %cst_18 = arith.constant dense<0.000000e+00> : vector<33x256xf32>
    %36 = tpu.matmul %35, %33, %cst_18 {dimension_numbers = #tpu.dot_dimension_numbers<[1], [0], [0], [1], [0, 0, 1, 1], [], []>} : vector<33x128xbf16>, vector<128x256xbf16>, vector<33x256xf32> -> vector<33x256xf32>
    %37 = arith.addf %12, %36 : vector<33x256xf32>
    %c1 = arith.constant 1 : index
    %c0_19 = arith.constant 0 : index
    %c0_20 = arith.constant 0 : index
    %38 = vector.load %arg4[%c1, %c0_19, %c0_20] : memref<4x128x33xbf16, #tpu.memory_space<vmem>>, vector<1x128x33xbf16>
    %39 = vector.shape_cast %38 : vector<1x128x33xbf16> to vector<128x33xbf16>
    %40 = arith.truncf %37 : vector<33x256xf32> to vector<33x256xbf16>
    %cst_21 = arith.constant dense<0.000000e+00> : vector<128x256xf32>
    %41 = tpu.matmul %39, %40, %cst_21 {dimension_numbers = #tpu.dot_dimension_numbers<[1], [0], [0], [1], [0, 0, 1, 1], [], []>} : vector<128x33xbf16>, vector<33x256xbf16>, vector<128x256xf32> -> vector<128x256xf32>
    %cst_22 = arith.constant dense<0x7F800000> : vector<256xf32>
    %42 = vector.multi_reduction <minimumf>, %41, %cst_22 [0] : vector<128x256xf32> to vector<256xf32>
    %43 = vector.shape_cast %42 : vector<256xf32> to vector<1x256xf32>
    %44 = vector.broadcast %43 : vector<1x256xf32> to vector<128x256xf32>
    %45 = arith.cmpf ole, %41, %44 : vector<128x256xf32>
    %c128_i32_23 = arith.constant 128 : i32
    %46 = vector.broadcast %c128_i32_23 : i32 to vector<128x256xi32>
    %47 = arith.select %45, %13, %46 : vector<128x256xi1>, vector<128x256xi32>
    %cst_24 = arith.constant dense<2147483647> : vector<256xi32>
    %48 = vector.multi_reduction <minsi>, %47, %cst_24 [0] : vector<128x256xi32> to vector<256xi32>
    %49 = vector.shape_cast %48 : vector<256xi32> to vector<1x256xi32>
    %c127_i32_25 = arith.constant 127 : i32
    %50 = vector.broadcast %c127_i32_25 : i32 to vector<1x256xi32>
    %51 = arith.minsi %49, %50 : vector<1x256xi32>
    %c1_26 = arith.constant 1 : index
    %c0_27 = arith.constant 0 : index
    %52 = vector.load %arg6[%c1_26, %c0_27] : memref<4x256xi32, #tpu.memory_space<vmem>>, vector<1x256xi32>
    tpu.vector_store %arg6[%c1_26, %c0_27], %51 {strides = array<i32>} : memref<4x256xi32, #tpu.memory_space<vmem>>, vector<1x256xi32>,
    %53 = vector.broadcast %51 : vector<1x256xi32> to vector<128x256xi32>
    %54 = arith.cmpi eq, %13, %53 : vector<128x256xi32>
    %55 = arith.extui %54 : vector<128x256xi1> to vector<128x256xi32>
    %56 = arith.sitofp %55 : vector<128x256xi32> to vector<128x256xf32>
    %57 = arith.truncf %56 : vector<128x256xf32> to vector<128x256xbf16>
    %c1_28 = arith.constant 1 : index
    %c0_29 = arith.constant 0 : index
    %c0_30 = arith.constant 0 : index
    %58 = vector.load %arg5[%c1_28, %c0_29, %c0_30] : memref<4x33x128xbf16, #tpu.memory_space<vmem>>, vector<1x33x128xbf16>
    %59 = vector.shape_cast %58 : vector<1x33x128xbf16> to vector<33x128xbf16>
    %cst_31 = arith.constant dense<0.000000e+00> : vector<33x256xf32>
    %60 = tpu.matmul %59, %57, %cst_31 {dimension_numbers = #tpu.dot_dimension_numbers<[1], [0], [0], [1], [0, 0, 1, 1], [], []>} : vector<33x128xbf16>, vector<128x256xbf16>, vector<33x256xf32> -> vector<33x256xf32>
    %61 = arith.addf %37, %60 : vector<33x256xf32>
    %c2 = arith.constant 2 : index
    %c0_32 = arith.constant 0 : index
    %c0_33 = arith.constant 0 : index
    %62 = vector.load %arg4[%c2, %c0_32, %c0_33] : memref<4x128x33xbf16, #tpu.memory_space<vmem>>, vector<1x128x33xbf16>
    %63 = vector.shape_cast %62 : vector<1x128x33xbf16> to vector<128x33xbf16>
    %64 = arith.truncf %61 : vector<33x256xf32> to vector<33x256xbf16>
    %cst_34 = arith.constant dense<0.000000e+00> : vector<128x256xf32>
    %65 = tpu.matmul %63, %64, %cst_34 {dimension_numbers = #tpu.dot_dimension_numbers<[1], [0], [0], [1], [0, 0, 1, 1], [], []>} : vector<128x33xbf16>, vector<33x256xbf16>, vector<128x256xf32> -> vector<128x256xf32>
    %cst_35 = arith.constant dense<0x7F800000> : vector<256xf32>
    %66 = vector.multi_reduction <minimumf>, %65, %cst_35 [0] : vector<128x256xf32> to vector<256xf32>
    %67 = vector.shape_cast %66 : vector<256xf32> to vector<1x256xf32>
    %68 = vector.broadcast %67 : vector<1x256xf32> to vector<128x256xf32>
    %69 = arith.cmpf ole, %65, %68 : vector<128x256xf32>
    %c128_i32_36 = arith.constant 128 : i32
    %70 = vector.broadcast %c128_i32_36 : i32 to vector<128x256xi32>
    %71 = arith.select %69, %13, %70 : vector<128x256xi1>, vector<128x256xi32>
    %cst_37 = arith.constant dense<2147483647> : vector<256xi32>
    %72 = vector.multi_reduction <minsi>, %71, %cst_37 [0] : vector<128x256xi32> to vector<256xi32>
    %73 = vector.shape_cast %72 : vector<256xi32> to vector<1x256xi32>
    %c127_i32_38 = arith.constant 127 : i32
    %74 = vector.broadcast %c127_i32_38 : i32 to vector<1x256xi32>
    %75 = arith.minsi %73, %74 : vector<1x256xi32>
    %c2_39 = arith.constant 2 : index
    %c0_40 = arith.constant 0 : index
    %76 = vector.load %arg6[%c2_39, %c0_40] : memref<4x256xi32, #tpu.memory_space<vmem>>, vector<1x256xi32>
    tpu.vector_store %arg6[%c2_39, %c0_40], %75 {strides = array<i32>} : memref<4x256xi32, #tpu.memory_space<vmem>>, vector<1x256xi32>,
    %77 = vector.broadcast %75 : vector<1x256xi32> to vector<128x256xi32>
    %78 = arith.cmpi eq, %13, %77 : vector<128x256xi32>
    %79 = arith.extui %78 : vector<128x256xi1> to vector<128x256xi32>
    %80 = arith.sitofp %79 : vector<128x256xi32> to vector<128x256xf32>
    %81 = arith.truncf %80 : vector<128x256xf32> to vector<128x256xbf16>
    %c2_41 = arith.constant 2 : index
    %c0_42 = arith.constant 0 : index
    %c0_43 = arith.constant 0 : index
    %82 = vector.load %arg5[%c2_41, %c0_42, %c0_43] : memref<4x33x128xbf16, #tpu.memory_space<vmem>>, vector<1x33x128xbf16>
    %83 = vector.shape_cast %82 : vector<1x33x128xbf16> to vector<33x128xbf16>
    %cst_44 = arith.constant dense<0.000000e+00> : vector<33x256xf32>
    %84 = tpu.matmul %83, %81, %cst_44 {dimension_numbers = #tpu.dot_dimension_numbers<[1], [0], [0], [1], [0, 0, 1, 1], [], []>} : vector<33x128xbf16>, vector<128x256xbf16>, vector<33x256xf32> -> vector<33x256xf32>
    %85 = arith.addf %61, %84 : vector<33x256xf32>
    %c3 = arith.constant 3 : index
    %c0_45 = arith.constant 0 : index
    %c0_46 = arith.constant 0 : index
    %86 = vector.load %arg4[%c3, %c0_45, %c0_46] : memref<4x128x33xbf16, #tpu.memory_space<vmem>>, vector<1x128x33xbf16>
    %87 = vector.shape_cast %86 : vector<1x128x33xbf16> to vector<128x33xbf16>
    %88 = arith.truncf %85 : vector<33x256xf32> to vector<33x256xbf16>
    %cst_47 = arith.constant dense<0.000000e+00> : vector<128x256xf32>
    %89 = tpu.matmul %87, %88, %cst_47 {dimension_numbers = #tpu.dot_dimension_numbers<[1], [0], [0], [1], [0, 0, 1, 1], [], []>} : vector<128x33xbf16>, vector<33x256xbf16>, vector<128x256xf32> -> vector<128x256xf32>
    %cst_48 = arith.constant dense<0x7F800000> : vector<256xf32>
    %90 = vector.multi_reduction <minimumf>, %89, %cst_48 [0] : vector<128x256xf32> to vector<256xf32>
    %91 = vector.shape_cast %90 : vector<256xf32> to vector<1x256xf32>
    %92 = vector.broadcast %91 : vector<1x256xf32> to vector<128x256xf32>
    %93 = arith.cmpf ole, %89, %92 : vector<128x256xf32>
    %c128_i32_49 = arith.constant 128 : i32
    %94 = vector.broadcast %c128_i32_49 : i32 to vector<128x256xi32>
    %95 = arith.select %93, %13, %94 : vector<128x256xi1>, vector<128x256xi32>
    %cst_50 = arith.constant dense<2147483647> : vector<256xi32>
    %96 = vector.multi_reduction <minsi>, %95, %cst_50 [0] : vector<128x256xi32> to vector<256xi32>
    %97 = vector.shape_cast %96 : vector<256xi32> to vector<1x256xi32>
    %c127_i32_51 = arith.constant 127 : i32
    %98 = vector.broadcast %c127_i32_51 : i32 to vector<1x256xi32>
    %99 = arith.minsi %97, %98 : vector<1x256xi32>
    %c3_52 = arith.constant 3 : index
    %c0_53 = arith.constant 0 : index
    %100 = vector.load %arg6[%c3_52, %c0_53] : memref<4x256xi32, #tpu.memory_space<vmem>>, vector<1x256xi32>
    tpu.vector_store %arg6[%c3_52, %c0_53], %99 {strides = array<i32>} : memref<4x256xi32, #tpu.memory_space<vmem>>, vector<1x256xi32>,
    return
  }
  func.func @transform_0(%arg0: i32) -> (i32, i32) {
    %c0_i32 = arith.constant 0 : i32
    %c0_i32_0 = arith.constant 0 : i32
    return %arg0, %c0_i32 : i32, i32
  }
  func.func @transform_1(%arg0: i32) -> (i32, i32) {
    %c0_i32 = arith.constant 0 : i32
    %c0_i32_0 = arith.constant 0 : i32
    %c0_i32_1 = arith.constant 0 : i32
    return %c0_i32, %c0_i32_0 : i32, i32
  }
  func.func @transform_2(%arg0: i32) -> (i32, i32) {
    %c0_i32 = arith.constant 0 : i32
    %c0_i32_0 = arith.constant 0 : i32
    %c0_i32_1 = arith.constant 0 : i32
    return %c0_i32, %c0_i32_0 : i32, i32
  }
  func.func @transform_3(%arg0: i32) -> (i32, i32, i32) {
    %c0_i32 = arith.constant 0 : i32
    %c0_i32_0 = arith.constant 0 : i32
    %c0_i32_1 = arith.constant 0 : i32
    %c0_i32_2 = arith.constant 0 : i32
    return %c0_i32, %c0_i32_0, %c0_i32_1 : i32, i32, i32
  }
  func.func @transform_4(%arg0: i32) -> (i32, i32, i32) {
    %c0_i32 = arith.constant 0 : i32
    %c0_i32_0 = arith.constant 0 : i32
    %c0_i32_1 = arith.constant 0 : i32
    %c0_i32_2 = arith.constant 0 : i32
    return %c0_i32, %c0_i32_0, %c0_i32_1 : i32, i32, i32
  }
  func.func @transform_5(%arg0: i32) -> (i32, i32) {
    %c0_i32 = arith.constant 0 : i32
    %c0_i32_0 = arith.constant 0 : i32
    return %c0_i32, %arg0 : i32, i32
  }
}

</mosaic_0001>

<bundles_post_ra>
// kernel: tpu_custom_call.1
= control target key start
LH: loop header
LB: loop body
LE: loop exit
PB: predicated region body
PF: predicated region fallthrough
CT: control target
= control target key end

     0   :  { %s5538_s0 = inlined_call_operand.vmem [shape: f32[256,256], index: 0, kind: input, shape index: {}]   ;;  %s5539_s1 = inlined_call_operand.vmem [shape: bf16[256,32], index: 1, kind: input, shape index: {}]   ;;  %s5540_s2 = inlined_call_operand.vmem [shape: f32[1,32], index: 2, kind: input, shape index: {}]   ;;  %s5541_s3 = inlined_call_operand.vmem [shape: bf16[4,128,33], index: 3, kind: input, shape index: {}]   ;;  %s5542_s4 = inlined_call_operand.vmem [shape: bf16[4,33,128], index: 4, kind: input, shape index: {}]   ;;  %s5543_s5 = inlined_call_operand.hbm [shape: s32[4,256], index: 5, kind: output, shape index: {}]  }
   0x1   :  { %v3265_v0 = vld [vmem:[%s5539_s1 + $0x40] sm:$0xff]   ;;  %v3267_v2 = vld [vmem:[%s5539_s1 + $0x48] sm:$0xff]   ;;  %v3269_v4 = vld [vmem:[%s5539_s1 + $0x50] sm:$0xff]  }
   0x2   :  { %v3266_v1 = vld [vmem:[%s5539_s1] sm:$0xff]   ;;  %3149 = vmatprep.subr.bf16.mxu0 %v3265_v0  ;;  %v3268_v3 = vld [vmem:[%s5539_s1 + $0x8] sm:$0xff]   ;;  %v3270_v5 = vld [vmem:[%s5539_s1 + $0x10] sm:$0xff]  }
   0x3   :  { %3150 = vmatpush3.bf16.msra.mxu0 %v3266_v1  ;;  %v3271_v6 = vld [vmem:[%s5539_s1 + $0x58] sm:$0xff]   ;;  %v3273_v8 = vld [vmem:[%s5539_s1 + $0x60] sm:$0xff]   ;;  %v3275_v10 = vld [vmem:[%s5539_s1 + $0x68] sm:$0xff]  }
   0x4   :  { %3151 = vmatprep.subr.bf16.mxu0 %v3267_v2  ;;  %v3272_v7 = vld [vmem:[%s5539_s1 + $0x18] sm:$0xff]   ;;  %v3274_v9 = vld [vmem:[%s5539_s1 + $0x20] sm:$0xff]   ;;  %v23_v11 = vld [vmem:[%s5538_s0 + $0x8] sm:$0xff] }
   0x5   :  { %v25_v12 = vld [vmem:[%s5538_s0 + $0x18] sm:$0xff]  ;;  %v3276_v14 = vld [vmem:[%s5539_s1 + $0x28] sm:$0xff]   ;;  %v3277_v15 = vld [vmem:[%s5539_s1 + $0x70] sm:$0xff]  }
   0x6   :  { %v87_v13 = vpack.c.bf16 %v25_v12, %v23_v11  ;;  %v3278_v16 = vld [vmem:[%s5539_s1 + $0x30] sm:$0xff]   ;;  %v3279_v17 = vld [vmem:[%s5539_s1 + $0x78] sm:$0xff]   ;;  %v22_v19 = vld [vmem:[%s5538_s0] sm:$0xff] }
   0x7   :  { %3152 = vmatpush3.bf16.msra.mxu0 %v3268_v3  ;;  %v3280_v18 = vld [vmem:[%s5539_s1 + $0x38] sm:$0xff]   ;;  %v24_v20 = vld [vmem:[%s5538_s0 + $0x10] sm:$0xff]  ;;  %v27_v21 = vld [vmem:[%s5538_s0 + $0x28] sm:$0xff] }
   0x8   :  { %3153 = vmatprep.subr.bf16.mxu0 %v3269_v4  ;;  %285 = vmatprep.mubr.bf16.mxu0 %v87_v13  ;;  %v29_v22 = vld [vmem:[%s5538_s0 + $0x38] sm:$0xff]  ;;  %v86_v23 = vpack.c.bf16 %v24_v20, %v22_v19  ;;  %v26_v25 = vld [vmem:[%s5538_s0 + $0x20] sm:$0xff]  ;;  %v28_v26 = vld [vmem:[%s5538_s0 + $0x30] sm:$0xff] }
   0x9   :  { %v89_v24 = vpack.c.bf16 %v29_v22, %v27_v21  ;;  %v31_v27 = vld [vmem:[%s5538_s0 + $0x48] sm:$0xff]  ;;  %v33_v28 = vld [vmem:[%s5538_s0 + $0x58] sm:$0xff]  ;;  %v88_v29 = vpack.c.bf16 %v28_v26, %v26_v25  ;;  %v30_v31 = vld [vmem:[%s5538_s0 + $0x40] sm:$0xff] }
   0xa   :  { %v91_v30 = vpack.c.bf16 %v33_v28, %v31_v27  ;;  %v32_v32 = vld [vmem:[%s5538_s0 + $0x50] sm:$0xff]  ;;  %v35_v33 = vld [vmem:[%s5538_s0 + $0x68] sm:$0xff]  ;;  %v37_v34 = vld [vmem:[%s5538_s0 + $0x78] sm:$0xff] }
   0xb   :  { %3154 = vmatpush3.bf16.msra.mxu0 %v3270_v5  ;;  %v90_v35 = vpack.c.bf16 %v32_v32, %v30_v31  ;;  %v93_v36 = vpack.c.bf16 %v37_v34, %v35_v33  ;;  %v34_v37 = vld [vmem:[%s5538_s0 + $0x60] sm:$0xff]  ;;  %v36_v38 = vld [vmem:[%s5538_s0 + $0x70] sm:$0xff]  ;;  %v39_v39 = vld [vmem:[%s5538_s0 + $0x88] sm:$0xff] }
   0xc   :  { %3155 = vmatprep.subr.bf16.mxu0 %v3271_v6  ;;  %v41_v40 = vld [vmem:[%s5538_s0 + $0x98] sm:$0xff]  ;;  %v92_v41 = vpack.c.bf16 %v36_v38, %v34_v37  ;;  %v38_v43 = vld [vmem:[%s5538_s0 + $0x80] sm:$0xff]  ;;  %v40_v44 = vld [vmem:[%s5538_s0 + $0x90] sm:$0xff] }
   0xd   :  { %v95_v42 = vpack.c.bf16 %v41_v40, %v39_v39  ;;  %v43_v45 = vld [vmem:[%s5538_s0 + $0xa8] sm:$0xff]  ;;  %v45_v46 = vld [vmem:[%s5538_s0 + $0xb8] sm:$0xff]  ;;  %v94_v47 = vpack.c.bf16 %v40_v44, %v38_v43 }
   0xe   :  { %v97_v48 = vpack.c.bf16 %v45_v46, %v43_v45 }
   0xf   :  { %3156 = vmatpush3.bf16.msra.mxu0 %v3272_v7 }
  0x10   :  { %3157 = vmatprep.subr.bf16.mxu0 %v3273_v8 }
  0x13   :  { %3158 = vmatpush3.bf16.msra.mxu0 %v3274_v9 }
  0x14   :  { %3159 = vmatprep.subr.bf16.mxu0 %v3275_v10 }
  0x17   :  { %3160 = vmatpush3.bf16.msra.mxu0 %v3276_v14 }
  0x18   :  { %3161 = vmatprep.subr.bf16.mxu0 %v3277_v15 }
  0x1b   :  { %3162 = vmatpush3.bf16.msra.mxu0 %v3278_v16 }
  0x1c   :  { %3163 = vmatprep.subr.bf16.mxu0 %v3279_v17 }
  0x1f   :  { %3164 = vmatpush3.bf16.msra.mxu0 %v3280_v18 }
  0x22   :  { %286 = vmatmul.mubr.bf16.vlgmr.msra.gmra.mrb[0].mxu0 %v86_v23 }
  0x23   :  { %293 = vmatprep.mubr.bf16.mxu0 %v89_v24 }
  0x2a   :  { %294 = vmatmul.mubr.bf16.gmra.mrb[4].mxu0 %v88_v29 }
  0x2b   :  { %301 = vmatprep.mubr.bf16.mxu0 %v91_v30 }
  0x32   :  { %302 = vmatmul.mubr.bf16.gmra.mrb[8].mxu0 %v90_v35 }
  0x33   :  { %309 = vmatprep.mubr.bf16.mxu0 %v93_v36 }
  0x3a   :  { %310 = vmatmul.mubr.bf16.gmra.mrb[12].mxu0 %v92_v41 }
  0x3b   :  { %317 = vmatprep.mubr.bf16.mxu0 %v95_v42 }
  0x3c   :  { %10 = vsyncpa [#allocation3], 0  ;;  %v42_v49 = vld [vmem:[%s5538_s0 + $0xa0] sm:$0xff]  ;;  %v44_v50 = vld [vmem:[%s5538_s0 + $0xb0] sm:$0xff]  ;;  %vm621_vm0 = vcmask 1040384   ;;  %vm5544_vm1 = vcmask 269312  }
  0x3d   :  { %v47_v51 = vld [vmem:[%s5538_s0 + $0xc8] sm:$0xff]  ;;  %v49_v52 = vld [vmem:[%s5538_s0 + $0xd8] sm:$0xff]  ;;  %v96_v53 = vpack.c.bf16 %v44_v50, %v42_v49  ;;  %v46_v55 = vld [vmem:[%s5538_s0 + $0xc0] sm:$0xff] }
  0x3e   :  { %v99_v54 = vpack.c.bf16 %v49_v52, %v47_v51  ;;  %v48_v56 = vld [vmem:[%s5538_s0 + $0xd0] sm:$0xff]  ;;  %v51_v57 = vld [vmem:[%s5538_s0 + $0xe8] sm:$0xff]  ;;  %v53_v58 = vld [vmem:[%s5538_s0 + $0xf8] sm:$0xff] }
  0x3f   :  { %v98_v59 = vpack.c.bf16 %v48_v56, %v46_v55  ;;  %v101_v60 = vpack.c.bf16 %v53_v58, %v51_v57  ;;  %v50_v61 = vld [vmem:[%s5538_s0 + $0xe0] sm:$0xff]  ;;  %v52_v62 = vld [vmem:[%s5538_s0 + $0xf0] sm:$0xff]  ;;  %v55_v63 = vld [vmem:[%s5538_s0 + $0x108] sm:$0xff] }
  0x40   :  { %v57_v0 = vld [vmem:[%s5538_s0 + $0x118] sm:$0xff]  ;;  %v100_v1 = vpack.c.bf16 %v52_v62, %v50_v61  ;;  %v54_v3 = vld [vmem:[%s5538_s0 + $0x100] sm:$0xff]  ;;  %v56_v4 = vld [vmem:[%s5538_s0 + $0x110] sm:$0xff] }
  0x41   :  { %v103_v2 = vpack.c.bf16 %v57_v0, %v55_v63  ;;  %v59_v5 = vld [vmem:[%s5538_s0 + $0x128] sm:$0xff]  ;;  %v61_v6 = vld [vmem:[%s5538_s0 + $0x138] sm:$0xff]  ;;  %v102_v7 = vpack.c.bf16 %v56_v4, %v54_v3  ;;  %v58_v9 = vld [vmem:[%s5538_s0 + $0x120] sm:$0xff] }
  0x42   :  { %318 = vmatmul.mubr.bf16.gmra.mrb[16].mxu0 %v94_v47  ;;  %v105_v8 = vpack.c.bf16 %v61_v6, %v59_v5  ;;  %v60_v10 = vld [vmem:[%s5538_s0 + $0x130] sm:$0xff]  ;;  %v63_v11 = vld [vmem:[%s5538_s0 + $0x148] sm:$0xff]  ;;  %v65_v12 = vld [vmem:[%s5538_s0 + $0x158] sm:$0xff] }
  0x43   :  { %325 = vmatprep.mubr.bf16.mxu0 %v97_v48  ;;  %v104_v13 = vpack.c.bf16 %v60_v10, %v58_v9  ;;  %v107_v14 = vpack.c.bf16 %v65_v12, %v63_v11  ;;  %v62_v15 = vld [vmem:[%s5538_s0 + $0x140] sm:$0xff]  ;;  %v64_v16 = vld [vmem:[%s5538_s0 + $0x150] sm:$0xff]  ;;  %v67_v17 = vld [vmem:[%s5538_s0 + $0x168] sm:$0xff] }
  0x44   :  { %v69_v18 = vld [vmem:[%s5538_s0 + $0x178] sm:$0xff]  ;;  %v106_v19 = vpack.c.bf16 %v64_v16, %v62_v15  ;;  %v66_v21 = vld [vmem:[%s5538_s0 + $0x160] sm:$0xff]  ;;  %v68_v22 = vld [vmem:[%s5538_s0 + $0x170] sm:$0xff] }
  0x45   :  { %v109_v20 = vpack.c.bf16 %v69_v18, %v67_v17  ;;  %v71_v23 = vld [vmem:[%s5538_s0 + $0x188] sm:$0xff]  ;;  %v73_v24 = vld [vmem:[%s5538_s0 + $0x198] sm:$0xff]  ;;  %v108_v25 = vpack.c.bf16 %v68_v22, %v66_v21  ;;  %v70_v27 = vld [vmem:[%s5538_s0 + $0x180] sm:$0xff] }
  0x46   :  { %v111_v26 = vpack.c.bf16 %v73_v24, %v71_v23  ;;  %v72_v28 = vld [vmem:[%s5538_s0 + $0x190] sm:$0xff]  ;;  %v75_v29 = vld [vmem:[%s5538_s0 + $0x1a8] sm:$0xff]  ;;  %v77_v30 = vld [vmem:[%s5538_s0 + $0x1b8] sm:$0xff] }
  0x47   :  { %v110_v31 = vpack.c.bf16 %v72_v28, %v70_v27  ;;  %v113_v32 = vpack.c.bf16 %v77_v30, %v75_v29  ;;  %v74_v33 = vld [vmem:[%s5538_s0 + $0x1a0] sm:$0xff]  ;;  %v76_v34 = vld [vmem:[%s5538_s0 + $0x1b0] sm:$0xff]  ;;  %v79_v35 = vld [vmem:[%s5538_s0 + $0x1c8] sm:$0xff] }
  0x48   :  { %v81_v36 = vld [vmem:[%s5538_s0 + $0x1d8] sm:$0xff]  ;;  %v112_v37 = vpack.c.bf16 %v76_v34, %v74_v33  ;;  %v78_v39 = vld [vmem:[%s5538_s0 + $0x1c0] sm:$0xff]  ;;  %v80_v40 = vld [vmem:[%s5538_s0 + $0x1d0] sm:$0xff] }
  0x49   :  { %v115_v38 = vpack.c.bf16 %v81_v36, %v79_v35  ;;  %v83_v41 = vld [vmem:[%s5538_s0 + $0x1e8] sm:$0xff]  ;;  %v85_v42 = vld [vmem:[%s5538_s0 + $0x1f8] sm:$0xff]  ;;  %v114_v43 = vpack.c.bf16 %v80_v40, %v78_v39  ;;  %v82_v45 = vld [vmem:[%s5538_s0 + $0x1e0] sm:$0xff] }
  0x4a   :  { %326 = vmatmul.mubr.bf16.gmra.mrb[20].mxu0 %v96_v53  ;;  %v117_v44 = vpack.c.bf16 %v85_v42, %v83_v41  ;;  %v84_v46 = vld [vmem:[%s5538_s0 + $0x1f0] sm:$0xff]  ;;  %v3687_v49 = vld [vmem:[%s5540_s2] ss:$0 sm:$0xff] }
  0x4b   :  { %333 = vmatprep.mubr.bf16.mxu0 %v99_v54  ;;  %v116_v47 = vpack.c.bf16 %v84_v46, %v82_v45 }
  0x52   :  { %334 = vmatmul.mubr.bf16.gmra.mrb[24].mxu0 %v98_v59 }
  0x53   :  { %341 = vmatprep.mubr.bf16.mxu0 %v101_v60 }
  0x5a   :  { %342 = vmatmul.mubr.bf16.gmra.mrb[28].mxu0 %v100_v1 }
  0x5b   :  { %349 = vmatprep.mubr.bf16.mxu0 %v103_v2 }
  0x62   :  { %350 = vmatmul.mubr.bf16.gmra.mrb[32].mxu0 %v102_v7 }
  0x63   :  { %357 = vmatprep.mubr.bf16.mxu0 %v105_v8 }
  0x6a   :  { %358 = vmatmul.mubr.bf16.gmra.mrb[36].mxu0 %v104_v13 }
  0x6b   :  { %365 = vmatprep.mubr.bf16.mxu0 %v107_v14 }
  0x72   :  { %366 = vmatmul.mubr.bf16.gmra.mrb[40].mxu0 %v106_v19 }
  0x73   :  { %373 = vmatprep.mubr.bf16.mxu0 %v109_v20 }
  0x7a   :  { %374 = vmatmul.mubr.bf16.gmra.mrb[44].mxu0 %v108_v25 }
  0x7b   :  { %381 = vmatprep.mubr.bf16.mxu0 %v111_v26 }
  0x82   :  { %382 = vmatmul.mubr.bf16.gmra.mrb[48].mxu0 %v110_v31 }
  0x83   :  { %389 = vmatprep.mubr.bf16.mxu0 %v113_v32 }
  0x8a   :  { %390 = vmatmul.mubr.bf16.gmra.mrb[52].mxu0 %v112_v37 }
  0x8b   :  { %397 = vmatprep.mubr.bf16.mxu0 %v115_v38 }
  0x92   :  { %398 = vmatmul.mubr.bf16.gmra.mrb[56].mxu0 %v114_v43 }
  0x93   :  { %405 = vmatprep.mubr.bf16.mxu0 %v117_v44 }
  0x9a   :  { %406 = vmatmul.mubr.bf16.gmra.mrb[60].mxu0 %v116_v47 }
  0xf5   :  { %v3165_v48 = vpop.f32.mrb[0].mxu0 }
  0xf6   :  { %v3166_v50 = vpop.f32.mrb[1].mxu0 }
  0xf7   :  { %v3167_v51 = vadd.f32 %v3166_v50, %v3165_v48  ;;  %v3168_v52 = vpop.f32.mrb[2].mxu0 }
  0xf8   :  { %v3169_v53 = vpop.f32.mrb[3].mxu0 }
  0xf9   :  { %v288_v54 = vadd.f32 %v3167_v51, %v3687_v49  ;;  %v3170_v55 = vadd.f32 %v3169_v53, %v3168_v52 }
  0xfb   :  { %v291_v56 = vadd.f32 %v3170_v55, %v3687_v49  ;;  %3322 = vtanh.f32 %v288_v54 }
  0xfd   :  { %v3171_v57 = vpop.f32.mrb[4].mxu0  ;;  %3324 = vtanh.f32 %v291_v56 }
  0xfe   :  { %v3172_v58 = vpop.f32.mrb[5].mxu0 }
  0xff   :  { %v3173_v59 = vadd.f32 %v3172_v58, %v3171_v57  ;;  %v3174_v60 = vpop.f32.mrb[6].mxu0 }
 0x100   :  { %v3175_v61 = vpop.f32.mrb[7].mxu0 }
 0x101   :  { %v296_v62 = vadd.f32 %v3173_v59, %v3687_v49  ;;  %v3176_v63 = vadd.f32 %v3175_v61, %v3174_v60 }
 0x103   :  { %3326 = vtanh.f32 %v296_v62  ;;  %v299_v0 = vadd.f32 %v3176_v63, %v3687_v49 }
 0x105   :  { %v3323_v1 = vpop.eup %3322  ;;  %v3177_v2 = vpop.f32.mrb[8].mxu0  ;;  %3328 = vtanh.f32 %v299_v0 }
 0x106   :  { %v3178_v3 = vpop.f32.mrb[9].mxu0  ;;  %446 = vxpose.xlu1.b32.start [1/16] (narrow) %v3323_v1, 32 }
 0x107   :  { %v3179_v4 = vadd.f32 %v3178_v3, %v3177_v2  ;;  %v3180_v5 = vpop.f32.mrb[10].mxu0  ;;  %v3325_v7 = vpop.eup %3324 }
 0x108   :  { %v3181_v6 = vpop.f32.mrb[11].mxu0 }
 0x109   :  { %v304_v8 = vadd.f32 %v3179_v4, %v3687_v49  ;;  %v3182_v9 = vadd.f32 %v3181_v6, %v3180_v5 }
 0x10a   :  { %447 = vxpose.xlu1.b32.cont [2/16] (narrow) %v3325_v7, 32 }
 0x10b   :  { %3330 = vtanh.f32 %v304_v8  ;;  %v307_v10 = vadd.f32 %v3182_v9, %v3687_v49 }
 0x10d   :  { %v3327_v11 = vpop.eup %3326  ;;  %v3183_v12 = vpop.f32.mrb[12].mxu0  ;;  %3332 = vtanh.f32 %v307_v10 }
 0x10e   :  { %v3184_v13 = vpop.f32.mrb[13].mxu0  ;;  %448 = vxpose.xlu1.b32.cont [3/16] (narrow) %v3327_v11, 32 }
 0x10f   :  { %v3185_v14 = vadd.f32 %v3184_v13, %v3183_v12  ;;  %v3186_v15 = vpop.f32.mrb[14].mxu0  ;;  %v3329_v17 = vpop.eup %3328 }
 0x110   :  { %v3187_v16 = vpop.f32.mrb[15].mxu0 }
 0x111   :  { %v312_v18 = vadd.f32 %v3185_v14, %v3687_v49  ;;  %v3188_v19 = vadd.f32 %v3187_v16, %v3186_v15 }
 0x112   :  { %449 = vxpose.xlu1.b32.cont [4/16] (narrow) %v3329_v17, 32 }
 0x113   :  { %3334 = vtanh.f32 %v312_v18  ;;  %v315_v20 = vadd.f32 %v3188_v19, %v3687_v49 }
 0x115   :  { %v3331_v21 = vpop.eup %3330  ;;  %v3189_v22 = vpop.f32.mrb[16].mxu0  ;;  %3336 = vtanh.f32 %v315_v20 }
 0x116   :  { %v3190_v23 = vpop.f32.mrb[17].mxu0  ;;  %450 = vxpose.xlu1.b32.cont [5/16] (narrow) %v3331_v21, 32 }
 0x117   :  { %v3191_v24 = vadd.f32 %v3190_v23, %v3189_v22  ;;  %v3192_v25 = vpop.f32.mrb[18].mxu0  ;;  %v3333_v27 = vpop.eup %3332 }
 0x118   :  { %v3193_v26 = vpop.f32.mrb[19].mxu0 }
 0x119   :  { %v320_v28 = vadd.f32 %v3191_v24, %v3687_v49  ;;  %v3194_v29 = vadd.f32 %v3193_v26, %v3192_v25 }
 0x11a   :  { %451 = vxpose.xlu1.b32.cont [6/16] (narrow) %v3333_v27, 32 }
 0x11b   :  { %3338 = vtanh.f32 %v320_v28  ;;  %v323_v30 = vadd.f32 %v3194_v29, %v3687_v49 }
 0x11d   :  { %v3335_v31 = vpop.eup %3334  ;;  %v3195_v32 = vpop.f32.mrb[20].mxu0  ;;  %3340 = vtanh.f32 %v323_v30 }
 0x11e   :  { %v3196_v33 = vpop.f32.mrb[21].mxu0  ;;  %452 = vxpose.xlu1.b32.cont [7/16] (narrow) %v3335_v31, 32 }
 0x11f   :  { %v3197_v34 = vadd.f32 %v3196_v33, %v3195_v32  ;;  %v3198_v35 = vpop.f32.mrb[22].mxu0  ;;  %v3337_v37 = vpop.eup %3336 }
 0x120   :  { %v3199_v36 = vpop.f32.mrb[23].mxu0 }
 0x121   :  { %v328_v38 = vadd.f32 %v3197_v34, %v3687_v49  ;;  %v3200_v39 = vadd.f32 %v3199_v36, %v3198_v35 }
 0x122   :  { %453 = vxpose.xlu1.b32.cont [8/16] (narrow) %v3337_v37, 32 }
 0x123   :  { %3342 = vtanh.f32 %v328_v38  ;;  %v331_v40 = vadd.f32 %v3200_v39, %v3687_v49 }
 0x125   :  { %v3339_v41 = vpop.eup %3338  ;;  %v3201_v42 = vpop.f32.mrb[24].mxu0  ;;  %3344 = vtanh.f32 %v331_v40 }
 0x126   :  { %v3202_v43 = vpop.f32.mrb[25].mxu0  ;;  %454 = vxpose.xlu1.b32.cont [9/16] (narrow) %v3339_v41, 32 }
 0x127   :  { %v3203_v44 = vadd.f32 %v3202_v43, %v3201_v42  ;;  %v3204_v45 = vpop.f32.mrb[26].mxu0  ;;  %v3341_v47 = vpop.eup %3340 }
 0x128   :  { %v3205_v46 = vpop.f32.mrb[27].mxu0 }
 0x129   :  { %v336_v48 = vadd.f32 %v3203_v44, %v3687_v49  ;;  %v3206_v50 = vadd.f32 %v3205_v46, %v3204_v45  ;;  %v5545_v44 = vmov 0  }
 0x12a   :  { %455 = vxpose.xlu1.b32.cont [10/16] (narrow) %v3341_v47, 32  ;;  %659 = vmatprep.mubr.bf16.mxu1 %v5545_v44 }
 0x12b   :  { %3346 = vtanh.f32 %v336_v48  ;;  %v339_v51 = vadd.f32 %v3206_v50, %v3687_v49  ;;  %2345 = vmatprep.mubr.bf16.mxu0 %v5545_v44 }
 0x12d   :  { %v3343_v52 = vpop.eup %3342  ;;  %v3207_v53 = vpop.f32.mrb[28].mxu0  ;;  %3348 = vtanh.f32 %v339_v51 }
 0x12e   :  { %v3208_v54 = vpop.f32.mrb[29].mxu0  ;;  %456 = vxpose.xlu1.b32.cont [11/16] (narrow) %v3343_v52, 32 }
 0x12f   :  { %v3209_v55 = vadd.f32 %v3208_v54, %v3207_v53  ;;  %v3210_v56 = vpop.f32.mrb[30].mxu0  ;;  %v3345_v58 = vpop.eup %3344 }
 0x130   :  { %v3211_v57 = vpop.f32.mrb[31].mxu0 }
 0x131   :  { %v344_v59 = vadd.f32 %v3209_v55, %v3687_v49  ;;  %v3212_v60 = vadd.f32 %v3211_v57, %v3210_v56 }
 0x132   :  { %457 = vxpose.xlu1.b32.cont [12/16] (narrow) %v3345_v58, 32 }
 0x133   :  { %3350 = vtanh.f32 %v344_v59  ;;  %v347_v61 = vadd.f32 %v3212_v60, %v3687_v49 }
 0x135   :  { %v3347_v62 = vpop.eup %3346  ;;  %v3213_v63 = vpop.f32.mrb[32].mxu0  ;;  %3352 = vtanh.f32 %v347_v61 }
 0x136   :  { %v3214_v0 = vpop.f32.mrb[33].mxu0  ;;  %458 = vxpose.xlu1.b32.cont [13/16] (narrow) %v3347_v62, 32 }
 0x137   :  { %v3215_v1 = vadd.f32 %v3214_v0, %v3213_v63  ;;  %v3216_v2 = vpop.f32.mrb[34].mxu0  ;;  %v3349_v4 = vpop.eup %3348 }
 0x138   :  { %v3217_v3 = vpop.f32.mrb[35].mxu0 }
 0x139   :  { %v352_v5 = vadd.f32 %v3215_v1, %v3687_v49  ;;  %v3218_v6 = vadd.f32 %v3217_v3, %v3216_v2 }
 0x13a   :  { %459 = vxpose.xlu1.b32.cont [14/16] (narrow) %v3349_v4, 32 }
 0x13b   :  { %v355_v7 = vadd.f32 %v3218_v6, %v3687_v49  ;;  %3354 = vtanh.f32 %v352_v5 }
 0x13d   :  { %v3351_v8 = vpop.eup %3350  ;;  %v3219_v9 = vpop.f32.mrb[36].mxu0  ;;  %3356 = vtanh.f32 %v355_v7 }
 0x13e   :  { %v3220_v10 = vpop.f32.mrb[37].mxu0  ;;  %460 = vxpose.xlu1.b32.cont [15/16] (narrow) %v3351_v8, 32 }
 0x13f   :  { %v3221_v11 = vadd.f32 %v3220_v10, %v3219_v9  ;;  %v3222_v12 = vpop.f32.mrb[38].mxu0  ;;  %v3353_v14 = vpop.eup %3352 }
 0x140   :  { %v3223_v13 = vpop.f32.mrb[39].mxu0 }
 0x141   :  { %v360_v15 = vadd.f32 %v3221_v11, %v3687_v49  ;;  %v3224_v16 = vadd.f32 %v3223_v13, %v3222_v12 }
 0x142   :  { %461 = vxpose.xlu1.b32.end [16/16] (narrow) %v3353_v14, 32 }
 0x143   :  { %3358 = vtanh.f32 %v360_v15  ;;  %v363_v17 = vadd.f32 %v3224_v16, %v3687_v49 }
 0x145   :  { %v3355_v18 = vpop.eup %3354  ;;  %v3225_v19 = vpop.f32.mrb[40].mxu0  ;;  %3360 = vtanh.f32 %v363_v17 }
 0x146   :  { %v3226_v20 = vpop.f32.mrb[41].mxu0  ;;  %478 = vxpose.xlu0.b32.start [1/16] (narrow) %v3355_v18, 32 }
 0x147   :  { %v3227_v21 = vadd.f32 %v3226_v20, %v3225_v19  ;;  %v3228_v22 = vpop.f32.mrb[42].mxu0  ;;  %v3357_v24 = vpop.eup %3356 }
 0x148   :  { %v3229_v23 = vpop.f32.mrb[43].mxu0 }
 0x149   :  { %v368_v25 = vadd.f32 %v3227_v21, %v3687_v49  ;;  %v3230_v26 = vadd.f32 %v3229_v23, %v3228_v22 }
 0x14a   :  { %479 = vxpose.xlu0.b32.cont [2/16] (narrow) %v3357_v24, 32 }
 0x14b   :  { %3362 = vtanh.f32 %v368_v25  ;;  %v371_v27 = vadd.f32 %v3230_v26, %v3687_v49 }
 0x14d   :  { %v3359_v28 = vpop.eup %3358  ;;  %v3231_v29 = vpop.f32.mrb[44].mxu0  ;;  %3364 = vtanh.f32 %v371_v27 }
 0x14e   :  { %v3232_v30 = vpop.f32.mrb[45].mxu0  ;;  %480 = vxpose.xlu0.b32.cont [3/16] (narrow) %v3359_v28, 32 }
 0x14f   :  { %v3233_v31 = vadd.f32 %v3232_v30, %v3231_v29  ;;  %v3234_v32 = vpop.f32.mrb[46].mxu0  ;;  %v3361_v34 = vpop.eup %3360 }
 0x150   :  { %v3235_v33 = vpop.f32.mrb[47].mxu0 }
 0x151   :  { %v376_v35 = vadd.f32 %v3233_v31, %v3687_v49  ;;  %v3236_v36 = vadd.f32 %v3235_v33, %v3234_v32 }
 0x152   :  { %481 = vxpose.xlu0.b32.cont [4/16] (narrow) %v3361_v34, 32 }
 0x153   :  { %3366 = vtanh.f32 %v376_v35  ;;  %v379_v37 = vadd.f32 %v3236_v36, %v3687_v49  ;;  %v3740_v35 = vsel %vm621_vm0, 65535, %v5545_v44 }
 0x154   :  { %5594 = vst [vmem:[#allocation5_spill] sm:$0xff] %v3740_v35 }
 0x155   :  { %v3363_v38 = vpop.eup %3362  ;;  %v3237_v39 = vpop.f32.mrb[48].mxu0  ;;  %3368 = vtanh.f32 %v379_v37 }
 0x156   :  { %v3238_v40 = vpop.f32.mrb[49].mxu0  ;;  %482 = vxpose.xlu0.b32.cont [5/16] (narrow) %v3363_v38, 32 }
 0x157   :  { %v3239_v41 = vadd.f32 %v3238_v40, %v3237_v39  ;;  %v3240_v42 = vpop.f32.mrb[50].mxu0  ;;  %v3365_v45 = vpop.eup %3364  ;;  %v625_v39 = vand.u32 1.0|1.0, %v3740_v35 }
 0x158   :  { %v3241_v43 = vpop.f32.mrb[51].mxu0 }
 0x159   :  { %v384_v46 = vadd.f32 %v3239_v41, %v3687_v49  ;;  %v3242_v47 = vadd.f32 %v3241_v43, %v3240_v42  ;;  %v3281_v41 = vld [vmem:[%s5541_s3] sm:$0xff]   ;;  %v3282_v42 = vld [vmem:[%s5541_s3 + $0x8] sm:$0xff]   ;;  %v3283_v43 = vld [vmem:[%s5541_s3 + $0x10] sm:$0xff]  }
 0x15a   :  { %483 = vxpose.xlu0.b32.cont [6/16] (narrow) %v3365_v45, 32  ;;  %v3284_v45 = vld [vmem:[%s5541_s3 + $0x18] sm:$0xff]  }
 0x15b   :  { %3370 = vtanh.f32 %v384_v46  ;;  %v387_v48 = vadd.f32 %v3242_v47, %v3687_v49  ;;  %v3285_v46 = vld [vmem:[%s5541_s3 + $0x20] sm:$0xff]   ;;  %v3286_v47 = vld [vmem:[%s5541_s3 + $0x28] sm:$0xff]  }
 0x15d   :  { %v3367_v50 = vpop.eup %3366  ;;  %v3243_v51 = vpop.f32.mrb[52].mxu0  ;;  %3372 = vtanh.f32 %v387_v48  ;;  %v3287_v48 = vld [vmem:[%s5541_s3 + $0x30] sm:$0xff]  }
 0x15e   :  { %v3244_v52 = vpop.f32.mrb[53].mxu0  ;;  %484 = vxpose.xlu0.b32.cont [7/16] (narrow) %v3367_v50, 32  ;;  %v3288_v50 = vld [vmem:[%s5541_s3 + $0x38] sm:$0xff]  }
 0x15f   :  { %v3245_v53 = vadd.f32 %v3244_v52, %v3243_v51  ;;  %v3246_v54 = vpop.f32.mrb[54].mxu0  ;;  %v3369_v56 = vpop.eup %3368 }
 0x160   :  { %v3247_v55 = vpop.f32.mrb[55].mxu0 }
 0x161   :  { %v392_v57 = vadd.f32 %v3245_v53, %v3687_v49  ;;  %v3248_v58 = vadd.f32 %v3247_v55, %v3246_v54 }
 0x162   :  { %485 = vxpose.xlu0.b32.cont [8/16] (narrow) %v3369_v56, 32 }
 0x163   :  { %3374 = vtanh.f32 %v392_v57  ;;  %v395_v59 = vadd.f32 %v3248_v58, %v3687_v49 }
 0x165   :  { %v3371_v60 = vpop.eup %3370  ;;  %v3249_v61 = vpop.f32.mrb[56].mxu0  ;;  %3376 = vtanh.f32 %v395_v59 }
 0x166   :  { %v3250_v62 = vpop.f32.mrb[57].mxu0  ;;  %486 = vxpose.xlu0.b32.cont [9/16] (narrow) %v3371_v60, 32 }
 0x167   :  { %v3251_v63 = vadd.f32 %v3250_v62, %v3249_v61  ;;  %v3252_v0 = vpop.f32.mrb[58].mxu0  ;;  %v3373_v2 = vpop.eup %3372 }
 0x168   :  { %v3253_v1 = vpop.f32.mrb[59].mxu0 }
 0x169   :  { %v400_v3 = vadd.f32 %v3251_v63, %v3687_v49  ;;  %v3254_v4 = vadd.f32 %v3253_v1, %v3252_v0 }
 0x16a   :  { %487 = vxpose.xlu0.b32.cont [10/16] (narrow) %v3373_v2, 32 }
 0x16b   :  { %3378 = vtanh.f32 %v400_v3  ;;  %v403_v5 = vadd.f32 %v3254_v4, %v3687_v49 }
 0x16d   :  { %v3375_v6 = vpop.eup %3374  ;;  %v3255_v7 = vpop.f32.mrb[60].mxu0  ;;  %3380 = vtanh.f32 %v403_v5 }
 0x16e   :  { %v3256_v8 = vpop.f32.mrb[61].mxu0  ;;  %488 = vxpose.xlu0.b32.cont [11/16] (narrow) %v3375_v6, 32 }
 0x16f   :  { %v3257_v9 = vadd.f32 %v3256_v8, %v3255_v7  ;;  %v3258_v10 = vpop.f32.mrb[62].mxu0  ;;  %v3377_v12 = vpop.eup %3376 }
 0x170   :  { %v3259_v11 = vpop.f32.mrb[63].mxu0 }
 0x171   :  { %v408_v13 = vadd.f32 %v3257_v9, %v3687_v49  ;;  %v3260_v14 = vadd.f32 %v3259_v11, %v3258_v10 }
 0x172   :  { %489 = vxpose.xlu0.b32.cont [12/16] (narrow) %v3377_v12, 32 }
 0x173   :  { %3382 = vtanh.f32 %v408_v13  ;;  %v411_v15 = vadd.f32 %v3260_v14, %v3687_v49 }
 0x175   :  { %v3379_v16 = vpop.eup %3378  ;;  %3384 = vtanh.f32 %v411_v15 }
 0x176   :  { %490 = vxpose.xlu0.b32.cont [13/16] (narrow) %v3379_v16, 32 }
 0x177   :  { %v3381_v17 = vpop.eup %3380 }
 0x17a   :  { %491 = vxpose.xlu0.b32.cont [14/16] (narrow) %v3381_v17, 32 }
 0x17d   :  { %v3383_v18 = vpop.eup %3382 }
 0x17e   :  { %492 = vxpose.xlu0.b32.cont [15/16] (narrow) %v3383_v18, 32 }
 0x17f   :  { %v3385_v19 = vpop.eup %3384 }
 0x182   :  { %493 = vxpose.xlu0.b32.end [16/16] (narrow) %v3385_v19, 32 }
 0x186   :  { %v462_v20 = vpop.trf.xlu1 }
 0x187   :  { %v3723_v24 = vmul.f32 -2.0, %v462_v20 }
 0x18a   :  { %v463_v21 = vpop.trf.xlu1 }
 0x18b   :  { %v3725_v25 = vmul.f32 -2.0, %v463_v21 }
 0x18d   :  { %v551_v30 = vpack.c.bf16 %v3725_v25, %v3723_v24 }
 0x18e   :  { %v464_v23 = vpop.trf.xlu1 }
 0x18f   :  { %v3735_v32 = vmul.f32 -2.0, %v464_v23 }
 0x192   :  { %v465_v31 = vpop.trf.xlu1 }
 0x193   :  { %v3737_v33 = vmul.f32 -2.0, %v465_v31 }
 0x195   :  { %v553_v40 = vpack.c.bf16 %v3737_v33, %v3735_v32 }
 0x1c6   :  { %v494_v22 = vpop.trf.xlu0 }
 0x1c7   :  { %v3727_v27 = vmul.f32 -2.0, %v494_v22 }
 0x1ca   :  { %v495_v26 = vpop.trf.xlu0 }
 0x1cb   :  { %v3729_v49 = vmul.f32 -2.0, %v495_v26 }
 0x1cd   :  { %v552_v28 = vpack.c.bf16 %v3729_v49, %v3727_v27 }
 0x1ce   :  { %v496_v29 = vpop.trf.xlu0 }
 0x1cf   :  { %627 = vmatprep.subr.bf16.mxu1 %v552_v28  ;;  %v3742_v36 = vmul.f32 -2.0, %v496_v29 }
 0x1d0   :  { %628 = vmatpush1.bf16.msra.mxu1 %v551_v30 }
 0x1d2   :  { %v497_v34 = vpop.trf.xlu0 }
 0x1d3   :  { %v3744_v37 = vmul.f32 -2.0, %v497_v34 }
 0x1d5   :  { %v554_v38 = vpack.c.bf16 %v3744_v37, %v3742_v36 }
 0x1d7   :  { %629 = vmatprep.subr.bf16.mxu1 %v554_v38 }
 0x1d8   :  { %630 = vmatpush1.bf16.msra.mxu1 %v553_v40 }
 0x1d9   :  { %631 = vmatprep.subr.bf16.mxu1 %v625_v39 }
 0x1dc   :  { %632 = vmatpush1.bf16.msra.mxu1 %v625_v39 }
 0x1df   :  { %2834 = vmatmul.mubr.msk.bf16.vlgmr.msra.gmra.mrb[0].mxu1 %vm5544_vm1, %v3281_v41 }
 0x1e0   :  { %669 = vmatprep.mubr.bf16.mxu1 %v5545_v44 }
 0x1e7   :  { %2835 = vmatmul.mubr.msk.bf16.gmra.mrb[4].mxu1 %vm5544_vm1, %v3282_v42 }
 0x1e8   :  { %679 = vmatprep.mubr.bf16.mxu1 %v5545_v44 }
 0x1ef   :  { %2836 = vmatmul.mubr.msk.bf16.gmra.mrb[8].mxu1 %vm5544_vm1, %v3283_v43 }
 0x1f0   :  { %689 = vmatprep.mubr.bf16.mxu1 %v5545_v44 }
 0x1f7   :  { %2837 = vmatmul.mubr.msk.bf16.gmra.mrb[12].mxu1 %vm5544_vm1, %v3284_v45 }
 0x1f8   :  { %699 = vmatprep.mubr.bf16.mxu1 %v5545_v44 }
 0x1ff   :  { %2838 = vmatmul.mubr.msk.bf16.gmra.mrb[16].mxu1 %vm5544_vm1, %v3285_v46 }
 0x200   :  { %709 = vmatprep.mubr.bf16.mxu1 %v5545_v44 }
 0x207   :  { %2839 = vmatmul.mubr.msk.bf16.gmra.mrb[20].mxu1 %vm5544_vm1, %v3286_v47 }
 0x208   :  { %719 = vmatprep.mubr.bf16.mxu1 %v5545_v44 }
 0x20f   :  { %2840 = vmatmul.mubr.msk.bf16.gmra.mrb[24].mxu1 %vm5544_vm1, %v3287_v48 }
 0x210   :  { %729 = vmatprep.mubr.bf16.mxu1 %v5545_v44 }
 0x217   :  { %2841 = vmatmul.mubr.msk.bf16.gmra.mrb[28].mxu1 %vm5544_vm1, %v3288_v50 }
 0x218   :  { %1113 = vmatprep.mubr.bf16.mxu1 %v5545_v44 }
 0x2b2   :  { %v3791_v51 = vpop.f32.mrb[0].mxu1 }
 0x2b3   :  { %v3793_v52 = vpop.f32.mrb[1].mxu1 }
 0x2b4   :  { %v3795_v53 = vpop.f32.mrb[2].mxu1 }
 0x2b5   :  { %v3797_v54 = vpop.f32.mrb[3].mxu1 }
 0x2ba   :  { %v3799_v55 = vpop.f32.mrb[4].mxu1 }
 0x2bb   :  { %v740_v56 = vmin.f32 %v3791_v51, %v3799_v55  ;;  %v3803_v57 = vpop.f32.mrb[5].mxu1 }
 0x2bc   :  { %v761_v58 = vmin.f32 %v3793_v52, %v3803_v57  ;;  %v3807_v59 = vpop.f32.mrb[6].mxu1 }
 0x2bd   :  { %v741_v60 = vmin.f32 %v3795_v53, %v3807_v59  ;;  %v3811_v61 = vpop.f32.mrb[7].mxu1 }
 0x2be   :  { %v762_v62 = vmin.f32 %v3797_v54, %v3811_v61 }
 0x2c2   :  { %v3815_v63 = vpop.f32.mrb[8].mxu1 }
 0x2c3   :  { %v742_v0 = vmin.f32 %v740_v56, %v3815_v63  ;;  %v3818_v1 = vpop.f32.mrb[9].mxu1 }
 0x2c4   :  { %v763_v2 = vmin.f32 %v761_v58, %v3818_v1  ;;  %v3821_v3 = vpop.f32.mrb[10].mxu1 }
 0x2c5   :  { %v743_v4 = vmin.f32 %v741_v60, %v3821_v3  ;;  %v3824_v5 = vpop.f32.mrb[11].mxu1 }
 0x2c6   :  { %v764_v6 = vmin.f32 %v762_v62, %v3824_v5 }
 0x2ca   :  { %v3827_v7 = vpop.f32.mrb[12].mxu1 }
 0x2cb   :  { %v744_v8 = vmin.f32 %v742_v0, %v3827_v7  ;;  %v3830_v9 = vpop.f32.mrb[13].mxu1 }
 0x2cc   :  { %v765_v10 = vmin.f32 %v763_v2, %v3830_v9  ;;  %v3833_v11 = vpop.f32.mrb[14].mxu1 }
 0x2cd   :  { %v745_v12 = vmin.f32 %v743_v4, %v3833_v11  ;;  %v3836_v13 = vpop.f32.mrb[15].mxu1 }
 0x2ce   :  { %v766_v14 = vmin.f32 %v764_v6, %v3836_v13 }
 0x2d2   :  { %v3839_v15 = vpop.f32.mrb[16].mxu1 }
 0x2d3   :  { %v746_v16 = vmin.f32 %v744_v8, %v3839_v15  ;;  %v3842_v17 = vpop.f32.mrb[17].mxu1  ;;  %v5547_v8 = vlaneseq }
 0x2d4   :  { %v767_v18 = vmin.f32 %v765_v10, %v3842_v17  ;;  %v3845_v19 = vpop.f32.mrb[18].mxu1 }
 0x2d5   :  { %v747_v20 = vmin.f32 %v745_v12, %v3845_v19  ;;  %v3848_v21 = vpop.f32.mrb[19].mxu1 }
 0x2d6   :  { %v768_v22 = vmin.f32 %v766_v14, %v3848_v21 }
 0x2da   :  { %v3851_v23 = vpop.f32.mrb[20].mxu1 }
 0x2db   :  { %v748_v26 = vmin.f32 %v746_v16, %v3851_v23  ;;  %v3854_v28 = vpop.f32.mrb[21].mxu1 }
 0x2dc   :  { %v769_v29 = vmin.f32 %v767_v18, %v3854_v28  ;;  %v3857_v30 = vpop.f32.mrb[22].mxu1  ;;  %v3888_v18 = vshrl.u32 %v5547_v8, 7 }
 0x2dd   :  { %v749_v31 = vmin.f32 %v747_v20, %v3857_v30  ;;  %v3860_v34 = vpop.f32.mrb[23].mxu1 }
 0x2de   :  { %v770_v38 = vmin.f32 %v768_v22, %v3860_v34 }
 0x2e2   :  { %v3863_v39 = vpop.f32.mrb[24].mxu1 }
 0x2e3   :  { %v750_v40 = vmin.f32 %v748_v26, %v3863_v39  ;;  %v3866_v41 = vpop.f32.mrb[25].mxu1 }
 0x2e4   :  { %v771_v42 = vmin.f32 %v769_v29, %v3866_v41  ;;  %v3869_v43 = vpop.f32.mrb[26].mxu1 }
 0x2e5   :  { %v751_v45 = vmin.f32 %v749_v31, %v3869_v43  ;;  %v3872_v46 = vpop.f32.mrb[27].mxu1  ;;  %v3891_v31 = vadd.s32 8, %v3888_v18 }
 0x2e6   :  { %v772_v47 = vmin.f32 %v770_v38, %v3872_v46  ;;  %v3894_v38 = vadd.s32 16, %v3888_v18 }
 0x2ea   :  { %v3875_v48 = vpop.f32.mrb[28].mxu1 }
 0x2eb   :  { %v752_v50 = vmin.f32 %v750_v40, %v3875_v48  ;;  %v3878_v56 = vpop.f32.mrb[29].mxu1 }
 0x2ec   :  { %v773_v58 = vmin.f32 %v771_v42, %v3878_v56  ;;  %v3881_v60 = vpop.f32.mrb[30].mxu1  ;;  %v3897_v42 = vadd.s32 24, %v3888_v18 }
 0x2ed   :  { %v753_v62 = vmin.f32 %v751_v45, %v3881_v60  ;;  %v3884_v0 = vpop.f32.mrb[31].mxu1  ;;  %v3900_v45 = vadd.s32 32, %v3888_v18 }
 0x2ee   :  { %v774_v2 = vmin.f32 %v772_v47, %v3884_v0  ;;  %v3903_v47 = vadd.s32 40, %v3888_v18 }
 0x2ef   :  { %v754_v4 = vmin.f32 %v752_v50, %v753_v62  ;;  %v3906_v50 = vadd.s32 48, %v3888_v18  ;;  %v3912_v62 = vadd.s32 64, %v3888_v18 }
 0x2f0   :  { %v775_v6 = vmin.f32 %v773_v58, %v774_v2  ;;  %v3909_v58 = vadd.s32 56, %v3888_v18  ;;  %v3915_v2 = vadd.s32 72, %v3888_v18 }
 0x2f1   :  { %v755_v10 = vrot.slane %v754_v4, 4 }
 0x2f2   :  { %v776_v12 = vrot.slane %v775_v6, 4 }
 0x2f3   :  { %v756_v14 = vmin.f32 %v754_v4, %v755_v10  ;;  %v3923_v10 = vadd.s32 88, %v3888_v18 }
 0x2f4   :  { %v777_v16 = vmin.f32 %v775_v6, %v776_v12  ;;  %v3920_v6 = vadd.s32 80, %v3888_v18  ;;  %v3926_v12 = vadd.s32 96, %v3888_v18 }
 0x2f5   :  { %v757_v20 = vrot.slane %v756_v14, 2 }
 0x2f6   :  { %v778_v22 = vrot.slane %v777_v16, 2 }
 0x2f7   :  { %v758_v26 = vmin.f32 %v756_v14, %v757_v20  ;;  %v3964_v20 = vadd.s32 112, %v3888_v18 }
 0x2f8   :  { %v779_v29 = vmin.f32 %v777_v16, %v778_v22  ;;  %v3961_v16 = vadd.s32 104, %v3888_v18  ;;  %v3967_v22 = vadd.s32 120, %v3888_v18 }
 0x2f9   :  { %v759_v40 = vrot.slane %v758_v26, 1  ;;  %5596 = vst [vmem:[#allocation7_spill] sm:$0xff] %v3964_v20 }
 0x2fa   :  { %v780_v14 = vrot.slane %v779_v29, 1  ;;  %5595 = vst [vmem:[#allocation6_spill] sm:$0xff] %v3961_v16  ;;  %5597 = vst [vmem:[#allocation8_spill] sm:$0xff] %v3967_v22 }
 0x2fb   :  { %v3917_v4 = vmin.f32 %v758_v26, %v759_v40 }
 0x2fc   :  { %v3969_v26 = vmin.f32 %v779_v29, %v780_v14 }
 0x2fd   :  { %vm782_vm2 = vcmp.le.f32.partialorder %v3791_v51, %v3917_v4  ;;  %vm784_vm3 = vcmp.le.f32.partialorder %v3795_v53, %v3917_v4  ;;  %vm786_vm4 = vcmp.le.f32.partialorder %v3799_v55, %v3917_v4  ;;  %vm788_vm5 = vcmp.le.f32.partialorder %v3807_v59, %v3917_v4 }
 0x2fe   :  { %vm790_vm6 = vcmp.le.f32.partialorder %v3815_v63, %v3917_v4  ;;  %vm792_vm7 = vcmp.le.f32.partialorder %v3821_v3, %v3917_v4  ;;  %vm794_vm8 = vcmp.le.f32.partialorder %v3827_v7, %v3917_v4  ;;  %vm796_vm9 = vcmp.le.f32.partialorder %v3833_v11, %v3917_v4 }
 0x2ff   :  { %vm798_vm10 = vcmp.le.f32.partialorder %v3839_v15, %v3917_v4  ;;  %vm800_vm11 = vcmp.le.f32.partialorder %v3845_v19, %v3917_v4  ;;  %vm802_vm12 = vcmp.le.f32.partialorder %v3851_v23, %v3917_v4  ;;  %vm804_vm13 = vcmp.le.f32.partialorder %v3857_v30, %v3917_v4 }
 0x300   :  { %vm806_vm14 = vcmp.le.f32.partialorder %v3863_v39, %v3917_v4  ;;  %vm808_vm15 = vcmp.le.f32.partialorder %v3869_v43, %v3917_v4  ;;  %vm810_vm0 = vcmp.le.f32.partialorder %v3875_v48, %v3917_v4  ;;  %vm812_vm1 = vcmp.le.f32.partialorder %v3881_v60, %v3917_v4 }
 0x301   :  { %v814_v40 = vsel %vm782_vm2, %v3888_v18, 128  ;;  %v816_v44 = vsel %vm784_vm3, %v3891_v31, 128  ;;  %v818_v8 = vsel %vm786_vm4, %v3894_v38, 128  ;;  %v820_v29 = vsel %vm788_vm5, %v3897_v42, 128 }
 0x302   :  { %v822_v51 = vsel %vm790_vm6, %v3900_v45, 128  ;;  %v824_v53 = vsel %vm792_vm7, %v3903_v47, 128  ;;  %v826_v55 = vsel %vm794_vm8, %v3906_v50, 128  ;;  %v828_v59 = vsel %vm796_vm9, %v3909_v58, 128 }
 0x303   :  { %v830_v63 = vsel %vm798_vm10, %v3912_v62, 128  ;;  %v832_v3 = vsel %vm800_vm11, %v3915_v2, 128  ;;  %v834_v7 = vsel %vm802_vm12, %v3920_v6, 128  ;;  %v836_v11 = vsel %vm804_vm13, %v3923_v10, 128 }
 0x304   :  { %vm846_vm2 = vcmp.lt.s32.totalorder %v814_v40, %v818_v8  ;;  %vm848_vm3 = vcmp.lt.s32.totalorder %v816_v44, %v820_v29  ;;  %vm783_vm4 = vcmp.le.f32.partialorder %v3793_v52, %v3969_v26  ;;  %vm785_vm5 = vcmp.le.f32.partialorder %v3797_v54, %v3969_v26 }
 0x305   :  { %v847_v15 = vsel %vm846_vm2, %v814_v40, %v818_v8  ;;  %v849_v19 = vsel %vm848_vm3, %v816_v44, %v820_v29  ;;  %vm799_vm7 = vcmp.le.f32.partialorder %v3842_v17, %v3969_v26  ;;  %vm807_vm13 = vcmp.le.f32.partialorder %v3866_v41, %v3969_v26 }
 0x306   :  { %vm850_vm8 = vcmp.lt.s32.totalorder %v847_v15, %v822_v51  ;;  %vm852_vm9 = vcmp.lt.s32.totalorder %v849_v19, %v824_v53  ;;  %vm809_vm10 = vcmp.le.f32.partialorder %v3872_v46, %v3969_v26  ;;  %v838_v29 = vsel %vm806_vm14, %v3926_v12, 128 }
 0x307   :  { %v851_v23 = vsel %vm850_vm8, %v847_v15, %v822_v51  ;;  %v853_v30 = vsel %vm852_vm9, %v849_v19, %v824_v53  ;;  %vm805_vm9 = vcmp.le.f32.partialorder %v3860_v34, %v3969_v26  ;;  %v840_v51 = vsel %vm808_vm15, %v3961_v16, 128 }
 0x308   :  { %vm854_vm2 = vcmp.lt.s32.totalorder %v851_v23, %v826_v55  ;;  %vm856_vm3 = vcmp.lt.s32.totalorder %v853_v30, %v828_v59  ;;  %v815_v43 = vsel %vm783_vm4, %v3888_v18, 128  ;;  %v817_v48 = vsel %vm785_vm5, %v3891_v31, 128 }
 0x309   :  { %v855_v44 = vsel %vm854_vm2, %v851_v23, %v826_v55  ;;  %v857_v8 = vsel %vm856_vm3, %v853_v30, %v828_v59  ;;  %vm811_vm2 = vcmp.le.f32.partialorder %v3878_v56, %v3969_v26  ;;  %vm813_vm3 = vcmp.le.f32.partialorder %v3884_v0, %v3969_v26 }
 0x30a   :  { %vm858_vm12 = vcmp.lt.s32.totalorder %v855_v44, %v830_v63  ;;  %vm860_vm11 = vcmp.lt.s32.totalorder %v857_v8, %v832_v3  ;;  %v842_v59 = vsel %vm810_vm0, %v3964_v20, 128  ;;  %vm5599_vm0 = vcmp.le.f32.partialorder %v3811_v61, %v3969_v26 }
 0x30b   :  { %v859_v14 = vsel %vm858_vm12, %v855_v44, %v830_v63  ;;  %v861_v40 = vsel %vm860_vm11, %v857_v8, %v832_v3  ;;  %v844_v63 = vsel %vm812_vm1, %v3967_v22, 128  ;;  %vm5598_vm1 = vcmp.le.f32.partialorder %v3803_v57, %v3969_v26 }
 0x30c   :  { %vm862_vm8 = vcmp.lt.s32.totalorder %v859_v14, %v834_v7  ;;  %vm864_vm6 = vcmp.lt.s32.totalorder %v861_v40, %v836_v11  ;;  %v819_v60 = vsel %vm5598_vm1, %v3894_v38, 128  ;;  %v821_v4 = vsel %vm5599_vm0, %v3897_v42, 128 }
 0x30d   :  { %v863_v53 = vsel %vm862_vm8, %v859_v14, %v834_v7  ;;  %v865_v55 = vsel %vm864_vm6, %v861_v40, %v836_v11  ;;  %vm5600_vm5 = vcmp.le.f32.partialorder %v3818_v1, %v3969_v26  ;;  %vm885_vm6 = vcmp.lt.s32.totalorder %v815_v43, %v819_v60 }
 0x30e   :  { %vm866_vm11 = vcmp.lt.s32.totalorder %v863_v53, %v838_v29  ;;  %vm868_vm12 = vcmp.lt.s32.totalorder %v865_v55, %v840_v51  ;;  %v823_v54 = vsel %vm5600_vm5, %v3900_v45, 128  ;;  %vm887_vm8 = vcmp.lt.s32.totalorder %v817_v48, %v821_v4 }
 0x30f   :  { %v867_v39 = vsel %vm866_vm11, %v863_v53, %v838_v29  ;;  %v869_v3 = vsel %vm868_vm12, %v865_v55, %v840_v51  ;;  %vm5601_vm11 = vcmp.le.f32.partialorder %v3824_v5, %v3969_v26  ;;  %v886_v19 = vsel %vm885_vm6, %v815_v43, %v819_v60 }
 0x310   :  { %vm870_vm14 = vcmp.lt.s32.totalorder %v867_v39, %v842_v59  ;;  %vm872_vm15 = vcmp.lt.s32.totalorder %v869_v3, %v844_v63  ;;  %v825_v57 = vsel %vm5601_vm11, %v3903_v47, 128  ;;  %v888_v61 = vsel %vm887_vm8, %v817_v48, %v821_v4 }
 0x311   :  { %v871_v7 = vsel %vm870_vm14, %v867_v39, %v842_v59  ;;  %v873_v52 = vsel %vm872_vm15, %v869_v3, %v844_v63  ;;  %vm5602_vm12 = vcmp.le.f32.partialorder %v3830_v9, %v3969_v26  ;;  %vm889_vm14 = vcmp.lt.s32.totalorder %v886_v19, %v823_v54 }
 0x312   :  { %vm874_vm4 = vcmp.lt.s32.totalorder %v871_v7, %v873_v52  ;;  %v827_v23 = vsel %vm5602_vm12, %v3906_v50, 128  ;;  %vm891_vm15 = vcmp.lt.s32.totalorder %v888_v61, %v825_v57  ;;  %vm5603_vm0 = vcmp.le.f32.partialorder %v3836_v13, %v3969_v26 }
 0x313   :  { %v875_v11 = vsel %vm874_vm4, %v871_v7, %v873_v52  ;;  %v829_v1 = vsel %vm5603_vm0, %v3909_v58, 128  ;;  %v890_v30 = vsel %vm889_vm14, %v886_v19, %v823_v54  ;;  %v892_v44 = vsel %vm891_vm15, %v888_v61, %v825_v57 }
 0x314   :  { %v876_v15 = vrot.slane %v875_v11, 4  ;;  %v831_v5 = vsel %vm799_vm7, %v3912_v62, 128  ;;  %vm893_vm4 = vcmp.lt.s32.totalorder %v890_v30, %v827_v23  ;;  %vm895_vm5 = vcmp.lt.s32.totalorder %v892_v44, %v829_v1 }
 0x315   :  { %vm5604_vm6 = vcmp.le.f32.partialorder %v3848_v21, %v3969_v26  ;;  %v894_v40 = vsel %vm893_vm4, %v890_v30, %v827_v23  ;;  %v896_v29 = vsel %vm895_vm5, %v892_v44, %v829_v1  ;;  %vm5605_vm8 = vcmp.le.f32.partialorder %v3854_v28, %v3969_v26 }
 0x316   :  { %vm877_vm1 = vcmp.lt.s32.totalorder %v875_v11, %v876_v15  ;;  %v833_v14 = vsel %vm5604_vm6, %v3915_v2, 128  ;;  %v835_v13 = vsel %vm5605_vm8, %v3920_v6, 128  ;;  %vm897_vm11 = vcmp.lt.s32.totalorder %v894_v40, %v831_v5 }
 0x317   :  { %v878_v8 = vsel %vm877_vm1, %v875_v11, %v876_v15  ;;  %vm899_vm12 = vcmp.lt.s32.totalorder %v896_v29, %v833_v14  ;;  %v837_v17 = vsel %vm805_vm9, %v3923_v10, 128  ;;  %v898_v51 = vsel %vm897_vm11, %v894_v40, %v831_v5 }
 0x318   :  { %v879_v9 = vrot.slane %v878_v8, 2  ;;  %v900_v53 = vsel %vm899_vm12, %v896_v29, %v833_v14  ;;  %vm901_vm7 = vcmp.lt.s32.totalorder %v898_v51, %v835_v13  ;;  %v839_v21 = vsel %vm807_vm13, %v3926_v12, 128  ;;  %v3289_v14 = vld [vmem:[%s5542_s4] sm:$0xff]   ;;  %v3290_v29 = vld [vmem:[%s5542_s4 + $0x8] sm:$0xff]  }
 0x319   :  { %vm903_vm15 = vcmp.lt.s32.totalorder %v900_v53, %v837_v17  ;;  %v841_v28 = vsel %vm809_vm10, %v3961_v16, 128  ;;  %v902_v55 = vsel %vm901_vm7, %v898_v51, %v835_v13  ;;  %v843_v34 = vsel %vm811_vm2, %v3964_v20, 128  ;;  %v3291_v13 = vld [vmem:[%s5542_s4 + $0x10] ss:$0 sps:$4 sm:$0x11]  }
 0x31a   :  { %vm880_vm14 = vcmp.lt.s32.totalorder %v878_v8, %v879_v9  ;;  %v904_v59 = vsel %vm903_vm15, %v900_v53, %v837_v17  ;;  %vm905_vm1 = vcmp.lt.s32.totalorder %v902_v55, %v839_v21  ;;  %v845_v41 = vsel %vm813_vm3, %v3967_v22, 128 }
 0x31b   :  { %v881_v63 = vsel %vm880_vm14, %v878_v8, %v879_v9  ;;  %vm907_vm0 = vcmp.lt.s32.totalorder %v904_v59, %v841_v28  ;;  %v906_v39 = vsel %vm905_vm1, %v902_v55, %v839_v21  ;;  %v3411_v26 = vmov 1966171168  }
 0x31c   :  { %v908_v3 = vsel %vm907_vm0, %v904_v59, %v841_v28  ;;  %vm909_vm13 = vcmp.lt.s32.totalorder %v906_v39, %v843_v34  ;;  %v882_v46 = vrot.slane %v881_v63, 1  ;;  %v930_v54 = vunpack.c.l.s4 %v3411_v26  ;;  %v3292_v26 = vld [vmem:[%s5541_s3 + $0x40] sm:$0xff]  }
 0x31d   :  { %vm911_vm9 = vcmp.lt.s32.totalorder %v908_v3, %v845_v41  ;;  %v910_v43 = vsel %vm909_vm13, %v906_v39, %v843_v34  ;;  %v5548_v23 = vmov 1.0|1.0   ;;  %v5607_v8 = vlaneseq }
 0x31e   :  { %v912_v48 = vsel %vm911_vm9, %v908_v3, %v845_v41  ;;  %vm883_vm4 = vcmp.lt.s32.totalorder %v881_v63, %v882_v46  ;;  %v931_v19 = vunpack.c.0.s8 %v930_v54  ;;  %v5608_v5 = vmov 0  ;;  %v3293_v54 = vld [vmem:[%s5541_s3 + $0x48] sm:$0xff]  }
 0x31f   :  { %vm913_vm10 = vcmp.lt.s32.totalorder %v910_v43, %v912_v48  ;;  %v884_v56 = vsel %vm883_vm4, %v881_v63, %v882_v46  ;;  %v5611_v40 = vmov 0  }
 0x320   :  { %v914_v60 = vsel %vm913_vm10, %v910_v43, %v912_v48  ;;  %vm924_vm6 = vcmp.lt.s32.totalorder %v884_v56, 127  ;;  %v4149_v1 = vsub.s32 %v931_v19, %v3888_v18  ;;  %v3296_v19 = vld [vmem:[%s5541_s3 + $0x60] sm:$0xff]  }
 0x321   :  { %v915_v4 = vrot.slane %v914_v60, 4  ;;  %v4131_v15 = vsel %vm924_vm6, %v884_v56, 127 }
 0x322   :  { %vm948_vm11 = vcmp.eq.s32.totalorder %v3888_v18, %v4131_v15  ;;  %vm950_vm12 = vcmp.eq.s32.totalorder %v3891_v31, %v4131_v15  ;;  %5606 = vst [vmem:[#allocation9_spill] sm:$0xff] %v4149_v1  ;;  %vm952_vm10 = vcmp.eq.s32.totalorder %v3894_v38, %v4131_v15  ;;  %vm954_vm4 = vcmp.eq.s32.totalorder %v3897_v42, %v4131_v15 }
 0x323   :  { %vm916_vm5 = vcmp.lt.s32.totalorder %v914_v60, %v915_v4  ;;  %vm2879_vm13 = vmpackc.low %vm950_vm12, %vm948_vm11  ;;  %vm958_vm11 = vcmp.eq.s32.totalorder %v3903_v47, %v4131_v15  ;;  %vm4170_vm12 = vcmp.lt.s32.totalorder %v5607_v8, 256 }
 0x324   :  { %v917_v7 = vsel %vm916_vm5, %v914_v60, %v915_v4  ;;  %vm2883_vm6 = vmpackc.low %vm954_vm4, %vm952_vm10  ;;  %v5609_v5 = vsel %vm4170_vm12, 4294967295, %v5608_v5 }
 0x325   :  { %v918_v52 = vrot.slane %v917_v7, 2  ;;  %5610 = vst [vmem:[#allocation10_spill] sm:$0xff] %v5609_v5 }
 0x327   :  { %vm919_vm2 = vcmp.lt.s32.totalorder %v917_v7, %v918_v52 }
 0x328   :  { %v920_v11 = vsel %vm919_vm2, %v917_v7, %v918_v52 }
 0x329   :  { %v921_v0 = vrot.slane %v920_v11, 1 }
 0x32b   :  { %vm922_vm3 = vcmp.lt.s32.totalorder %v920_v11, %v921_v0 }
 0x32c   :  { %v923_v57 = vsel %vm922_vm3, %v920_v11, %v921_v0 }
 0x32d   :  { %vm926_vm8 = vcmp.lt.s32.totalorder %v923_v57, 127 }
 0x32e   :  { %v4133_v61 = vsel %vm926_vm8, %v923_v57, 127  ;;  %vm956_vm8 = vcmp.eq.s32.totalorder %v3900_v45, %v4131_v15  ;;  %v3295_v57 = vld [vmem:[%s5541_s3 + $0x58] sm:$0xff]  }
 0x32f   :  { %vm949_vm14 = vcmp.eq.s32.totalorder %v3888_v18, %v4133_v61  ;;  %vm951_vm7 = vcmp.eq.s32.totalorder %v3891_v31, %v4133_v61  ;;  %vm953_vm15 = vcmp.eq.s32.totalorder %v3894_v38, %v4133_v61  ;;  %vm955_vm1 = vcmp.eq.s32.totalorder %v3897_v42, %v4133_v61 }
 0x330   :  { %vm2877_vm0 = vmpackc.low %vm951_vm7, %vm949_vm14  ;;  %vm957_vm5 = vcmp.eq.s32.totalorder %v3900_v45, %v4133_v61  ;;  %vm959_vm2 = vcmp.eq.s32.totalorder %v3903_v47, %v4133_v61  ;;  %v928_v30 = vcombine.low %v4131_v15, %v4133_v61  ;;  %vm961_vm14 = vcmp.eq.s32.totalorder %v3906_v50, %v4133_v61 }
 0x331   :  { %2878 = vmatprep.subr.msk.bf16.mxu1 %vm2877_vm0, %v5548_v23  ;;  %vm2881_vm9 = vmpackc.low %vm955_vm1, %vm953_vm15  ;;  %vm963_vm7 = vcmp.eq.s32.totalorder %v3909_v58, %v4133_v61  ;;  %vm960_vm0 = vcmp.eq.s32.totalorder %v3906_v50, %v4131_v15  ;;  %vm967_vm10 = vcmp.eq.s32.totalorder %v3915_v2, %v4133_v61 }
 0x332   :  { %2880 = vmatpush1.bf16.msk.msra.mxu1 %vm2879_vm13, %v5548_v23  ;;  %v935_v44 = vrot.slane %v928_v30, %v4149_v1  ;;  %vm2885_vm3 = vmpackc.low %vm959_vm2, %vm957_vm5  ;;  %vm962_vm13 = vcmp.eq.s32.totalorder %v3909_v58, %v4131_v15  ;;  %vm964_vm2 = vcmp.eq.s32.totalorder %v3912_v62, %v4131_v15  ;;  %v3298_v30 = vld [vmem:[%s5541_s3 + $0x70] sm:$0xff]  }
 0x333   :  { %2882 = vmatprep.subr.msk.bf16.mxu1 %vm2881_vm9, %v5548_v23  ;;  %vm2887_vm15 = vmpackc.low %vm958_vm11, %vm956_vm8  ;;  %vm965_vm9 = vcmp.eq.s32.totalorder %v3912_v62, %v4133_v61  ;;  %vm971_vm8 = vcmp.eq.s32.totalorder %v3923_v10, %v4133_v61 }
 0x334   :  { %v942_v9 = vrot.slane %v935_v44, %v4149_v1  ;;  %vm2889_vm1 = vmpackc.low %vm963_vm7, %vm961_vm14  ;;  %vm968_vm7 = vcmp.eq.s32.totalorder %v3920_v6, %v4131_v15  ;;  %v3299_v44 = vld [vmem:[%s5541_s3 + $0x78] sm:$0xff]  }
 0x335   :  { %vm2891_vm4 = vmpackc.low %vm962_vm13, %vm960_vm0  ;;  %vm975_vm0 = vcmp.eq.s32.totalorder %v3961_v16, %v4133_v61 }
 0x336   :  { %2884 = vmatpush1.bf16.msk.msra.mxu1 %vm2883_vm6, %v5548_v23  ;;  %947 = vst.msk [vmem:[#allocation2] ss:$4 sm:$0x3] %vm4170_vm12, %v942_v9  ;;  %vm2893_vm5 = vmpackc.low %vm967_vm10, %vm965_vm9  ;;  %vm966_vm6 = vcmp.eq.s32.totalorder %v3915_v2, %v4131_v15  ;;  %vm972_vm10 = vcmp.eq.s32.totalorder %v3926_v12, %v4131_v15 }
 0x337   :  { %2886 = vmatprep.subr.msk.bf16.mxu1 %vm2885_vm3, %v5548_v23  ;;  %vm969_vm3 = vcmp.eq.s32.totalorder %v3920_v6, %v4133_v61  ;;  %vm2895_vm11 = vmpackc.low %vm966_vm6, %vm964_vm2  ;;  %vm979_vm2 = vcmp.eq.s32.totalorder %v3967_v22, %v4133_v61 }
 0x338   :  { %vm2897_vm14 = vmpackc.low %vm971_vm8, %vm969_vm3  ;;  %vm976_vm8 = vcmp.eq.s32.totalorder %v3964_v20, %v4131_v15 }
 0x33a   :  { %2888 = vmatpush1.bf16.msk.msra.mxu1 %vm2887_vm15, %v5548_v23  ;;  %vm970_vm15 = vcmp.eq.s32.totalorder %v3923_v10, %v4131_v15 }
 0x33b   :  { %2890 = vmatprep.subr.msk.bf16.mxu1 %vm2889_vm1, %v5548_v23  ;;  %vm973_vm1 = vcmp.eq.s32.totalorder %v3926_v12, %v4133_v61  ;;  %vm2899_vm13 = vmpackc.low %vm970_vm15, %vm968_vm7  ;;  %vm5622_vm7 = vcmask 269312  }
 0x33c   :  { %vm2901_vm9 = vmpackc.low %vm975_vm0, %vm973_vm1 }
 0x33d   :  { %vm5623_vm15 = vmmov %vm5622_vm7 }
 0x33e   :  { %2892 = vmatpush1.bf16.msk.msra.mxu1 %vm2891_vm4, %v5548_v23  ;;  %vm974_vm4 = vcmp.eq.s32.totalorder %v3961_v16, %v4131_v15  ;;  %vm5624_vm1 = vmmov %vm5622_vm7 }
 0x33f   :  { %2894 = vmatprep.subr.msk.bf16.mxu1 %vm2893_vm5, %v5548_v23  ;;  %vm977_vm5 = vcmp.eq.s32.totalorder %v3964_v20, %v4133_v61  ;;  %vm2903_vm6 = vmpackc.low %vm974_vm4, %vm972_vm10  ;;  %v3297_v61 = vld [vmem:[%s5541_s3 + $0x68] sm:$0xff]  }
 0x340   :  { %vm2905_vm3 = vmpackc.low %vm979_vm2, %vm977_vm5 }
 0x341   :  { %vm5625_vm0 = vmmov %vm5624_vm1 }
 0x342   :  { %2896 = vmatpush1.bf16.msk.msra.mxu1 %vm2895_vm11, %v5548_v23  ;;  %vm978_vm11 = vcmp.eq.s32.totalorder %v3967_v22, %v4131_v15  ;;  %v3294_v15 = vld [vmem:[%s5541_s3 + $0x50] sm:$0xff]   ;;  %vm5628_vm10 = vmmov %vm5625_vm0 }
 0x343   :  { %2898 = vmatprep.subr.msk.bf16.mxu1 %vm2897_vm14, %v5548_v23  ;;  %vm2907_vm14 = vmpackc.low %vm978_vm11, %vm976_vm8 }
 0x344   :  { %vm5629_vm4 = vmmov %vm5625_vm0 }
 0x346   :  { %2900 = vmatpush1.bf16.msk.msra.mxu1 %vm2899_vm13, %v5548_v23  ;;  %vm5626_vm13 = vmmov %vm5625_vm0 }
 0x347   :  { %2902 = vmatprep.subr.msk.bf16.mxu1 %vm2901_vm9, %v5548_v23  ;;  %vm5627_vm9 = vmmov %vm5625_vm0 }
 0x34a   :  { %2904 = vmatpush1.bf16.msk.msra.mxu1 %vm2903_vm6, %v5548_v23 }
 0x34b   :  { %2906 = vmatprep.subr.msk.bf16.mxu1 %vm2905_vm3, %v5548_v23 }
 0x34e   :  { %2908 = vmatpush1.bf16.msk.msra.mxu1 %vm2907_vm14, %v5548_v23 }
 0x351   :  { %1114 = vmatmul.mubr.bf16.vlgmr.msra.gmra.mrb[32].mxu1 %v3289_v14 }
 0x352   :  { %1123 = vmatprep.mubr.bf16.mxu1 %v5611_v40 }
 0x359   :  { %1124 = vmatmul.mubr.bf16.gmra.mrb[36].mxu1 %v3290_v29 }
 0x35a   :  { %1133 = vmatprep.mubr.bf16.mxu1 %v5611_v40 }
 0x361   :  { %1134 = vmatmul.mubr.bf16.gmra.mrb[40].mxu1 %v3291_v13 }
 0x362   :  { %1277 = vmatprep.mubr.bf16.mxu1 %v5611_v40 }
 0x424   :  { %v1115_v17 = vpop.f32.mrb[32].mxu1 }
 0x425   :  { %v1117_v51 = vpop.f32.mrb[33].mxu1  ;;  %v4251_v63 = vadd.f32 %v1115_v17, %v3723_v24 }
 0x426   :  { %v1119_v53 = vpop.f32.mrb[34].mxu1  ;;  %v4245_v55 = vadd.f32 %v1117_v51, %v3727_v27 }
 0x427   :  { %v4242_v21 = vadd.f32 %v1119_v53, %v3725_v25  ;;  %v1121_v28 = vpop.f32.mrb[35].mxu1  ;;  %5615 = vst [vmem:[#allocation14_spill] sm:$0xff] %v4251_v63 }
 0x428   :  { %5613 = vst [vmem:[#allocation12_spill] sm:$0xff] %v4245_v55  ;;  %v4248_v59 = vadd.f32 %v1121_v28, %v3729_v49 }
 0x429   :  { %5612 = vst [vmem:[#allocation11_spill] sm:$0xff] %v4242_v21  ;;  %v1169_v41 = vpack.c.bf16 %v4242_v21, %v4251_v63 }
 0x42a   :  { %5614 = vst [vmem:[#allocation13_spill] sm:$0xff] %v4248_v59  ;;  %v1170_v34 = vpack.c.bf16 %v4248_v59, %v4245_v55 }
 0x42c   :  { %v1125_v39 = vpop.f32.mrb[36].mxu1  ;;  %1245 = vmatprep.subr.bf16.mxu1 %v1170_v34 }
 0x42d   :  { %v1127_v25 = vpop.f32.mrb[37].mxu1  ;;  %1246 = vmatpush1.bf16.msra.mxu1 %v1169_v41  ;;  %v4267_v43 = vadd.f32 %v1125_v39, %v3735_v32 }
 0x42e   :  { %v1129_v3 = vpop.f32.mrb[38].mxu1  ;;  %v4261_v49 = vadd.f32 %v1127_v25, %v3742_v36 }
 0x42f   :  { %v4258_v27 = vadd.f32 %v1129_v3, %v3737_v33  ;;  %v1131_v46 = vpop.f32.mrb[39].mxu1  ;;  %5619 = vst [vmem:[#allocation18_spill] sm:$0xff] %v4267_v43 }
 0x430   :  { %5617 = vst [vmem:[#allocation16_spill] sm:$0xff] %v4261_v49  ;;  %v4264_v24 = vadd.f32 %v1131_v46, %v3744_v37 }
 0x431   :  { %5616 = vst [vmem:[#allocation15_spill] sm:$0xff] %v4258_v27  ;;  %v1171_v60 = vpack.c.bf16 %v4258_v27, %v4267_v43 }
 0x432   :  { %5618 = vst [vmem:[#allocation17_spill] sm:$0xff] %v4264_v24  ;;  %v1172_v48 = vpack.c.bf16 %v4264_v24, %v4261_v49 }
 0x434   :  { %v1135_v4 = vpop.f32.mrb[40].mxu1  ;;  %1247 = vmatprep.subr.bf16.mxu1 %v1172_v48 }
 0x435   :  { %v4273_v33 = vadd.f32 1.0, %v1135_v4  ;;  %v1137_v7 = vpop.f32.mrb[41].mxu1  ;;  %1248 = vmatpush1.bf16.msra.mxu1 %v1171_v60 }
 0x436   :  { %v4275_v36 = vadd.f32 1.0, %v1137_v7  ;;  %v1139_v56 = vpop.f32.mrb[42].mxu1 }
 0x437   :  { %5620 = vst [vmem:[#allocation19_spill] sm:$0xff] %v4273_v33  ;;  %v1173_v37 = vpack.c.bf16 %v4273_v33, %v4273_v33  ;;  %v1140_v32 = vpop.f32.mrb[43].mxu1 }
 0x438   :  { %5621 = vst [vmem:[#allocation20_spill] sm:$0xff] %v4275_v36  ;;  %v1174_v52 = vpack.c.bf16 %v4275_v36, %v4275_v36 }
 0x439   :  { %v1240_v0 = vand.u32 %v1173_v37, %v3740_v35 }
 0x43a   :  { %v1243_v11 = vand.u32 %v1174_v52, %v3740_v35 }
 0x43c   :  { %1249 = vmatprep.subr.bf16.mxu1 %v1243_v11 }
 0x43d   :  { %1250 = vmatpush1.bf16.msra.mxu1 %v1240_v0 }
 0x440   :  { %2933 = vmatmul.mubr.msk.bf16.vlgmr.msra.gmra.mrb[44].mxu1 %vm5622_vm7, %v3292_v26 }
 0x441   :  { %1287 = vmatprep.mubr.bf16.mxu1 %v5611_v40 }
 0x448   :  { %2934 = vmatmul.mubr.msk.bf16.gmra.mrb[48].mxu1 %vm5623_vm15, %v3293_v54 }
 0x449   :  { %1297 = vmatprep.mubr.bf16.mxu1 %v5611_v40 }
 0x450   :  { %2935 = vmatmul.mubr.msk.bf16.gmra.mrb[52].mxu1 %vm5624_vm1, %v3294_v15 }
 0x451   :  { %1307 = vmatprep.mubr.bf16.mxu1 %v5611_v40 }
 0x458   :  { %2936 = vmatmul.mubr.msk.bf16.gmra.mrb[56].mxu1 %vm5625_vm0, %v3295_v57 }
 0x459   :  { %1317 = vmatprep.mubr.bf16.mxu1 %v5611_v40 }
 0x460   :  { %2937 = vmatmul.mubr.msk.bf16.gmra.mrb[60].mxu1 %vm5626_vm13, %v3296_v19 }
 0x461   :  { %1327 = vmatprep.mubr.bf16.mxu1 %v5611_v40 }
 0x468   :  { %2938 = vmatmul.mubr.msk.bf16.gmra.mrb[64].mxu1 %vm5627_vm9, %v3297_v61 }
 0x469   :  { %1337 = vmatprep.mubr.bf16.mxu1 %v5611_v40 }
 0x470   :  { %2939 = vmatmul.mubr.msk.bf16.gmra.mrb[68].mxu1 %vm5628_vm10, %v3298_v30 }
 0x471   :  { %1347 = vmatprep.mubr.bf16.mxu1 %v5611_v40 }
 0x478   :  { %2940 = vmatmul.mubr.msk.bf16.gmra.mrb[72].mxu1 %vm5629_vm4, %v3299_v44 }
 0x479   :  { %1729 = vmatprep.mubr.bf16.mxu1 %v5611_v40 }
 0x513   :  { %v4323_v8 = vpop.f32.mrb[44].mxu1 }
 0x514   :  { %v4325_v9 = vpop.f32.mrb[45].mxu1 }
 0x515   :  { %v4327_v14 = vpop.f32.mrb[46].mxu1 }
 0x516   :  { %v4329_v29 = vpop.f32.mrb[47].mxu1 }
 0x51b   :  { %v4331_v13 = vpop.f32.mrb[48].mxu1 }
 0x51c   :  { %v1358_v17 = vmin.f32 %v4323_v8, %v4331_v13  ;;  %v4335_v51 = vpop.f32.mrb[49].mxu1 }
 0x51d   :  { %v1379_v53 = vmin.f32 %v4325_v9, %v4335_v51  ;;  %v4339_v28 = vpop.f32.mrb[50].mxu1 }
 0x51e   :  { %v1359_v34 = vmin.f32 %v4327_v14, %v4339_v28  ;;  %v4343_v41 = vpop.f32.mrb[51].mxu1 }
 0x51f   :  { %v1380_v39 = vmin.f32 %v4329_v29, %v4343_v41 }
 0x523   :  { %v4347_v25 = vpop.f32.mrb[52].mxu1 }
 0x524   :  { %v1360_v3 = vmin.f32 %v1358_v17, %v4347_v25  ;;  %v4350_v46 = vpop.f32.mrb[53].mxu1 }
 0x525   :  { %v1381_v48 = vmin.f32 %v1379_v53, %v4350_v46  ;;  %v4353_v60 = vpop.f32.mrb[54].mxu1 }
 0x526   :  { %v1361_v4 = vmin.f32 %v1359_v34, %v4353_v60  ;;  %v4356_v7 = vpop.f32.mrb[55].mxu1 }
 0x527   :  { %v1382_v56 = vmin.f32 %v1380_v39, %v4356_v7 }
 0x52b   :  { %v4359_v37 = vpop.f32.mrb[56].mxu1 }
 0x52c   :  { %v1362_v32 = vmin.f32 %v1360_v3, %v4359_v37  ;;  %v4362_v52 = vpop.f32.mrb[57].mxu1 }
 0x52d   :  { %v1383_v11 = vmin.f32 %v1381_v48, %v4362_v52  ;;  %v4365_v0 = vpop.f32.mrb[58].mxu1 }
 0x52e   :  { %v1363_v26 = vmin.f32 %v1361_v4, %v4365_v0  ;;  %v4368_v54 = vpop.f32.mrb[59].mxu1 }
 0x52f   :  { %v1384_v15 = vmin.f32 %v1382_v56, %v4368_v54 }
 0x533   :  { %v4371_v57 = vpop.f32.mrb[60].mxu1 }
 0x534   :  { %v1364_v19 = vmin.f32 %v1362_v32, %v4371_v57  ;;  %v4374_v61 = vpop.f32.mrb[61].mxu1 }
 0x535   :  { %v1385_v30 = vmin.f32 %v1383_v11, %v4374_v61  ;;  %v4377_v44 = vpop.f32.mrb[62].mxu1 }
 0x536   :  { %v1365_v17 = vmin.f32 %v1363_v26, %v4377_v44  ;;  %v4380_v53 = vpop.f32.mrb[63].mxu1 }
 0x537   :  { %v1386_v34 = vmin.f32 %v1384_v15, %v4380_v53 }
 0x53b   :  { %v4383_v39 = vpop.f32.mrb[64].mxu1 }
 0x53c   :  { %v1366_v3 = vmin.f32 %v1364_v19, %v4383_v39  ;;  %v4386_v48 = vpop.f32.mrb[65].mxu1 }
 0x53d   :  { %v1387_v4 = vmin.f32 %v1385_v30, %v4386_v48  ;;  %v1333_v56 = vpop.f32.mrb[66].mxu1 }
 0x53e   :  { %v1367_v32 = vmin.f32 %v1365_v17, %v1333_v56  ;;  %v4389_v23 = vpop.f32.mrb[67].mxu1 }
 0x53f   :  { %v1388_v11 = vmin.f32 %v1386_v34, %v4389_v23 }
 0x543   :  { %v4392_v35 = vpop.f32.mrb[68].mxu1 }
 0x544   :  { %v1368_v26 = vmin.f32 %v1366_v3, %v4392_v35  ;;  %v4395_v36 = vpop.f32.mrb[69].mxu1 }
 0x545   :  { %v1389_v15 = vmin.f32 %v1387_v4, %v4395_v36  ;;  %v4398_v33 = vpop.f32.mrb[70].mxu1 }
 0x546   :  { %v1369_v19 = vmin.f32 %v1367_v32, %v4398_v33  ;;  %v4401_v43 = vpop.f32.mrb[71].mxu1 }
 0x547   :  { %v1390_v30 = vmin.f32 %v1388_v11, %v4401_v43 }
 0x54b   :  { %v4404_v17 = vpop.f32.mrb[72].mxu1 }
 0x54c   :  { %v1370_v34 = vmin.f32 %v1368_v26, %v4404_v17  ;;  %v4407_v24 = vpop.f32.mrb[73].mxu1 }
 0x54d   :  { %v1391_v3 = vmin.f32 %v1389_v15, %v4407_v24  ;;  %v4410_v49 = vpop.f32.mrb[74].mxu1 }
 0x54e   :  { %v1371_v4 = vmin.f32 %v1369_v19, %v4410_v49  ;;  %v4413_v27 = vpop.f32.mrb[75].mxu1  ;;  %v5631_v19 = vld [vmem:[#allocation6_spill] sm:$0xff] }
 0x54f   :  { %v1392_v32 = vmin.f32 %v1390_v30, %v4413_v27 }
 0x550   :  { %v1372_v63 = vmin.f32 %v1370_v34, %v1371_v4  ;;  %v5632_v4 = vld [vmem:[#allocation7_spill] sm:$0xff] }
 0x551   :  { %v1393_v59 = vmin.f32 %v1391_v3, %v1392_v32 }
 0x552   :  { %v1373_v55 = vrot.slane %v1372_v63, 4 }
 0x553   :  { %v1394_v11 = vrot.slane %v1393_v59, 4 }
 0x554   :  { %v1374_v21 = vmin.f32 %v1372_v63, %v1373_v55 }
 0x555   :  { %v1395_v40 = vmin.f32 %v1393_v59, %v1394_v11  ;;  %v5633_v11 = vld [vmem:[#allocation8_spill] sm:$0xff] }
 0x556   :  { %v1375_v5 = vrot.slane %v1374_v21, 2 }
 0x557   :  { %v1396_v26 = vrot.slane %v1395_v40, 2 }
 0x558   :  { %v1376_v1 = vmin.f32 %v1374_v21, %v1375_v5 }
 0x559   :  { %v1397_v22 = vmin.f32 %v1395_v40, %v1396_v26 }
 0x55a   :  { %v1377_v20 = vrot.slane %v1376_v1, 1 }
 0x55b   :  { %v1398_v16 = vrot.slane %v1397_v22, 1 }
 0x55c   :  { %v4416_v15 = vmin.f32 %v1376_v1, %v1377_v20 }
 0x55d   :  { %v4449_v20 = vmin.f32 %v1397_v22, %v1398_v16 }
 0x55e   :  { %vm1400_vm5 = vcmp.le.f32.partialorder %v4323_v8, %v4416_v15  ;;  %vm1402_vm2 = vcmp.le.f32.partialorder %v4327_v14, %v4416_v15  ;;  %vm1404_vm6 = vcmp.le.f32.partialorder %v4331_v13, %v4416_v15  ;;  %vm1406_vm3 = vcmp.le.f32.partialorder %v4339_v28, %v4416_v15 }
 0x55f   :  { %vm1408_vm8 = vcmp.le.f32.partialorder %v4347_v25, %v4416_v15  ;;  %vm1410_vm11 = vcmp.le.f32.partialorder %v4353_v60, %v4416_v15  ;;  %vm1412_vm14 = vcmp.le.f32.partialorder %v4359_v37, %v4416_v15  ;;  %vm1414_vm7 = vcmp.le.f32.partialorder %v4365_v0, %v4416_v15 }
 0x560   :  { %vm1418_vm1 = vcmp.le.f32.partialorder %v4377_v44, %v4416_v15  ;;  %vm1420_vm0 = vcmp.le.f32.partialorder %v4383_v39, %v4416_v15  ;;  %vm1422_vm13 = vcmp.le.f32.partialorder %v1333_v56, %v4416_v15  ;;  %vm1424_vm9 = vcmp.le.f32.partialorder %v4392_v35, %v4416_v15 }
 0x561   :  { %vm1426_vm10 = vcmp.le.f32.partialorder %v4398_v33, %v4416_v15  ;;  %vm1428_vm4 = vcmp.le.f32.partialorder %v4404_v17, %v4416_v15  ;;  %vm1430_vm15 = vcmp.le.f32.partialorder %v4410_v49, %v4416_v15  ;;  %v1432_v1 = vsel %vm1400_vm5, %v3888_v18, 128 }
 0x562   :  { %v1434_v5 = vsel %vm1402_vm2, %v3891_v31, 128  ;;  %v1436_v40 = vsel %vm1404_vm6, %v3894_v38, 128  ;;  %v1438_v16 = vsel %vm1406_vm3, %v3897_v42, 128  ;;  %v1440_v22 = vsel %vm1408_vm8, %v3900_v45, 128 }
 0x563   :  { %v1442_v21 = vsel %vm1410_vm11, %v3903_v47, 128  ;;  %v1444_v55 = vsel %vm1412_vm14, %v3906_v50, 128  ;;  %v1446_v59 = vsel %vm1414_vm7, %v3909_v58, 128  ;;  %vm5630_vm5 = vcmp.le.f32.partialorder %v4371_v57, %v4416_v15 }
 0x564   :  { %v1448_v63 = vsel %vm5630_vm5, %v3912_v62, 128  ;;  %v1450_v8 = vsel %vm1418_vm1, %v3915_v2, 128  ;;  %v1452_v14 = vsel %vm1420_vm0, %v3920_v6, 128  ;;  %v1454_v13 = vsel %vm1422_vm13, %v3923_v10, 128 }
 0x565   :  { %vm1464_vm2 = vcmp.lt.s32.totalorder %v1432_v1, %v1436_v40  ;;  %vm1466_vm6 = vcmp.lt.s32.totalorder %v1434_v5, %v1438_v16  ;;  %vm1401_vm3 = vcmp.le.f32.partialorder %v4325_v9, %v4449_v20  ;;  %vm1417_vm14 = vcmp.le.f32.partialorder %v4374_v61, %v4449_v20 }
 0x566   :  { %v1465_v28 = vsel %vm1464_vm2, %v1432_v1, %v1436_v40  ;;  %v1467_v25 = vsel %vm1466_vm6, %v1434_v5, %v1438_v16  ;;  %vm1425_vm2 = vcmp.le.f32.partialorder %v4395_v36, %v4449_v20  ;;  %vm1427_vm0 = vcmp.le.f32.partialorder %v4401_v43, %v4449_v20 }
 0x567   :  { %vm1468_vm7 = vcmp.lt.s32.totalorder %v1465_v28, %v1440_v22  ;;  %vm1470_vm1 = vcmp.lt.s32.totalorder %v1467_v25, %v1442_v21  ;;  %v1456_v56 = vsel %vm1424_vm9, %v3926_v12, 128  ;;  %v1458_v30 = vsel %vm1426_vm10, %v5631_v19, 128 }
 0x568   :  { %v1469_v60 = vsel %vm1468_vm7, %v1465_v28, %v1440_v22  ;;  %v1471_v37 = vsel %vm1470_vm1, %v1467_v25, %v1442_v21  ;;  %vm1423_vm1 = vcmp.le.f32.partialorder %v4389_v23, %v4449_v20  ;;  %v1460_v32 = vsel %vm1428_vm4, %v5632_v4, 128 }
 0x569   :  { %vm1472_vm6 = vcmp.lt.s32.totalorder %v1469_v60, %v1444_v55  ;;  %vm1474_vm11 = vcmp.lt.s32.totalorder %v1471_v37, %v1446_v59  ;;  %v1462_v26 = vsel %vm1430_vm15, %v5633_v11, 128  ;;  %v1433_v33 = vsel %vm1401_vm3, %v3888_v18, 128 }
 0x56a   :  { %v1473_v0 = vsel %vm1472_vm6, %v1469_v60, %v1444_v55  ;;  %v1475_v57 = vsel %vm1474_vm11, %v1471_v37, %v1446_v59  ;;  %vm1429_vm6 = vcmp.le.f32.partialorder %v4407_v24, %v4449_v20  ;;  %vm1431_vm11 = vcmp.le.f32.partialorder %v4413_v27, %v4449_v20 }
 0x56b   :  { %vm1476_vm5 = vcmp.lt.s32.totalorder %v1473_v0, %v1448_v63  ;;  %vm1478_vm13 = vcmp.lt.s32.totalorder %v1475_v57, %v1450_v8  ;;  %vm5634_vm9 = vcmp.le.f32.partialorder %v4329_v29, %v4449_v20  ;;  %vm5635_vm15 = vcmp.le.f32.partialorder %v4335_v51, %v4449_v20 }
 0x56c   :  { %v1477_v44 = vsel %vm1476_vm5, %v1473_v0, %v1448_v63  ;;  %v1479_v39 = vsel %vm1478_vm13, %v1475_v57, %v1450_v8  ;;  %v1435_v17 = vsel %vm5634_vm9, %v3891_v31, 128  ;;  %v1437_v49 = vsel %vm5635_vm15, %v3894_v38, 128 }
 0x56d   :  { %vm1480_vm7 = vcmp.lt.s32.totalorder %v1477_v44, %v1452_v14  ;;  %vm1482_vm8 = vcmp.lt.s32.totalorder %v1479_v39, %v1454_v13  ;;  %vm5638_vm9 = vcmp.le.f32.partialorder %v4356_v7, %v4449_v20  ;;  %v1449_v7 = vsel %vm1417_vm14, %v3912_v62, 128 }
 0x56e   :  { %v1481_v34 = vsel %vm1480_vm7, %v1477_v44, %v1452_v14  ;;  %v1483_v3 = vsel %vm1482_vm8, %v1479_v39, %v1454_v13  ;;  %vm5636_vm8 = vcmp.le.f32.partialorder %v4343_v41, %v4449_v20  ;;  %vm5637_vm7 = vcmp.le.f32.partialorder %v4350_v46, %v4449_v20 }
 0x56f   :  { %vm1484_vm13 = vcmp.lt.s32.totalorder %v1481_v34, %v1456_v56  ;;  %vm1486_vm5 = vcmp.lt.s32.totalorder %v1483_v3, %v1458_v30  ;;  %v1439_v15 = vsel %vm5636_vm8, %v3897_v42, 128  ;;  %v1441_v29 = vsel %vm5637_vm7, %v3900_v45, 128 }
 0x570   :  { %v1485_v35 = vsel %vm1484_vm13, %v1481_v34, %v1456_v56  ;;  %v1487_v1 = vsel %vm1486_vm5, %v1483_v3, %v1458_v30  ;;  %vm1503_vm13 = vcmp.lt.s32.totalorder %v1433_v33, %v1437_v49  ;;  %vm1505_vm5 = vcmp.lt.s32.totalorder %v1435_v17, %v1439_v15 }
 0x571   :  { %vm1488_vm10 = vcmp.lt.s32.totalorder %v1485_v35, %v1460_v32  ;;  %vm1490_vm4 = vcmp.lt.s32.totalorder %v1487_v1, %v1462_v26  ;;  %v1443_v51 = vsel %vm5638_vm9, %v3903_v47, 128  ;;  %v1504_v22 = vsel %vm1503_vm13, %v1433_v33, %v1437_v49  ;;  %v5644_v49 = vld [vmem:[#allocation9_spill] sm:$0xff] }
 0x572   :  { %v1489_v5 = vsel %vm1488_vm10, %v1485_v35, %v1460_v32  ;;  %v1491_v9 = vsel %vm1490_vm4, %v1487_v1, %v1462_v26  ;;  %v1506_v41 = vsel %vm1505_vm5, %v1435_v17, %v1439_v15  ;;  %vm5639_vm10 = vcmp.le.f32.partialorder %v4362_v52, %v4449_v20 }
 0x573   :  { %vm1492_vm3 = vcmp.lt.s32.totalorder %v1489_v5, %v1491_v9  ;;  %v1445_v21 = vsel %vm5639_vm10, %v3906_v50, 128  ;;  %vm1507_vm4 = vcmp.lt.s32.totalorder %v1504_v22, %v1441_v29  ;;  %vm1509_vm15 = vcmp.lt.s32.totalorder %v1506_v41, %v1443_v51 }
 0x574   :  { %v1493_v40 = vsel %vm1492_vm3, %v1489_v5, %v1491_v9  ;;  %vm5640_vm3 = vcmp.le.f32.partialorder %v4368_v54, %v4449_v20  ;;  %v1508_v55 = vsel %vm1507_vm4, %v1504_v22, %v1441_v29  ;;  %v1510_v59 = vsel %vm1509_vm15, %v1506_v41, %v1443_v51  ;;  %v3302_v51 = vld [vmem:[%s5542_s4 + $0x24] ss:$0 sps:$4 sm:$0x11]  }
 0x575   :  { %v1494_v16 = vrot.slane %v1493_v40, 4  ;;  %v1447_v46 = vsel %vm5640_vm3, %v3909_v58, 128  ;;  %vm1511_vm7 = vcmp.lt.s32.totalorder %v1508_v55, %v1445_v21  ;;  %vm5641_vm5 = vcmp.le.f32.partialorder %v4380_v53, %v4449_v20 }
 0x576   :  { %vm1513_vm13 = vcmp.lt.s32.totalorder %v1510_v59, %v1447_v46  ;;  %v1451_v8 = vsel %vm5641_vm5, %v3915_v2, 128  ;;  %v1512_v14 = vsel %vm1511_vm7, %v1508_v55, %v1445_v21  ;;  %vm5642_vm9 = vcmp.le.f32.partialorder %v4386_v48, %v4449_v20 }
 0x577   :  { %vm1495_vm8 = vcmp.lt.s32.totalorder %v1493_v40, %v1494_v16  ;;  %v1514_v13 = vsel %vm1513_vm13, %v1510_v59, %v1447_v46  ;;  %v1453_v54 = vsel %vm5642_vm9, %v3920_v6, 128  ;;  %vm1515_vm10 = vcmp.lt.s32.totalorder %v1512_v14, %v1449_v7  ;;  %v5647_v46 = vld [vmem:[#allocation11_spill] sm:$0xff] }
 0x578   :  { %v1496_v63 = vsel %vm1495_vm8, %v1493_v40, %v1494_v16  ;;  %vm1517_vm4 = vcmp.lt.s32.totalorder %v1514_v13, %v1451_v8  ;;  %v1455_v61 = vsel %vm1423_vm1, %v3923_v10, 128  ;;  %v1516_v28 = vsel %vm1515_vm10, %v1512_v14, %v1449_v7  ;;  %v3300_v40 = vld [vmem:[%s5542_s4 + $0x14] sm:$0xff]   ;;  %v3301_v16 = vld [vmem:[%s5542_s4 + $0x1c] sm:$0xff]  }
 0x579   :  { %v1497_v52 = vrot.slane %v1496_v63, 2  ;;  %v1518_v25 = vsel %vm1517_vm4, %v1514_v13, %v1451_v8  ;;  %vm1519_vm14 = vcmp.lt.s32.totalorder %v1516_v28, %v1453_v54  ;;  %v1457_v53 = vsel %vm1425_vm2, %v3926_v12, 128  ;;  %v5653_v14 = vld [vmem:[#allocation14_spill] sm:$0xff] }
 0x57a   :  { %vm1521_vm8 = vcmp.lt.s32.totalorder %v1518_v25, %v1455_v61  ;;  %v1459_v48 = vsel %vm1427_vm0, %v5631_v19, 128  ;;  %v1520_v60 = vsel %vm1519_vm14, %v1516_v28, %v1453_v54  ;;  %v1461_v23 = vsel %vm1429_vm6, %v5632_v4, 128 }
 0x57b   :  { %vm1498_vm15 = vcmp.lt.s32.totalorder %v1496_v63, %v1497_v52  ;;  %v1522_v37 = vsel %vm1521_vm8, %v1518_v25, %v1455_v61  ;;  %vm1523_vm3 = vcmp.lt.s32.totalorder %v1520_v60, %v1457_v53  ;;  %v1463_v36 = vsel %vm1431_vm11, %v5633_v11, 128 }
 0x57c   :  { %v1499_v0 = vsel %vm1498_vm15, %v1496_v63, %v1497_v52  ;;  %vm1525_vm7 = vcmp.lt.s32.totalorder %v1522_v37, %v1459_v48  ;;  %v1524_v57 = vsel %vm1523_vm3, %v1520_v60, %v1457_v53  ;;  %v5643_v33 = vmov 1.0|1.0   ;;  %v5649_v63 = vld [vmem:[#allocation12_spill] sm:$0xff]  ;;  %v5651_v52 = vld [vmem:[#allocation13_spill] sm:$0xff] }
 0x57d   :  { %v1526_v44 = vsel %vm1525_vm7, %v1522_v37, %v1459_v48  ;;  %vm1527_vm2 = vcmp.lt.s32.totalorder %v1524_v57, %v1461_v23  ;;  %v1500_v43 = vrot.slane %v1499_v0, 1  ;;  %v5646_v29 = vmov 0   ;;  %v5655_v48 = vld [vmem:[#allocation15_spill] sm:$0xff] }
 0x57e   :  { %vm1529_vm1 = vcmp.lt.s32.totalorder %v1526_v44, %v1463_v36  ;;  %v1528_v39 = vsel %vm1527_vm2, %v1524_v57, %v1461_v23 }
 0x57f   :  { %v1530_v56 = vsel %vm1529_vm1, %v1526_v44, %v1463_v36  ;;  %vm1501_vm13 = vcmp.lt.s32.totalorder %v1499_v0, %v1500_v43  ;;  %v5659_v36 = vld [vmem:[#allocation17_spill] sm:$0xff]  ;;  %v5661_v44 = vld [vmem:[#allocation18_spill] sm:$0xff] }
 0x580   :  { %vm1531_vm0 = vcmp.lt.s32.totalorder %v1528_v39, %v1530_v56  ;;  %v1502_v24 = vsel %vm1501_vm13, %v1499_v0, %v1500_v43  ;;  %v5657_v0 = vld [vmem:[#allocation16_spill] sm:$0xff] }
 0x581   :  { %v1532_v30 = vsel %vm1531_vm0, %v1528_v39, %v1530_v56  ;;  %vm1542_vm9 = vcmp.lt.s32.totalorder %v1502_v24, 127 }
 0x582   :  { %v1533_v34 = vrot.slane %v1532_v30, 4  ;;  %v4610_v20 = vsel %vm1542_vm9, %v1502_v24, 127 }
 0x583   :  { %vm1563_vm4 = vcmp.eq.s32.totalorder %v3888_v18, %v4610_v20  ;;  %vm1565_vm15 = vcmp.eq.s32.totalorder %v3891_v31, %v4610_v20  ;;  %vm1567_vm13 = vcmp.eq.s32.totalorder %v3894_v38, %v4610_v20 }
 0x584   :  { %vm1534_vm5 = vcmp.lt.s32.totalorder %v1532_v30, %v1533_v34  ;;  %vm2983_vm1 = vmpackc.low %vm1565_vm15, %vm1563_vm4  ;;  %vm1571_vm4 = vcmp.eq.s32.totalorder %v3900_v45, %v4610_v20  ;;  %vm1573_vm15 = vcmp.eq.s32.totalorder %v3903_v47, %v4610_v20 }
 0x585   :  { %v1535_v3 = vsel %vm1534_vm5, %v1532_v30, %v1533_v34  ;;  %vm1569_vm5 = vcmp.eq.s32.totalorder %v3897_v42, %v4610_v20  ;;  %v5663_v34 = vld [vmem:[#allocation19_spill] sm:$0xff] }
 0x586   :  { %v1536_v32 = vrot.slane %v1535_v3, 2 }
 0x588   :  { %vm1537_vm6 = vcmp.lt.s32.totalorder %v1535_v3, %v1536_v32 }
 0x589   :  { %v1538_v26 = vsel %vm1537_vm6, %v1535_v3, %v1536_v32  ;;  %v5665_v32 = vld [vmem:[#allocation20_spill] sm:$0xff] }
 0x58a   :  { %v1539_v27 = vrot.slane %v1538_v26, 1 }
 0x58c   :  { %vm1540_vm11 = vcmp.lt.s32.totalorder %v1538_v26, %v1539_v27 }
 0x58d   :  { %v1541_v35 = vsel %vm1540_vm11, %v1538_v26, %v1539_v27  ;;  %vm2987_vm11 = vmpackc.low %vm1569_vm5, %vm1567_vm13 }
 0x58e   :  { %vm1544_vm10 = vcmp.lt.s32.totalorder %v1541_v35, 127 }
 0x58f   :  { %v4612_v1 = vsel %vm1544_vm10, %v1541_v35, 127 }
 0x590   :  { %vm1564_vm14 = vcmp.eq.s32.totalorder %v3888_v18, %v4612_v1  ;;  %vm1566_vm8 = vcmp.eq.s32.totalorder %v3891_v31, %v4612_v1  ;;  %vm1568_vm3 = vcmp.eq.s32.totalorder %v3894_v38, %v4612_v1  ;;  %vm1570_vm7 = vcmp.eq.s32.totalorder %v3897_v42, %v4612_v1 }
 0x591   :  { %vm2981_vm2 = vmpackc.low %vm1566_vm8, %vm1564_vm14  ;;  %vm1572_vm6 = vcmp.eq.s32.totalorder %v3900_v45, %v4612_v1  ;;  %vm1574_vm9 = vcmp.eq.s32.totalorder %v3903_v47, %v4612_v1  ;;  %v1546_v17 = vcombine.low %v4610_v20, %v4612_v1  ;;  %vm1576_vm14 = vcmp.eq.s32.totalorder %v3906_v50, %v4612_v1 }
 0x592   :  { %2982 = vmatprep.subr.msk.bf16.mxu1 %vm2981_vm2, %v5643_v33  ;;  %vm2985_vm0 = vmpackc.low %vm1570_vm7, %vm1568_vm3  ;;  %vm1578_vm8 = vcmp.eq.s32.totalorder %v3909_v58, %v4612_v1  ;;  %vm1575_vm2 = vcmp.eq.s32.totalorder %v3906_v50, %v4610_v20  ;;  %vm1582_vm13 = vcmp.eq.s32.totalorder %v3915_v2, %v4612_v1 }
 0x593   :  { %2984 = vmatpush1.bf16.msk.msra.mxu1 %vm2983_vm1, %v5643_v33  ;;  %v1553_v15 = vrot.slane %v1546_v17, %v5644_v49  ;;  %vm2989_vm10 = vmpackc.low %vm1574_vm9, %vm1572_vm6  ;;  %vm1577_vm1 = vcmp.eq.s32.totalorder %v3909_v58, %v4610_v20  ;;  %vm1579_vm9 = vcmp.eq.s32.totalorder %v3912_v62, %v4610_v20  ;;  %v5667_v17 = vld [vmem:[#allocation5_spill] sm:$0xff] }
 0x594   :  { %2986 = vmatprep.subr.msk.bf16.mxu1 %vm2985_vm0, %v5643_v33  ;;  %vm2991_vm3 = vmpackc.low %vm1573_vm15, %vm1571_vm4  ;;  %vm1580_vm0 = vcmp.eq.s32.totalorder %v3912_v62, %v4612_v1  ;;  %vm1586_vm4 = vcmp.eq.s32.totalorder %v3923_v10, %v4612_v1 }
 0x595   :  { %v1560_v5 = vrot.slane %v1553_v15, %v5644_v49  ;;  %vm2993_vm7 = vmpackc.low %vm1578_vm8, %vm1576_vm14  ;;  %vm1583_vm8 = vcmp.eq.s32.totalorder %v3920_v6, %v4610_v20 }
 0x596   :  { %vm2995_vm5 = vmpackc.low %vm1577_vm1, %vm1575_vm2  ;;  %vm1590_vm2 = vcmp.eq.s32.totalorder %v5631_v19, %v4612_v1 }
 0x597   :  { %2988 = vmatpush1.bf16.msk.msra.mxu1 %vm2987_vm11, %v5643_v33  ;;  %1562 = vst.msk [vmem:[#allocation2 + $0x1] ss:$4 sm:$0x3] %vm4170_vm12, %v1560_v5  ;;  %vm2997_vm6 = vmpackc.low %vm1582_vm13, %vm1580_vm0  ;;  %vm1581_vm11 = vcmp.eq.s32.totalorder %v3915_v2, %v4610_v20  ;;  %vm1587_vm13 = vcmp.eq.s32.totalorder %v3926_v12, %v4610_v20 }
 0x598   :  { %2990 = vmatprep.subr.msk.bf16.mxu1 %vm2989_vm10, %v5643_v33  ;;  %vm1584_vm10 = vcmp.eq.s32.totalorder %v3920_v6, %v4612_v1  ;;  %vm2999_vm15 = vmpackc.low %vm1581_vm11, %vm1579_vm9  ;;  %vm1594_vm9 = vcmp.eq.s32.totalorder %v5633_v11, %v4612_v1 }
 0x599   :  { %vm3001_vm14 = vmpackc.low %vm1586_vm4, %vm1584_vm10  ;;  %vm1591_vm4 = vcmp.eq.s32.totalorder %v5632_v4, %v4610_v20 }
 0x59b   :  { %2992 = vmatpush1.bf16.msk.msra.mxu1 %vm2991_vm3, %v5643_v33  ;;  %vm1585_vm3 = vcmp.eq.s32.totalorder %v3923_v10, %v4610_v20 }
 0x59c   :  { %2994 = vmatprep.subr.msk.bf16.mxu1 %vm2993_vm7, %v5643_v33  ;;  %vm1588_vm7 = vcmp.eq.s32.totalorder %v3926_v12, %v4612_v1  ;;  %vm3003_vm1 = vmpackc.low %vm1585_vm3, %vm1583_vm8  ;;  %vm5668_vm8 = vcmask 269312  }
 0x59d   :  { %vm3005_vm0 = vmpackc.low %vm1590_vm2, %vm1588_vm7 }
 0x59e   :  { %vm5669_vm3 = vmmov %vm5668_vm8 }
 0x59f   :  { %2996 = vmatpush1.bf16.msk.msra.mxu1 %vm2995_vm5, %v5643_v33  ;;  %vm1589_vm5 = vcmp.eq.s32.totalorder %v5631_v19, %v4610_v20  ;;  %vm5670_vm7 = vmmov %vm5669_vm3 }
 0x5a0   :  { %2998 = vmatprep.subr.msk.bf16.mxu1 %vm2997_vm6, %v5643_v33  ;;  %vm1592_vm6 = vcmp.eq.s32.totalorder %v5632_v4, %v4612_v1  ;;  %vm3007_vm11 = vmpackc.low %vm1589_vm5, %vm1587_vm13 }
 0x5a1   :  { %vm3009_vm10 = vmpackc.low %vm1594_vm9, %vm1592_vm6 }
 0x5a2   :  { %vm5671_vm2 = vmmov %vm5669_vm3 }
 0x5a3   :  { %3000 = vmatpush1.bf16.msk.msra.mxu1 %vm2999_vm15, %v5643_v33  ;;  %vm1593_vm15 = vcmp.eq.s32.totalorder %v5633_v11, %v4610_v20 }
 0x5a4   :  { %3002 = vmatprep.subr.msk.bf16.mxu1 %vm3001_vm14, %v5643_v33  ;;  %vm3011_vm14 = vmpackc.low %vm1593_vm15, %vm1591_vm4 }
 0x5a7   :  { %3004 = vmatpush1.bf16.msk.msra.mxu1 %vm3003_vm1, %v5643_v33  ;;  %vm5672_vm1 = vmmov %vm5671_vm2 }
 0x5a8   :  { %3006 = vmatprep.subr.msk.bf16.mxu1 %vm3005_vm0, %v5643_v33  ;;  %vm5673_vm0 = vmmov %vm5672_vm1 }
 0x5a9   :  { %vm5674_vm13 = vmmov %vm5673_vm0 }
 0x5aa   :  { %vm5675_vm5 = vmmov %vm5673_vm0 }
 0x5ab   :  { %3008 = vmatpush1.bf16.msk.msra.mxu1 %vm3007_vm11, %v5643_v33 }
 0x5ac   :  { %3010 = vmatprep.subr.msk.bf16.mxu1 %vm3009_vm10, %v5643_v33 }
 0x5af   :  { %3012 = vmatpush1.bf16.msk.msra.mxu1 %vm3011_vm14, %v5643_v33 }
 0x5b2   :  { %1730 = vmatmul.mubr.bf16.vlgmr.msra.gmra.mrb[76].mxu1 %v3300_v40  ;;  %v3303_v40 = vld [vmem:[%s5541_s3 + $0x80] sm:$0xff]  }
 0x5b3   :  { %1739 = vmatprep.mubr.bf16.mxu1 %v5646_v29 }
 0x5ba   :  { %1740 = vmatmul.mubr.bf16.gmra.mrb[80].mxu1 %v3301_v16  ;;  %v3304_v16 = vld [vmem:[%s5541_s3 + $0x88] sm:$0xff]  }
 0x5bb   :  { %1749 = vmatprep.mubr.bf16.mxu1 %v5646_v29 }
 0x5c2   :  { %1750 = vmatmul.mubr.bf16.gmra.mrb[84].mxu1 %v3302_v51  ;;  %v3305_v51 = vld [vmem:[%s5541_s3 + $0x90] sm:$0xff]  }
 0x5c3   :  { %1893 = vmatprep.mubr.bf16.mxu1 %v5646_v29 }
 0x685   :  { %v1731_v22 = vpop.f32.mrb[76].mxu1 }
 0x686   :  { %v1733_v41 = vpop.f32.mrb[77].mxu1  ;;  %v4722_v13 = vadd.f32 %v1731_v22, %v5653_v14  ;;  %v3306_v22 = vld [vmem:[%s5541_s3 + $0x98] sm:$0xff]  }
 0x687   :  { %v1735_v21 = vpop.f32.mrb[78].mxu1  ;;  %v4716_v7 = vadd.f32 %v1733_v41, %v5649_v63  ;;  %v3307_v41 = vld [vmem:[%s5541_s3 + $0xa0] sm:$0xff]  }
 0x688   :  { %v4713_v55 = vadd.f32 %v1735_v21, %v5647_v46  ;;  %v1737_v59 = vpop.f32.mrb[79].mxu1  ;;  %5654 = vst [vmem:[#allocation14_spill] sm:$0xff] %v4722_v13  ;;  %v3308_v21 = vld [vmem:[%s5541_s3 + $0xa8] sm:$0xff]   ;;  %v3309_v46 = vld [vmem:[%s5541_s3 + $0xb0] sm:$0xff]  }
 0x689   :  { %5650 = vst [vmem:[#allocation12_spill] sm:$0xff] %v4716_v7  ;;  %v4719_v8 = vadd.f32 %v1737_v59, %v5651_v52  ;;  %v3310_v59 = vld [vmem:[%s5541_s3 + $0xb8] sm:$0xff]  }
 0x68a   :  { %5648 = vst [vmem:[#allocation11_spill] sm:$0xff] %v4713_v55  ;;  %v1785_v61 = vpack.c.bf16 %v4713_v55, %v4722_v13 }
 0x68b   :  { %5652 = vst [vmem:[#allocation13_spill] sm:$0xff] %v4719_v8  ;;  %v1786_v54 = vpack.c.bf16 %v4719_v8, %v4716_v7 }
 0x68d   :  { %v1741_v28 = vpop.f32.mrb[80].mxu1  ;;  %1861 = vmatprep.subr.bf16.mxu1 %v1786_v54 }
 0x68e   :  { %v1743_v25 = vpop.f32.mrb[81].mxu1  ;;  %1862 = vmatpush1.bf16.msra.mxu1 %v1785_v61  ;;  %v4738_v43 = vadd.f32 %v1741_v28, %v5661_v44 }
 0x68f   :  { %v1745_v53 = vpop.f32.mrb[82].mxu1  ;;  %v4732_v23 = vadd.f32 %v1743_v25, %v5657_v0 }
 0x690   :  { %v4729_v60 = vadd.f32 %v1745_v53, %v5655_v48  ;;  %v1747_v37 = vpop.f32.mrb[83].mxu1  ;;  %5662 = vst [vmem:[#allocation18_spill] sm:$0xff] %v4738_v43 }
 0x691   :  { %5658 = vst [vmem:[#allocation16_spill] sm:$0xff] %v4732_v23  ;;  %v4735_v57 = vadd.f32 %v1747_v37, %v5659_v36 }
 0x692   :  { %5656 = vst [vmem:[#allocation15_spill] sm:$0xff] %v4729_v60  ;;  %v1787_v56 = vpack.c.bf16 %v4729_v60, %v4738_v43 }
 0x693   :  { %5660 = vst [vmem:[#allocation17_spill] sm:$0xff] %v4735_v57  ;;  %v1788_v39 = vpack.c.bf16 %v4735_v57, %v4732_v23 }
 0x695   :  { %v1751_v30 = vpop.f32.mrb[84].mxu1  ;;  %1863 = vmatprep.subr.bf16.mxu1 %v1788_v39 }
 0x696   :  { %v4745_v3 = vadd.f32 %v1751_v30, %v5663_v34  ;;  %v1753_v24 = vpop.f32.mrb[85].mxu1  ;;  %1864 = vmatpush1.bf16.msra.mxu1 %v1787_v56 }
 0x697   :  { %v4748_v26 = vadd.f32 %v1753_v24, %v5665_v32  ;;  %v1755_v27 = vpop.f32.mrb[86].mxu1 }
 0x698   :  { %5664 = vst [vmem:[#allocation19_spill] sm:$0xff] %v4745_v3  ;;  %v1789_v20 = vpack.c.bf16 %v4745_v3, %v4745_v3  ;;  %v1756_v35 = vpop.f32.mrb[87].mxu1 }
 0x699   :  { %5666 = vst [vmem:[#allocation20_spill] sm:$0xff] %v4748_v26  ;;  %v1790_v1 = vpack.c.bf16 %v4748_v26, %v4748_v26 }
 0x69a   :  { %v1856_v5 = vand.u32 %v1789_v20, %v5667_v17 }
 0x69b   :  { %v1859_v15 = vand.u32 %v1790_v1, %v5667_v17 }
 0x69d   :  { %1865 = vmatprep.subr.bf16.mxu1 %v1859_v15 }
 0x69e   :  { %1866 = vmatpush1.bf16.msra.mxu1 %v1856_v5 }
 0x6a1   :  { %3037 = vmatmul.mubr.msk.bf16.vlgmr.msra.gmra.mrb[88].mxu1 %vm5668_vm8, %v3303_v40 }
 0x6a2   :  { %1903 = vmatprep.mubr.bf16.mxu1 %v5646_v29 }
 0x6a9   :  { %3038 = vmatmul.mubr.msk.bf16.gmra.mrb[92].mxu1 %vm5669_vm3, %v3304_v16 }
 0x6aa   :  { %1913 = vmatprep.mubr.bf16.mxu1 %v5646_v29 }
 0x6b1   :  { %3039 = vmatmul.mubr.msk.bf16.gmra.mrb[96].mxu1 %vm5670_vm7, %v3305_v51 }
 0x6b2   :  { %1923 = vmatprep.mubr.bf16.mxu1 %v5646_v29 }
 0x6b9   :  { %3040 = vmatmul.mubr.msk.bf16.gmra.mrb[100].mxu1 %vm5671_vm2, %v3306_v22 }
 0x6ba   :  { %1933 = vmatprep.mubr.bf16.mxu1 %v5646_v29 }
 0x6c1   :  { %3041 = vmatmul.mubr.msk.bf16.gmra.mrb[104].mxu1 %vm5672_vm1, %v3307_v41 }
 0x6c2   :  { %1943 = vmatprep.mubr.bf16.mxu1 %v5646_v29 }
 0x6c9   :  { %3042 = vmatmul.mubr.msk.bf16.gmra.mrb[108].mxu1 %vm5673_vm0, %v3308_v21 }
 0x6ca   :  { %1953 = vmatprep.mubr.bf16.mxu1 %v5646_v29 }
 0x6d1   :  { %3043 = vmatmul.mubr.msk.bf16.gmra.mrb[112].mxu1 %vm5674_vm13, %v3309_v46 }
 0x6d2   :  { %1963 = vmatprep.mubr.bf16.mxu1 %v5646_v29 }
 0x6d9   :  { %3044 = vmatmul.mubr.msk.bf16.gmra.mrb[116].mxu1 %vm5675_vm5, %v3310_v59 }
 0x774   :  { %v4795_v63 = vpop.f32.mrb[88].mxu1 }
 0x775   :  { %v4797_v52 = vpop.f32.mrb[89].mxu1 }
 0x776   :  { %v4799_v14 = vpop.f32.mrb[90].mxu1 }
 0x777   :  { %v4801_v54 = vpop.f32.mrb[91].mxu1 }
 0x77c   :  { %v4803_v61 = vpop.f32.mrb[92].mxu1 }
 0x77d   :  { %v1974_v28 = vmin.f32 %v4795_v63, %v4803_v61  ;;  %v4807_v25 = vpop.f32.mrb[93].mxu1 }
 0x77e   :  { %v1995_v53 = vmin.f32 %v4797_v52, %v4807_v25  ;;  %v4811_v48 = vpop.f32.mrb[94].mxu1 }
 0x77f   :  { %v1975_v37 = vmin.f32 %v4799_v14, %v4811_v48  ;;  %v4815_v0 = vpop.f32.mrb[95].mxu1 }
 0x780   :  { %v1996_v36 = vmin.f32 %v4801_v54, %v4815_v0 }
 0x784   :  { %v4819_v44 = vpop.f32.mrb[96].mxu1 }
 0x785   :  { %v1976_v39 = vmin.f32 %v1974_v28, %v4819_v44  ;;  %v4822_v56 = vpop.f32.mrb[97].mxu1 }
 0x786   :  { %v1997_v30 = vmin.f32 %v1995_v53, %v4822_v56  ;;  %v4825_v34 = vpop.f32.mrb[98].mxu1 }
 0x787   :  { %v1977_v24 = vmin.f32 %v1975_v37, %v4825_v34  ;;  %v4828_v32 = vpop.f32.mrb[99].mxu1 }
 0x788   :  { %v1998_v27 = vmin.f32 %v1996_v36, %v4828_v32 }
 0x78c   :  { %v4831_v20 = vpop.f32.mrb[100].mxu1 }
 0x78d   :  { %v1978_v35 = vmin.f32 %v1976_v39, %v4831_v20  ;;  %v4834_v1 = vpop.f32.mrb[101].mxu1 }
 0x78e   :  { %v1999_v15 = vmin.f32 %v1997_v30, %v4834_v1  ;;  %v4837_v5 = vpop.f32.mrb[102].mxu1 }
 0x78f   :  { %v1979_v40 = vmin.f32 %v1977_v24, %v4837_v5  ;;  %v4840_v16 = vpop.f32.mrb[103].mxu1 }
 0x790   :  { %v2000_v51 = vmin.f32 %v1998_v27, %v4840_v16 }
 0x794   :  { %v4843_v22 = vpop.f32.mrb[104].mxu1 }
 0x795   :  { %v1980_v41 = vmin.f32 %v1978_v35, %v4843_v22  ;;  %v4846_v21 = vpop.f32.mrb[105].mxu1 }
 0x796   :  { %v2001_v46 = vmin.f32 %v1999_v15, %v4846_v21  ;;  %v4849_v59 = vpop.f32.mrb[106].mxu1 }
 0x797   :  { %v1981_v28 = vmin.f32 %v1979_v40, %v4849_v59  ;;  %v4852_v53 = vpop.f32.mrb[107].mxu1 }
 0x798   :  { %v2002_v37 = vmin.f32 %v2000_v51, %v4852_v53 }
 0x79c   :  { %v4855_v36 = vpop.f32.mrb[108].mxu1 }
 0x79d   :  { %v1982_v39 = vmin.f32 %v1980_v41, %v4855_v36  ;;  %v4858_v30 = vpop.f32.mrb[109].mxu1 }
 0x79e   :  { %v2003_v24 = vmin.f32 %v2001_v46, %v4858_v30  ;;  %v1949_v27 = vpop.f32.mrb[110].mxu1 }
 0x79f   :  { %v1983_v35 = vmin.f32 %v1981_v28, %v1949_v27  ;;  %v4861_v17 = vpop.f32.mrb[111].mxu1 }
 0x7a0   :  { %v2004_v15 = vmin.f32 %v2002_v37, %v4861_v17 }
 0x7a4   :  { %v4864_v26 = vpop.f32.mrb[112].mxu1 }
 0x7a5   :  { %v1984_v40 = vmin.f32 %v1982_v39, %v4864_v26  ;;  %v4867_v3 = vpop.f32.mrb[113].mxu1 }
 0x7a6   :  { %v2005_v51 = vmin.f32 %v2003_v24, %v4867_v3  ;;  %v4870_v57 = vpop.f32.mrb[114].mxu1 }
 0x7a7   :  { %v1985_v41 = vmin.f32 %v1983_v35, %v4870_v57  ;;  %v4873_v23 = vpop.f32.mrb[115].mxu1 }
 0x7a8   :  { %v2006_v46 = vmin.f32 %v2004_v15, %v4873_v23 }
 0x7ac   :  { %v4876_v28 = vpop.f32.mrb[116].mxu1 }
 0x7ad   :  { %v1986_v37 = vmin.f32 %v1984_v40, %v4876_v28  ;;  %v4879_v60 = vpop.f32.mrb[117].mxu1 }
 0x7ae   :  { %v2007_v39 = vmin.f32 %v2005_v51, %v4879_v60  ;;  %v4882_v43 = vpop.f32.mrb[118].mxu1 }
 0x7af   :  { %v1987_v24 = vmin.f32 %v1985_v41, %v4882_v43  ;;  %v4885_v8 = vpop.f32.mrb[119].mxu1  ;;  %v5677_v41 = vld [vmem:[#allocation6_spill] sm:$0xff] }
 0x7b0   :  { %v2008_v35 = vmin.f32 %v2006_v46, %v4885_v8 }
 0x7b1   :  { %v1988_v7 = vmin.f32 %v1986_v37, %v1987_v24  ;;  %v5678_v24 = vld [vmem:[#allocation7_spill] sm:$0xff] }
 0x7b2   :  { %v2009_v55 = vmin.f32 %v2007_v39, %v2008_v35 }
 0x7b3   :  { %v1989_v13 = vrot.slane %v1988_v7, 4 }
 0x7b4   :  { %v2010_v15 = vrot.slane %v2009_v55, 4 }
 0x7b5   :  { %v1990_v29 = vmin.f32 %v1988_v7, %v1989_v13 }
 0x7b6   :  { %v2011_v9 = vmin.f32 %v2009_v55, %v2010_v15  ;;  %v5679_v15 = vld [vmem:[#allocation8_spill] sm:$0xff] }
 0x7b7   :  { %v1991_v49 = vrot.slane %v1990_v29, 2 }
 0x7b8   :  { %v2012_v40 = vrot.slane %v2011_v9, 2 }
 0x7b9   :  { %v1992_v33 = vmin.f32 %v1990_v29, %v1991_v49 }
 0x7ba   :  { %v2013_v11 = vmin.f32 %v2011_v9, %v2012_v40 }
 0x7bb   :  { %v1993_v4 = vrot.slane %v1992_v33, 1 }
 0x7bc   :  { %v2014_v19 = vrot.slane %v2013_v11, 1 }
 0x7bd   :  { %v4888_v51 = vmin.f32 %v1992_v33, %v1993_v4 }
 0x7be   :  { %v4921_v4 = vmin.f32 %v2013_v11, %v2014_v19 }
 0x7bf   :  { %vm2016_vm6 = vcmp.le.f32.partialorder %v4795_v63, %v4888_v51  ;;  %vm2018_vm9 = vcmp.le.f32.partialorder %v4799_v14, %v4888_v51  ;;  %vm2020_vm11 = vcmp.le.f32.partialorder %v4803_v61, %v4888_v51  ;;  %vm2022_vm10 = vcmp.le.f32.partialorder %v4811_v48, %v4888_v51 }
 0x7c0   :  { %vm2024_vm4 = vcmp.le.f32.partialorder %v4819_v44, %v4888_v51  ;;  %vm2026_vm15 = vcmp.le.f32.partialorder %v4825_v34, %v4888_v51  ;;  %vm2028_vm14 = vcmp.le.f32.partialorder %v4831_v20, %v4888_v51  ;;  %vm2030_vm8 = vcmp.le.f32.partialorder %v4837_v5, %v4888_v51 }
 0x7c1   :  { %vm2034_vm7 = vcmp.le.f32.partialorder %v4849_v59, %v4888_v51  ;;  %vm2036_vm2 = vcmp.le.f32.partialorder %v4855_v36, %v4888_v51  ;;  %vm2038_vm1 = vcmp.le.f32.partialorder %v1949_v27, %v4888_v51  ;;  %vm2040_vm0 = vcmp.le.f32.partialorder %v4864_v26, %v4888_v51 }
 0x7c2   :  { %vm2042_vm13 = vcmp.le.f32.partialorder %v4870_v57, %v4888_v51  ;;  %vm2044_vm5 = vcmp.le.f32.partialorder %v4876_v28, %v4888_v51  ;;  %vm2046_vm3 = vcmp.le.f32.partialorder %v4882_v43, %v4888_v51  ;;  %v2048_v33 = vsel %vm2016_vm6, %v3888_v18, 128 }
 0x7c3   :  { %v2050_v49 = vsel %vm2018_vm9, %v3891_v31, 128  ;;  %v2052_v9 = vsel %vm2020_vm11, %v3894_v38, 128  ;;  %v2054_v19 = vsel %vm2022_vm10, %v3897_v42, 128  ;;  %v2056_v11 = vsel %vm2024_vm4, %v3900_v45, 128 }
 0x7c4   :  { %v2058_v29 = vsel %vm2026_vm15, %v3903_v47, 128  ;;  %v2060_v55 = vsel %vm2028_vm14, %v3906_v50, 128  ;;  %v2062_v7 = vsel %vm2030_vm8, %v3909_v58, 128  ;;  %vm5676_vm6 = vcmp.le.f32.partialorder %v4843_v22, %v4888_v51 }
 0x7c5   :  { %v2064_v13 = vsel %vm5676_vm6, %v3912_v62, 128  ;;  %v2066_v63 = vsel %vm2034_vm7, %v3915_v2, 128  ;;  %v2068_v14 = vsel %vm2036_vm2, %v3920_v6, 128  ;;  %v2070_v61 = vsel %vm2038_vm1, %v3923_v10, 128 }
 0x7c6   :  { %vm2080_vm9 = vcmp.lt.s32.totalorder %v2048_v33, %v2052_v9  ;;  %vm2082_vm11 = vcmp.lt.s32.totalorder %v2050_v49, %v2054_v19  ;;  %vm2017_vm10 = vcmp.le.f32.partialorder %v4797_v52, %v4921_v4  ;;  %vm2033_vm14 = vcmp.le.f32.partialorder %v4846_v21, %v4921_v4 }
 0x7c7   :  { %v2081_v48 = vsel %vm2080_vm9, %v2048_v33, %v2052_v9  ;;  %v2083_v44 = vsel %vm2082_vm11, %v2050_v49, %v2054_v19  ;;  %vm2041_vm9 = vcmp.le.f32.partialorder %v4867_v3, %v4921_v4  ;;  %vm2043_vm2 = vcmp.le.f32.partialorder %v4873_v23, %v4921_v4 }
 0x7c8   :  { %vm2084_vm8 = vcmp.lt.s32.totalorder %v2081_v48, %v2056_v11  ;;  %vm2086_vm7 = vcmp.lt.s32.totalorder %v2083_v44, %v2058_v29  ;;  %v2072_v27 = vsel %vm2040_vm0, %v3926_v12, 128  ;;  %v2074_v46 = vsel %vm2042_vm13, %v5677_v41, 128 }
 0x7c9   :  { %v2085_v34 = vsel %vm2084_vm8, %v2081_v48, %v2056_v11  ;;  %v2087_v20 = vsel %vm2086_vm7, %v2083_v44, %v2058_v29  ;;  %vm2039_vm7 = vcmp.le.f32.partialorder %v4861_v17, %v4921_v4  ;;  %v2076_v35 = vsel %vm2044_vm5, %v5678_v24, 128 }
 0x7ca   :  { %vm2088_vm11 = vcmp.lt.s32.totalorder %v2085_v34, %v2060_v55  ;;  %vm2090_vm15 = vcmp.lt.s32.totalorder %v2087_v20, %v2062_v7  ;;  %v2078_v40 = vsel %vm2046_vm3, %v5679_v15, 128  ;;  %v2049_v57 = vsel %vm2017_vm10, %v3888_v18, 128 }
 0x7cb   :  { %v2089_v5 = vsel %vm2088_vm11, %v2085_v34, %v2060_v55  ;;  %v2091_v22 = vsel %vm2090_vm15, %v2087_v20, %v2062_v7  ;;  %vm2045_vm11 = vcmp.le.f32.partialorder %v4879_v60, %v4921_v4  ;;  %vm2047_vm15 = vcmp.le.f32.partialorder %v4885_v8, %v4921_v4 }
 0x7cc   :  { %vm2092_vm6 = vcmp.lt.s32.totalorder %v2089_v5, %v2064_v13  ;;  %vm2094_vm1 = vcmp.lt.s32.totalorder %v2091_v22, %v2066_v63  ;;  %vm5680_vm0 = vcmp.le.f32.partialorder %v4801_v54, %v4921_v4  ;;  %vm5681_vm3 = vcmp.le.f32.partialorder %v4807_v25, %v4921_v4 }
 0x7cd   :  { %v2093_v59 = vsel %vm2092_vm6, %v2089_v5, %v2064_v13  ;;  %v2095_v36 = vsel %vm2094_vm1, %v2091_v22, %v2066_v63  ;;  %v2051_v28 = vsel %vm5680_vm0, %v3891_v31, 128  ;;  %v2053_v43 = vsel %vm5681_vm3, %v3894_v38, 128 }
 0x7ce   :  { %vm2096_vm8 = vcmp.lt.s32.totalorder %v2093_v59, %v2068_v14  ;;  %vm2098_vm4 = vcmp.lt.s32.totalorder %v2095_v36, %v2070_v61  ;;  %vm5684_vm0 = vcmp.le.f32.partialorder %v4828_v32, %v4921_v4  ;;  %v2065_v32 = vsel %vm2033_vm14, %v3912_v62, 128 }
 0x7cf   :  { %v2097_v37 = vsel %vm2096_vm8, %v2093_v59, %v2068_v14  ;;  %v2099_v39 = vsel %vm2098_vm4, %v2095_v36, %v2070_v61  ;;  %vm5682_vm4 = vcmp.le.f32.partialorder %v4815_v0, %v4921_v4  ;;  %vm5683_vm8 = vcmp.le.f32.partialorder %v4822_v56, %v4921_v4 }
 0x7d0   :  { %vm2100_vm1 = vcmp.lt.s32.totalorder %v2097_v37, %v2072_v27  ;;  %vm2102_vm6 = vcmp.lt.s32.totalorder %v2099_v39, %v2074_v46  ;;  %v2055_v51 = vsel %vm5682_vm4, %v3897_v42, 128  ;;  %v2057_v54 = vsel %vm5683_vm8, %v3900_v45, 128 }
 0x7d1   :  { %v2101_v26 = vsel %vm2100_vm1, %v2097_v37, %v2072_v27  ;;  %v2103_v33 = vsel %vm2102_vm6, %v2099_v39, %v2074_v46  ;;  %vm2119_vm1 = vcmp.lt.s32.totalorder %v2049_v57, %v2053_v43  ;;  %vm2121_vm6 = vcmp.lt.s32.totalorder %v2051_v28, %v2055_v51 }
 0x7d2   :  { %vm2104_vm13 = vcmp.lt.s32.totalorder %v2101_v26, %v2076_v35  ;;  %vm2106_vm5 = vcmp.lt.s32.totalorder %v2103_v33, %v2078_v40  ;;  %v2059_v25 = vsel %vm5684_vm0, %v3903_v47, 128  ;;  %v2120_v11 = vsel %vm2119_vm1, %v2049_v57, %v2053_v43  ;;  %v5690_v43 = vld [vmem:[#allocation9_spill] sm:$0xff] }
 0x7d3   :  { %v2105_v49 = vsel %vm2104_vm13, %v2101_v26, %v2076_v35  ;;  %v2107_v52 = vsel %vm2106_vm5, %v2103_v33, %v2078_v40  ;;  %v2122_v0 = vsel %vm2121_vm6, %v2051_v28, %v2055_v51  ;;  %vm5685_vm13 = vcmp.le.f32.partialorder %v4834_v1, %v4921_v4 }
 0x7d4   :  { %vm2108_vm10 = vcmp.lt.s32.totalorder %v2105_v49, %v2107_v52  ;;  %v2061_v29 = vsel %vm5685_vm13, %v3906_v50, 128  ;;  %vm2123_vm5 = vcmp.lt.s32.totalorder %v2120_v11, %v2057_v54  ;;  %vm2125_vm3 = vcmp.lt.s32.totalorder %v2122_v0, %v2059_v25 }
 0x7d5   :  { %v2109_v9 = vsel %vm2108_vm10, %v2105_v49, %v2107_v52  ;;  %vm5686_vm10 = vcmp.le.f32.partialorder %v4840_v16, %v4921_v4  ;;  %v2124_v55 = vsel %vm2123_vm5, %v2120_v11, %v2057_v54  ;;  %v2126_v7 = vsel %vm2125_vm3, %v2122_v0, %v2059_v25  ;;  %v3313_v25 = vld [vmem:[%s5542_s4 + $0x38] ss:$0 sps:$4 sm:$0x11]  }
 0x7d6   :  { %v2110_v19 = vrot.slane %v2109_v9, 4  ;;  %v2063_v56 = vsel %vm5686_vm10, %v3909_v58, 128  ;;  %vm2127_vm8 = vcmp.lt.s32.totalorder %v2124_v55, %v2061_v29  ;;  %vm5687_vm6 = vcmp.le.f32.partialorder %v4852_v53, %v4921_v4 }
 0x7d7   :  { %vm2129_vm1 = vcmp.lt.s32.totalorder %v2126_v7, %v2063_v56  ;;  %v2067_v63 = vsel %vm5687_vm6, %v3915_v2, 128  ;;  %v2128_v14 = vsel %vm2127_vm8, %v2124_v55, %v2061_v29  ;;  %vm5688_vm0 = vcmp.le.f32.partialorder %v4858_v30, %v4921_v4 }
 0x7d8   :  { %vm2111_vm4 = vcmp.lt.s32.totalorder %v2109_v9, %v2110_v19  ;;  %v2130_v61 = vsel %vm2129_vm1, %v2126_v7, %v2063_v56  ;;  %v2069_v16 = vsel %vm5688_vm0, %v3920_v6, 128  ;;  %vm2131_vm13 = vcmp.lt.s32.totalorder %v2128_v14, %v2065_v32  ;;  %v5693_v56 = vld [vmem:[#allocation14_spill] sm:$0xff]  ;;  %v5694_v7 = vld [vmem:[#allocation11_spill] sm:$0xff] }
 0x7d9   :  { %v2112_v13 = vsel %vm2111_vm4, %v2109_v9, %v2110_v19  ;;  %vm2133_vm5 = vcmp.lt.s32.totalorder %v2130_v61, %v2067_v63  ;;  %v2071_v21 = vsel %vm2039_vm7, %v3923_v10, 128  ;;  %v2132_v48 = vsel %vm2131_vm13, %v2128_v14, %v2065_v32  ;;  %v3311_v9 = vld [vmem:[%s5542_s4 + $0x28] sm:$0xff]   ;;  %v3312_v19 = vld [vmem:[%s5542_s4 + $0x30] sm:$0xff]  }
 0x7da   :  { %v2113_v1 = vrot.slane %v2112_v13, 2  ;;  %v2134_v44 = vsel %vm2133_vm5, %v2130_v61, %v2067_v63  ;;  %vm2135_vm14 = vcmp.lt.s32.totalorder %v2132_v48, %v2069_v16  ;;  %v2073_v53 = vsel %vm2041_vm9, %v3926_v12, 128  ;;  %v5696_v14 = vld [vmem:[#allocation13_spill] sm:$0xff] }
 0x7db   :  { %vm2137_vm4 = vcmp.lt.s32.totalorder %v2134_v44, %v2071_v21  ;;  %v2075_v30 = vsel %vm2043_vm2, %v5677_v41, 128  ;;  %v2136_v34 = vsel %vm2135_vm14, %v2132_v48, %v2069_v16  ;;  %v2077_v17 = vsel %vm2045_vm11, %v5678_v24, 128 }
 0x7dc   :  { %vm2114_vm3 = vcmp.lt.s32.totalorder %v2112_v13, %v2113_v1  ;;  %v2138_v20 = vsel %vm2137_vm4, %v2134_v44, %v2071_v21  ;;  %vm2139_vm10 = vcmp.lt.s32.totalorder %v2136_v34, %v2073_v53  ;;  %v2079_v3 = vsel %vm2047_vm15, %v5679_v15, 128 }
 0x7dd   :  { %v2115_v5 = vsel %vm2114_vm3, %v2112_v13, %v2113_v1  ;;  %vm2141_vm8 = vcmp.lt.s32.totalorder %v2138_v20, %v2075_v30  ;;  %v2140_v22 = vsel %vm2139_vm10, %v2136_v34, %v2073_v53  ;;  %v5689_v57 = vmov 1.0|1.0   ;;  %v5695_v1 = vld [vmem:[#allocation12_spill] sm:$0xff] }
 0x7de   :  { %v2142_v59 = vsel %vm2141_vm8, %v2138_v20, %v2075_v30  ;;  %vm2143_vm9 = vcmp.lt.s32.totalorder %v2140_v22, %v2077_v17  ;;  %v2116_v23 = vrot.slane %v2115_v5, 1  ;;  %v5692_v54 = vmov 0   ;;  %v5697_v30 = vld [vmem:[#allocation18_spill] sm:$0xff]  ;;  %v5698_v20 = vld [vmem:[#allocation15_spill] sm:$0xff] }
 0x7df   :  { %vm2145_vm7 = vcmp.lt.s32.totalorder %v2142_v59, %v2079_v3  ;;  %v2144_v36 = vsel %vm2143_vm9, %v2140_v22, %v2077_v17 }
 0x7e0   :  { %v2146_v27 = vsel %vm2145_vm7, %v2142_v59, %v2079_v3  ;;  %vm2117_vm1 = vcmp.lt.s32.totalorder %v2115_v5, %v2116_v23  ;;  %v5699_v3 = vld [vmem:[#allocation16_spill] sm:$0xff]  ;;  %v5700_v59 = vld [vmem:[#allocation17_spill] sm:$0xff] }
 0x7e1   :  { %vm2147_vm2 = vcmp.lt.s32.totalorder %v2144_v36, %v2146_v27  ;;  %v2118_v60 = vsel %vm2117_vm1, %v2115_v5, %v2116_v23 }
 0x7e2   :  { %v2148_v46 = vsel %vm2147_vm2, %v2144_v36, %v2146_v27  ;;  %vm2158_vm0 = vcmp.lt.s32.totalorder %v2118_v60, 127 }
 0x7e3   :  { %v2149_v37 = vrot.slane %v2148_v46, 4  ;;  %v5082_v4 = vsel %vm2158_vm0, %v2118_v60, 127 }
 0x7e4   :  { %vm2179_vm5 = vcmp.eq.s32.totalorder %v3888_v18, %v5082_v4  ;;  %vm2181_vm3 = vcmp.eq.s32.totalorder %v3891_v31, %v5082_v4  ;;  %vm2183_vm1 = vcmp.eq.s32.totalorder %v3894_v38, %v5082_v4 }
 0x7e5   :  { %vm2150_vm6 = vcmp.lt.s32.totalorder %v2148_v46, %v2149_v37  ;;  %vm3087_vm7 = vmpackc.low %vm2181_vm3, %vm2179_vm5  ;;  %vm2187_vm5 = vcmp.eq.s32.totalorder %v3900_v45, %v5082_v4  ;;  %vm2189_vm3 = vcmp.eq.s32.totalorder %v3903_v47, %v5082_v4 }
 0x7e6   :  { %v2151_v39 = vsel %vm2150_vm6, %v2148_v46, %v2149_v37  ;;  %vm2185_vm6 = vcmp.eq.s32.totalorder %v3897_v42, %v5082_v4  ;;  %v5701_v37 = vld [vmem:[#allocation19_spill] sm:$0xff] }
 0x7e7   :  { %v2152_v35 = vrot.slane %v2151_v39, 2 }
 0x7e9   :  { %vm2153_vm11 = vcmp.lt.s32.totalorder %v2151_v39, %v2152_v35 }
 0x7ea   :  { %v2154_v40 = vsel %vm2153_vm11, %v2151_v39, %v2152_v35  ;;  %v5702_v35 = vld [vmem:[#allocation20_spill] sm:$0xff] }
 0x7eb   :  { %v2155_v8 = vrot.slane %v2154_v40, 1 }
 0x7ed   :  { %vm2156_vm15 = vcmp.lt.s32.totalorder %v2154_v40, %v2155_v8 }
 0x7ee   :  { %v2157_v26 = vsel %vm2156_vm15, %v2154_v40, %v2155_v8  ;;  %vm3091_vm15 = vmpackc.low %vm2185_vm6, %vm2183_vm1 }
 0x7ef   :  { %vm2160_vm13 = vcmp.lt.s32.totalorder %v2157_v26, 127 }
 0x7f0   :  { %v5084_v33 = vsel %vm2160_vm13, %v2157_v26, 127 }
 0x7f1   :  { %vm2180_vm14 = vcmp.eq.s32.totalorder %v3888_v18, %v5084_v33  ;;  %vm2182_vm4 = vcmp.eq.s32.totalorder %v3891_v31, %v5084_v33  ;;  %vm2184_vm10 = vcmp.eq.s32.totalorder %v3894_v38, %v5084_v33  ;;  %vm2186_vm8 = vcmp.eq.s32.totalorder %v3897_v42, %v5084_v33 }
 0x7f2   :  { %vm3085_vm9 = vmpackc.low %vm2182_vm4, %vm2180_vm14  ;;  %vm2188_vm11 = vcmp.eq.s32.totalorder %v3900_v45, %v5084_v33  ;;  %vm2190_vm0 = vcmp.eq.s32.totalorder %v3903_v47, %v5084_v33  ;;  %v2162_v28 = vcombine.low %v5082_v4, %v5084_v33  ;;  %vm2192_vm14 = vcmp.eq.s32.totalorder %v3906_v50, %v5084_v33 }
 0x7f3   :  { %3086 = vmatprep.subr.msk.bf16.mxu0 %vm3085_vm9, %v5689_v57  ;;  %vm3089_vm2 = vmpackc.low %vm2186_vm8, %vm2184_vm10  ;;  %vm2194_vm4 = vcmp.eq.s32.totalorder %v3909_v58, %v5084_v33  ;;  %vm2191_vm9 = vcmp.eq.s32.totalorder %v3906_v50, %v5082_v4  ;;  %vm2198_vm1 = vcmp.eq.s32.totalorder %v3915_v2, %v5084_v33 }
 0x7f4   :  { %3088 = vmatpush1.bf16.msk.msra.mxu0 %vm3087_vm7, %v5689_v57  ;;  %v2169_v51 = vrot.slane %v2162_v28, %v5690_v43  ;;  %vm3093_vm13 = vmpackc.low %vm2190_vm0, %vm2188_vm11  ;;  %vm2193_vm7 = vcmp.eq.s32.totalorder %v3909_v58, %v5082_v4  ;;  %vm2195_vm0 = vcmp.eq.s32.totalorder %v3912_v62, %v5082_v4 }
 0x7f5   :  { %3090 = vmatprep.subr.msk.bf16.mxu0 %vm3089_vm2, %v5689_v57  ;;  %vm3095_vm10 = vmpackc.low %vm2189_vm3, %vm2187_vm5  ;;  %vm2196_vm2 = vcmp.eq.s32.totalorder %v3912_v62, %v5084_v33  ;;  %vm2202_vm5 = vcmp.eq.s32.totalorder %v3923_v10, %v5084_v33 }
 0x7f6   :  { %v2176_v49 = vrot.slane %v2169_v51, %v5690_v43  ;;  %vm3097_vm8 = vmpackc.low %vm2194_vm4, %vm2192_vm14  ;;  %vm2199_vm4 = vcmp.eq.s32.totalorder %v3920_v6, %v5082_v4 }
 0x7f7   :  { %vm3099_vm6 = vmpackc.low %vm2193_vm7, %vm2191_vm9  ;;  %vm2206_vm9 = vcmp.eq.s32.totalorder %v5677_v41, %v5084_v33 }
 0x7f8   :  { %3092 = vmatpush1.bf16.msk.msra.mxu0 %vm3091_vm15, %v5689_v57  ;;  %2178 = vst.msk [vmem:[#allocation2 + $0x2] ss:$4 sm:$0x3] %vm4170_vm12, %v2176_v49  ;;  %vm3101_vm11 = vmpackc.low %vm2198_vm1, %vm2196_vm2  ;;  %vm2197_vm15 = vcmp.eq.s32.totalorder %v3915_v2, %v5082_v4  ;;  %vm2203_vm1 = vcmp.eq.s32.totalorder %v3926_v12, %v5082_v4  ;;  %v3314_v49 = vld [vmem:[%s5541_s3 + $0xc0] sm:$0xff]  }
 0x7f9   :  { %3094 = vmatprep.subr.msk.bf16.mxu0 %vm3093_vm13, %v5689_v57  ;;  %vm2200_vm13 = vcmp.eq.s32.totalorder %v3920_v6, %v5084_v33  ;;  %vm3103_vm3 = vmpackc.low %vm2197_vm15, %vm2195_vm0  ;;  %vm2210_vm0 = vcmp.eq.s32.totalorder %v5679_v15, %v5084_v33 }
 0x7fa   :  { %vm3105_vm14 = vmpackc.low %vm2202_vm5, %vm2200_vm13  ;;  %vm2207_vm5 = vcmp.eq.s32.totalorder %v5678_v24, %v5082_v4 }
 0x7fc   :  { %3096 = vmatpush1.bf16.msk.msra.mxu0 %vm3095_vm10, %v5689_v57  ;;  %vm2201_vm10 = vcmp.eq.s32.totalorder %v3923_v10, %v5082_v4 }
 0x7fd   :  { %3098 = vmatprep.subr.msk.bf16.mxu0 %vm3097_vm8, %v5689_v57  ;;  %vm2204_vm8 = vcmp.eq.s32.totalorder %v3926_v12, %v5084_v33  ;;  %vm3107_vm7 = vmpackc.low %vm2201_vm10, %vm2199_vm4  ;;  %vm5704_vm4 = vcmask 269312  }
 0x7fe   :  { %vm3109_vm2 = vmpackc.low %vm2206_vm9, %vm2204_vm8 }
 0x7ff   :  { %vm5705_vm10 = vmmov %vm5704_vm4 }
 0x800   :  { %3100 = vmatpush1.bf16.msk.msra.mxu0 %vm3099_vm6, %v5689_v57  ;;  %vm2205_vm6 = vcmp.eq.s32.totalorder %v5677_v41, %v5082_v4  ;;  %vm5706_vm8 = vmmov %vm5704_vm4 }
 0x801   :  { %3102 = vmatprep.subr.msk.bf16.mxu0 %vm3101_vm11, %v5689_v57  ;;  %vm2208_vm11 = vcmp.eq.s32.totalorder %v5678_v24, %v5084_v33  ;;  %vm3111_vm15 = vmpackc.low %vm2205_vm6, %vm2203_vm1 }
 0x802   :  { %vm3113_vm13 = vmpackc.low %vm2210_vm0, %vm2208_vm11 }
 0x803   :  { %vm5707_vm9 = vmmov %vm5704_vm4 }
 0x804   :  { %3104 = vmatpush1.bf16.msk.msra.mxu0 %vm3103_vm3, %v5689_v57  ;;  %vm2209_vm3 = vcmp.eq.s32.totalorder %v5679_v15, %v5082_v4 }
 0x805   :  { %3106 = vmatprep.subr.msk.bf16.mxu0 %vm3105_vm14, %v5689_v57  ;;  %vm3115_vm14 = vmpackc.low %vm2209_vm3, %vm2207_vm5 }
 0x808   :  { %3108 = vmatpush1.bf16.msk.msra.mxu0 %vm3107_vm7, %v5689_v57  ;;  %vm5708_vm7 = vmmov %vm5704_vm4 }
 0x809   :  { %3110 = vmatprep.subr.msk.bf16.mxu0 %vm3109_vm2, %v5689_v57  ;;  %vm5709_vm2 = vmmov %vm5704_vm4 }
 0x80a   :  { %vm5710_vm1 = vmmov %vm5709_vm2 }
 0x80b   :  { %vm5711_vm6 = vmmov %vm5710_vm1 }
 0x80c   :  { %3112 = vmatpush1.bf16.msk.msra.mxu0 %vm3111_vm15, %v5689_v57 }
 0x80d   :  { %3114 = vmatprep.subr.msk.bf16.mxu0 %vm3113_vm13, %v5689_v57 }
 0x810   :  { %3116 = vmatpush1.bf16.msk.msra.mxu0 %vm3115_vm14, %v5689_v57  ;;  %v5703_v57 = vld [vmem:[#allocation5_spill] sm:$0xff] }
 0x813   :  { %2346 = vmatmul.mubr.bf16.vlgmr.msra.gmra.mrb[64].mxu0 %v3311_v9  ;;  %v3315_v9 = vld [vmem:[%s5541_s3 + $0xc8] sm:$0xff]  }
 0x814   :  { %2355 = vmatprep.mubr.bf16.mxu0 %v5692_v54 }
 0x81b   :  { %2356 = vmatmul.mubr.bf16.gmra.mrb[68].mxu0 %v3312_v19  ;;  %v3316_v19 = vld [vmem:[%s5541_s3 + $0xd0] sm:$0xff]  }
 0x81c   :  { %2365 = vmatprep.mubr.bf16.mxu0 %v5692_v54 }
 0x823   :  { %2366 = vmatmul.mubr.bf16.gmra.mrb[72].mxu0 %v3313_v25  ;;  %v3317_v25 = vld [vmem:[%s5541_s3 + $0xd8] sm:$0xff]  }
 0x824   :  { %2509 = vmatprep.mubr.bf16.mxu0 %v5692_v54 }
 0x8e6   :  { %v2347_v11 = vpop.f32.mrb[64].mxu0 }
 0x8e7   :  { %v2349_v0 = vpop.f32.mrb[65].mxu0  ;;  %v2374_v55 = vadd.f32 %v2347_v11, %v5693_v56  ;;  %v3318_v11 = vld [vmem:[%s5541_s3 + $0xe0] sm:$0xff]   ;;  %v3321_v56 = vld [vmem:[%s5541_s3 + $0xf8] sm:$0xff]  }
 0x8e8   :  { %v2351_v29 = vpop.f32.mrb[66].mxu0  ;;  %v2375_v63 = vadd.f32 %v2349_v0, %v5695_v1  ;;  %v3319_v0 = vld [vmem:[%s5541_s3 + $0xe8] sm:$0xff]  }
 0x8e9   :  { %v2376_v13 = vadd.f32 %v2351_v29, %v5694_v7  ;;  %v2353_v32 = vpop.f32.mrb[67].mxu0  ;;  %v3320_v29 = vld [vmem:[%s5541_s3 + $0xf0] sm:$0xff]   ;;  %s3413_s3 = smov [#allocation2]  }
 0x8ea   :  { %v2377_v61 = vadd.f32 %v2353_v32, %v5696_v14  ;;  %s2801_s22 = sshll.u32 %s3413_s3, 4  ;;  %s2802_s22 = int_to_ptr.vmem [resolvable:$true] %s2801_s22 }
 0x8eb   :  { %v2401_v16 = vpack.c.bf16 %v2376_v13, %v2374_v55  ;;  %s3386_s23 = scalar_lea.vmem %s2802_s22, 128  ;;  %p3391_p1 = scmp.lt.s32.totalorder %s2802_s22, %s2802_s22 }
 0x8ec   :  { %v2402_v21 = vpack.c.bf16 %v2377_v61, %v2375_v63  ;;  %p3387_p0 = scmp.ne.s32.totalorder %s2802_s22, %s3386_s23  ;;  %p3392_p2 = scmp.lt.s32.totalorder %s3386_s23, %s3386_s23 }
 0x8ee   :  { %v2357_v48 = vpop.f32.mrb[68].mxu0  ;;  %2477 = vmatprep.subr.bf16.mxu0 %v2402_v21  ;;  %p3393_p3 = por %p3392_p2, %p3391_p1 }
 0x8ef   :  { %v2359_v44 = vpop.f32.mrb[69].mxu0  ;;  %2478 = vmatpush1.bf16.msra.mxu0 %v2401_v16  ;;  %v2378_v34 = vadd.f32 %v2357_v48, %v5697_v30 }
 0x8f0   :  { %v2361_v53 = vpop.f32.mrb[70].mxu0  ;;  %v2379_v22 = vadd.f32 %v2359_v44, %v5699_v3  ;;  %p3394_p4 = pnand %p3393_p3, %p3387_p0 }
 0x8f1   :  { %v2380_v5 = vadd.f32 %v2361_v53, %v5698_v20  ;;  %v2363_v17 = vpop.f32.mrb[71].mxu0 }
 0x8f2   :  { %v2381_v23 = vadd.f32 %v2363_v17, %v5700_v59 }
 0x8f3   :  { %v2403_v36 = vpack.c.bf16 %v2380_v5, %v2378_v34 }
 0x8f4   :  { %v2404_v27 = vpack.c.bf16 %v2381_v23, %v2379_v22 }
 0x8f6   :  { %v2367_v46 = vpop.f32.mrb[72].mxu0  ;;  %2479 = vmatprep.subr.bf16.mxu0 %v2404_v27 }
 0x8f7   :  { %v2382_v39 = vadd.f32 %v2367_v46, %v5701_v37  ;;  %v2369_v60 = vpop.f32.mrb[73].mxu0  ;;  %2480 = vmatpush1.bf16.msra.mxu0 %v2403_v36 }
 0x8f8   :  { %v2383_v40 = vadd.f32 %v2369_v60, %v5702_v35  ;;  %v2371_v8 = vpop.f32.mrb[74].mxu0 }
 0x8f9   :  { %v2405_v4 = vpack.c.bf16 %v2382_v39, %v2382_v39  ;;  %v2372_v26 = vpop.f32.mrb[75].mxu0 }
 0x8fa   :  { %v2406_v33 = vpack.c.bf16 %v2383_v40, %v2383_v40 }
 0x8fb   :  { %v2472_v51 = vand.u32 %v2405_v4, %v5703_v57 }
 0x8fc   :  { %v2475_v28 = vand.u32 %v2406_v33, %v5703_v57 }
 0x8fe   :  { %2481 = vmatprep.subr.bf16.mxu0 %v2475_v28 }
 0x8ff   :  { %2482 = vmatpush1.bf16.msra.mxu0 %v2472_v51 }
 0x902   :  { %3141 = vmatmul.mubr.msk.bf16.vlgmr.msra.gmra.mrb[76].mxu0 %vm5704_vm4, %v3314_v49 }
 0x903   :  { %2519 = vmatprep.mubr.bf16.mxu0 %v5692_v54 }
 0x90a   :  { %3142 = vmatmul.mubr.msk.bf16.gmra.mrb[80].mxu0 %vm5705_vm10, %v3315_v9 }
 0x90b   :  { %2529 = vmatprep.mubr.bf16.mxu0 %v5692_v54 }
 0x912   :  { %3143 = vmatmul.mubr.msk.bf16.gmra.mrb[84].mxu0 %vm5706_vm8, %v3316_v19 }
 0x913   :  { %2539 = vmatprep.mubr.bf16.mxu0 %v5692_v54 }
 0x91a   :  { %3144 = vmatmul.mubr.msk.bf16.gmra.mrb[88].mxu0 %vm5707_vm9, %v3317_v25 }
 0x91b   :  { %2549 = vmatprep.mubr.bf16.mxu0 %v5692_v54 }
 0x922   :  { %3145 = vmatmul.mubr.msk.bf16.gmra.mrb[92].mxu0 %vm5708_vm7, %v3318_v11 }
 0x923   :  { %2559 = vmatprep.mubr.bf16.mxu0 %v5692_v54 }
 0x92a   :  { %3146 = vmatmul.mubr.msk.bf16.gmra.mrb[96].mxu0 %vm5709_vm2, %v3319_v0 }
 0x92b   :  { %2569 = vmatprep.mubr.bf16.mxu0 %v5692_v54 }
 0x932   :  { %3147 = vmatmul.mubr.msk.bf16.gmra.mrb[100].mxu0 %vm5710_vm1, %v3320_v29 }
 0x933   :  { %2579 = vmatprep.mubr.bf16.mxu0 %v5692_v54 }
 0x93a   :  { %3148 = vmatmul.mubr.msk.bf16.gmra.mrb[104].mxu0 %vm5711_vm6, %v3321_v56 }
 0x9d5   :  { %v5235_v55 = vpop.f32.mrb[76].mxu0 }
 0x9d6   :  { %v5237_v7 = vpop.f32.mrb[77].mxu0 }
 0x9d7   :  { %v5239_v13 = vpop.f32.mrb[78].mxu0 }
 0x9d8   :  { %v5241_v32 = vpop.f32.mrb[79].mxu0 }
 0x9dd   :  { %v5243_v1 = vpop.f32.mrb[80].mxu0 }
 0x9de   :  { %v2590_v63 = vmin.f32 %v5235_v55, %v5243_v1  ;;  %v5247_v54 = vpop.f32.mrb[81].mxu0 }
 0x9df   :  { %v2611_v14 = vmin.f32 %v5237_v7, %v5247_v54  ;;  %v5251_v61 = vpop.f32.mrb[82].mxu0 }
 0x9e0   :  { %v2591_v16 = vmin.f32 %v5239_v13, %v5251_v61  ;;  %v5255_v21 = vpop.f32.mrb[83].mxu0 }
 0x9e1   :  { %v2612_v48 = vmin.f32 %v5241_v32, %v5255_v21 }
 0x9e5   :  { %v5259_v44 = vpop.f32.mrb[84].mxu0 }
 0x9e6   :  { %v2592_v53 = vmin.f32 %v2590_v63, %v5259_v44  ;;  %v5262_v30 = vpop.f32.mrb[85].mxu0 }
 0x9e7   :  { %v2613_v34 = vmin.f32 %v2611_v14, %v5262_v30  ;;  %v5265_v20 = vpop.f32.mrb[86].mxu0 }
 0x9e8   :  { %v2593_v5 = vmin.f32 %v2591_v16, %v5265_v20  ;;  %v5268_v17 = vpop.f32.mrb[87].mxu0 }
 0x9e9   :  { %v2614_v3 = vmin.f32 %v2612_v48, %v5268_v17 }
 0x9ed   :  { %v5271_v22 = vpop.f32.mrb[88].mxu0 }
 0x9ee   :  { %v2594_v59 = vmin.f32 %v2592_v53, %v5271_v22  ;;  %v5274_v23 = vpop.f32.mrb[89].mxu0 }
 0x9ef   :  { %v2615_v36 = vmin.f32 %v2613_v34, %v5274_v23  ;;  %v5277_v27 = vpop.f32.mrb[90].mxu0 }
 0x9f0   :  { %v2595_v46 = vmin.f32 %v2593_v5, %v5277_v27  ;;  %v5280_v37 = vpop.f32.mrb[91].mxu0 }
 0x9f1   :  { %v2616_v39 = vmin.f32 %v2614_v3, %v5280_v37 }
 0x9f5   :  { %v5283_v60 = vpop.f32.mrb[92].mxu0 }
 0x9f6   :  { %v2596_v35 = vmin.f32 %v2594_v59, %v5283_v60  ;;  %v5286_v40 = vpop.f32.mrb[93].mxu0 }
 0x9f7   :  { %v2617_v8 = vmin.f32 %v2615_v36, %v5286_v40  ;;  %v5289_v4 = vpop.f32.mrb[94].mxu0 }
 0x9f8   :  { %v2597_v26 = vmin.f32 %v2595_v46, %v5289_v4  ;;  %v5292_v33 = vpop.f32.mrb[95].mxu0 }
 0x9f9   :  { %v2618_v57 = vmin.f32 %v2616_v39, %v5292_v33 }
 0x9fd   :  { %v5295_v28 = vpop.f32.mrb[96].mxu0 }
 0x9fe   :  { %v2598_v51 = vmin.f32 %v2596_v35, %v5295_v28  ;;  %v5298_v49 = vpop.f32.mrb[97].mxu0 }
 0x9ff   :  { %v2619_v9 = vmin.f32 %v2617_v8, %v5298_v49  ;;  %v2565_v19 = vpop.f32.mrb[98].mxu0 }
 0xa00   :  { %v2599_v25 = vmin.f32 %v2597_v26, %v2565_v19  ;;  %v5301_v11 = vpop.f32.mrb[99].mxu0 }
 0xa01   :  { %v2620_v0 = vmin.f32 %v2618_v57, %v5301_v11 }
 0xa05   :  { %v5304_v29 = vpop.f32.mrb[100].mxu0 }
 0xa06   :  { %v2600_v56 = vmin.f32 %v2598_v51, %v5304_v29  ;;  %v5307_v63 = vpop.f32.mrb[101].mxu0 }
 0xa07   :  { %v2621_v14 = vmin.f32 %v2619_v9, %v5307_v63  ;;  %v5310_v16 = vpop.f32.mrb[102].mxu0 }
 0xa08   :  { %v2601_v48 = vmin.f32 %v2599_v25, %v5310_v16  ;;  %v5313_v53 = vpop.f32.mrb[103].mxu0 }
 0xa09   :  { %v2622_v34 = vmin.f32 %v2620_v0, %v5313_v53 }
 0xa0d   :  { %v5316_v5 = vpop.f32.mrb[104].mxu0 }
 0xa0e   :  { %v2602_v3 = vmin.f32 %v2600_v56, %v5316_v5  ;;  %v5319_v59 = vpop.f32.mrb[105].mxu0 }
 0xa0f   :  { %v2623_v36 = vmin.f32 %v2621_v14, %v5319_v59  ;;  %v5322_v46 = vpop.f32.mrb[106].mxu0 }
 0xa10   :  { %v2603_v39 = vmin.f32 %v2601_v48, %v5322_v46  ;;  %v5325_v35 = vpop.f32.mrb[107].mxu0 }
 0xa11   :  { %v2624_v8 = vmin.f32 %v2622_v34, %v5325_v35 }
 0xa12   :  { %v2604_v26 = vmin.f32 %v2602_v3, %v2603_v39 }
 0xa13   :  { %v2625_v57 = vmin.f32 %v2623_v36, %v2624_v8  ;;  %v5713_v8 = vld [vmem:[#allocation6_spill] sm:$0xff] }
 0xa14   :  { %v2605_v51 = vrot.slane %v2604_v26, 4 }
 0xa15   :  { %v2626_v9 = vrot.slane %v2625_v57, 4 }
 0xa16   :  { %v2606_v25 = vmin.f32 %v2604_v26, %v2605_v51 }
 0xa17   :  { %v2627_v0 = vmin.f32 %v2625_v57, %v2626_v9  ;;  %v5714_v9 = vld [vmem:[#allocation7_spill] sm:$0xff] }
 0xa18   :  { %v2607_v52 = vrot.slane %v2606_v25, 2 }
 0xa19   :  { %v2628_v56 = vrot.slane %v2627_v0, 2 }
 0xa1a   :  { %v2608_v43 = vmin.f32 %v2606_v25, %v2607_v52 }
 0xa1b   :  { %v2629_v15 = vmin.f32 %v2627_v0, %v2628_v56  ;;  %v5715_v0 = vld [vmem:[#allocation8_spill] sm:$0xff] }
 0xa1c   :  { %v2609_v24 = vrot.slane %v2608_v43, 1 }
 0xa1d   :  { %v2630_v41 = vrot.slane %v2629_v15, 1 }
 0xa1e   :  { %v5328_v14 = vmin.f32 %v2608_v43, %v2609_v24 }
 0xa1f   :  { %v5361_v24 = vmin.f32 %v2629_v15, %v2630_v41 }
 0xa20   :  { %vm2632_vm11 = vcmp.le.f32.partialorder %v5235_v55, %v5328_v14  ;;  %vm2634_vm0 = vcmp.le.f32.partialorder %v5239_v13, %v5328_v14  ;;  %vm2636_vm15 = vcmp.le.f32.partialorder %v5243_v1, %v5328_v14  ;;  %vm2638_vm13 = vcmp.le.f32.partialorder %v5251_v61, %v5328_v14 }
 0xa21   :  { %vm2640_vm5 = vcmp.le.f32.partialorder %v5259_v44, %v5328_v14  ;;  %vm2642_vm3 = vcmp.le.f32.partialorder %v5265_v20, %v5328_v14  ;;  %vm2644_vm14 = vcmp.le.f32.partialorder %v5271_v22, %v5328_v14  ;;  %vm2646_vm4 = vcmp.le.f32.partialorder %v5277_v27, %v5328_v14 }
 0xa22   :  { %vm2650_vm8 = vcmp.le.f32.partialorder %v5289_v4, %v5328_v14  ;;  %vm2652_vm9 = vcmp.le.f32.partialorder %v5295_v28, %v5328_v14  ;;  %vm2654_vm7 = vcmp.le.f32.partialorder %v2565_v19, %v5328_v14  ;;  %vm2656_vm2 = vcmp.le.f32.partialorder %v5304_v29, %v5328_v14 }
 0xa23   :  { %vm2658_vm1 = vcmp.le.f32.partialorder %v5310_v16, %v5328_v14  ;;  %vm2660_vm6 = vcmp.le.f32.partialorder %v5316_v5, %v5328_v14  ;;  %vm2662_vm10 = vcmp.le.f32.partialorder %v5322_v46, %v5328_v14  ;;  %v2664_v43 = vsel %vm2632_vm11, %v3888_v18, 128 }
 0xa24   :  { %v2666_v52 = vsel %vm2634_vm0, %v3891_v31, 128  ;;  %v2668_v48 = vsel %vm2636_vm15, %v3894_v38, 128  ;;  %v2670_v41 = vsel %vm2638_vm13, %v3897_v42, 128  ;;  %v2672_v15 = vsel %vm2640_vm5, %v3900_v45, 128 }
 0xa25   :  { %v2674_v55 = vsel %vm2642_vm3, %v3903_v47, 128  ;;  %v2676_v13 = vsel %vm2644_vm14, %v3906_v50, 128  ;;  %v2678_v1 = vsel %vm2646_vm4, %v3909_v58, 128  ;;  %vm5712_vm11 = vcmp.le.f32.partialorder %v5283_v60, %v5328_v14 }
 0xa26   :  { %v2680_v61 = vsel %vm5712_vm11, %v3912_v62, 128  ;;  %v2682_v44 = vsel %vm2650_vm8, %v3915_v2, 128  ;;  %v2684_v20 = vsel %vm2652_vm9, %v3920_v6, 128  ;;  %v2686_v22 = vsel %vm2654_vm7, %v3923_v10, 128 }
 0xa27   :  { %vm2696_vm0 = vcmp.lt.s32.totalorder %v2664_v43, %v2668_v48  ;;  %vm2698_vm15 = vcmp.lt.s32.totalorder %v2666_v52, %v2670_v41  ;;  %vm2633_vm13 = vcmp.le.f32.partialorder %v5237_v7, %v5361_v24  ;;  %vm2649_vm14 = vcmp.le.f32.partialorder %v5286_v40, %v5361_v24 }
 0xa28   :  { %v2697_v27 = vsel %vm2696_vm0, %v2664_v43, %v2668_v48  ;;  %v2699_v60 = vsel %vm2698_vm15, %v2666_v52, %v2670_v41  ;;  %vm2657_vm0 = vcmp.le.f32.partialorder %v5307_v63, %v5361_v24  ;;  %vm2659_vm9 = vcmp.le.f32.partialorder %v5313_v53, %v5361_v24 }
 0xa29   :  { %vm2700_vm4 = vcmp.lt.s32.totalorder %v2697_v27, %v2672_v15  ;;  %vm2702_vm8 = vcmp.lt.s32.totalorder %v2699_v60, %v2674_v55  ;;  %v2688_v39 = vsel %vm2656_vm2, %v3926_v12, 128  ;;  %v2690_v26 = vsel %vm2658_vm1, %v5713_v8, 128 }
 0xa2a   :  { %v2701_v4 = vsel %vm2700_vm4, %v2697_v27, %v2672_v15  ;;  %v2703_v28 = vsel %vm2702_vm8, %v2699_v60, %v2674_v55  ;;  %vm2655_vm8 = vcmp.le.f32.partialorder %v5301_v11, %v5361_v24  ;;  %v2692_v25 = vsel %vm2660_vm6, %v5714_v9, 128 }
 0xa2b   :  { %vm2704_vm15 = vcmp.lt.s32.totalorder %v2701_v4, %v2676_v13  ;;  %vm2706_vm3 = vcmp.lt.s32.totalorder %v2703_v28, %v2678_v1  ;;  %v2694_v56 = vsel %vm2662_vm10, %v5715_v0, 128  ;;  %v2665_v16 = vsel %vm2633_vm13, %v3888_v18, 128 }
 0xa2c   :  { %v2705_v19 = vsel %vm2704_vm15, %v2701_v4, %v2676_v13  ;;  %v2707_v34 = vsel %vm2706_vm3, %v2703_v28, %v2678_v1  ;;  %vm2661_vm15 = vcmp.le.f32.partialorder %v5319_v59, %v5361_v24  ;;  %vm2663_vm3 = vcmp.le.f32.partialorder %v5325_v35, %v5361_v24 }
 0xa2d   :  { %vm2708_vm11 = vcmp.lt.s32.totalorder %v2705_v19, %v2680_v61  ;;  %vm2710_vm7 = vcmp.lt.s32.totalorder %v2707_v34, %v2682_v44  ;;  %vm5716_vm2 = vcmp.le.f32.partialorder %v5241_v32, %v5361_v24  ;;  %vm5717_vm10 = vcmp.le.f32.partialorder %v5247_v54, %v5361_v24 }
 0xa2e   :  { %v2709_v3 = vsel %vm2708_vm11, %v2705_v19, %v2680_v61  ;;  %v2711_v36 = vsel %vm2710_vm7, %v2707_v34, %v2682_v44  ;;  %v2667_v5 = vsel %vm5716_vm2, %v3891_v31, 128  ;;  %v2669_v46 = vsel %vm5717_vm10, %v3894_v38, 128  ;;  %v5725_v19 = vld [vmem:[#allocation9_spill] sm:$0xff] }
 0xa2f   :  { %vm2712_vm4 = vcmp.lt.s32.totalorder %v2709_v3, %v2684_v20  ;;  %vm2714_vm5 = vcmp.lt.s32.totalorder %v2711_v36, %v2686_v22  ;;  %vm5720_vm2 = vcmp.le.f32.partialorder %v5268_v17, %v5361_v24 }
 0xa30   :  { %v2713_v57 = vsel %vm2712_vm4, %v2709_v3, %v2684_v20  ;;  %v2715_v51 = vsel %vm2714_vm5, %v2711_v36, %v2686_v22  ;;  %vm5718_vm5 = vcmp.le.f32.partialorder %v5255_v21, %v5361_v24  ;;  %vm5719_vm4 = vcmp.le.f32.partialorder %v5262_v30, %v5361_v24 }
 0xa31   :  { %vm2716_vm7 = vcmp.lt.s32.totalorder %v2713_v57, %v2688_v39  ;;  %vm2718_vm11 = vcmp.lt.s32.totalorder %v2715_v51, %v2690_v26  ;;  %v2671_v14 = vsel %vm5718_vm5, %v3897_v42, 128  ;;  %v2673_v31 = vsel %vm5719_vm4, %v3900_v45, 128 }
 0xa32   :  { %v2717_v29 = vsel %vm2716_vm7, %v2713_v57, %v2688_v39  ;;  %v2719_v43 = vsel %vm2718_vm11, %v2715_v51, %v2690_v26  ;;  %vm2735_vm7 = vcmp.lt.s32.totalorder %v2665_v16, %v2669_v46  ;;  %vm2737_vm11 = vcmp.lt.s32.totalorder %v2667_v5, %v2671_v14 }
 0xa33   :  { %vm2720_vm1 = vcmp.lt.s32.totalorder %v2717_v29, %v2692_v25  ;;  %vm2722_vm6 = vcmp.lt.s32.totalorder %v2719_v43, %v2694_v56  ;;  %v2675_v38 = vsel %vm5720_vm2, %v3903_v47, 128  ;;  %v2736_v54 = vsel %vm2735_vm7, %v2665_v16, %v2669_v46 }
 0xa34   :  { %v2721_v52 = vsel %vm2720_vm1, %v2717_v29, %v2692_v25  ;;  %v2723_v7 = vsel %vm2722_vm6, %v2719_v43, %v2694_v56  ;;  %v2738_v21 = vsel %vm2737_vm11, %v2667_v5, %v2671_v14  ;;  %vm5721_vm1 = vcmp.le.f32.partialorder %v5274_v23, %v5361_v24 }
 0xa35   :  { %vm2724_vm13 = vcmp.lt.s32.totalorder %v2721_v52, %v2723_v7  ;;  %v2677_v42 = vsel %vm5721_vm1, %v3906_v50, 128  ;;  %vm2739_vm6 = vcmp.lt.s32.totalorder %v2736_v54, %v2673_v31  ;;  %vm2741_vm10 = vcmp.lt.s32.totalorder %v2738_v21, %v2675_v38 }
 0xa36   :  { %v2725_v18 = vsel %vm2724_vm13, %v2721_v52, %v2723_v7  ;;  %vm5722_vm13 = vcmp.le.f32.partialorder %v5280_v37, %v5361_v24  ;;  %v2740_v30 = vsel %vm2739_vm6, %v2736_v54, %v2673_v31  ;;  %v2742_v48 = vsel %vm2741_vm10, %v2738_v21, %v2675_v38 }
 0xa37   :  { %v2726_v32 = vrot.slane %v2725_v18, 4  ;;  %v2679_v45 = vsel %vm5722_vm13, %v3909_v58, 128  ;;  %v2681_v47 = vsel %vm2649_vm14, %v3912_v62, 128  ;;  %vm2743_vm4 = vcmp.lt.s32.totalorder %v2740_v30, %v2677_v42 }
 0xa38   :  { %vm2745_vm7 = vcmp.lt.s32.totalorder %v2742_v48, %v2679_v45  ;;  %vm5723_vm11 = vcmp.le.f32.partialorder %v5292_v33, %v5361_v24  ;;  %v2744_v23 = vsel %vm2743_vm4, %v2740_v30, %v2677_v42  ;;  %vm5724_vm6 = vcmp.le.f32.partialorder %v5298_v49, %v5361_v24 }
 0xa39   :  { %vm2727_vm5 = vcmp.lt.s32.totalorder %v2725_v18, %v2726_v32  ;;  %v2683_v50 = vsel %vm5723_vm11, %v3915_v2, 128  ;;  %v2746_v15 = vsel %vm2745_vm7, %v2742_v48, %v2679_v45  ;;  %vm2747_vm2 = vcmp.lt.s32.totalorder %v2744_v23, %v2681_v47 }
 0xa3a   :  { %v2728_v41 = vsel %vm2727_vm5, %v2725_v18, %v2726_v32  ;;  %vm2749_vm1 = vcmp.lt.s32.totalorder %v2746_v15, %v2683_v50  ;;  %v2685_v58 = vsel %vm5724_vm6, %v3920_v6, 128  ;;  %v2687_v62 = vsel %vm2655_vm8, %v3923_v10, 128 }
 0xa3b   :  { %v2729_v17 = vrot.slane %v2728_v41, 2  ;;  %v2748_v37 = vsel %vm2747_vm2, %v2744_v23, %v2681_v47  ;;  %v2750_v40 = vsel %vm2749_vm1, %v2746_v15, %v2683_v50  ;;  %v2689_v2 = vsel %vm2657_vm0, %v3926_v12, 128 }
 0xa3c   :  { %vm2751_vm10 = vcmp.lt.s32.totalorder %v2748_v37, %v2685_v58  ;;  %vm2753_vm5 = vcmp.lt.s32.totalorder %v2750_v40, %v2687_v62  ;;  %v2691_v6 = vsel %vm2659_vm9, %v5713_v8, 128  ;;  %v2693_v10 = vsel %vm2661_vm15, %v5714_v9, 128 }
 0xa3d   :  { %vm2730_vm14 = vcmp.lt.s32.totalorder %v2728_v41, %v2729_v17  ;;  %v2752_v33 = vsel %vm2751_vm10, %v2748_v37, %v2685_v58  ;;  %v2754_v49 = vsel %vm2753_vm5, %v2750_v40, %v2687_v62  ;;  %v2695_v12 = vsel %vm2663_vm3, %v5715_v0, 128 }
 0xa3e   :  { %vm2755_vm8 = vcmp.lt.s32.totalorder %v2752_v33, %v2689_v2  ;;  %vm2757_vm13 = vcmp.lt.s32.totalorder %v2754_v49, %v2691_v6  ;;  %v2731_v11 = vsel %vm2730_vm14, %v2728_v41, %v2729_v17 }
 0xa3f   :  { %v2756_v63 = vsel %vm2755_vm8, %v2752_v33, %v2689_v2  ;;  %v2758_v55 = vsel %vm2757_vm13, %v2754_v49, %v2691_v6  ;;  %v2732_v1 = vrot.slane %v2731_v11, 1 }
 0xa40   :  { %vm2759_vm0 = vcmp.lt.s32.totalorder %v2756_v63, %v2693_v10  ;;  %vm2761_vm4 = vcmp.lt.s32.totalorder %v2758_v55, %v2695_v12 }
 0xa41   :  { %v2760_v53 = vsel %vm2759_vm0, %v2756_v63, %v2693_v10  ;;  %v2762_v13 = vsel %vm2761_vm4, %v2758_v55, %v2695_v12  ;;  %vm2733_vm7 = vcmp.lt.s32.totalorder %v2731_v11, %v2732_v1 }
 0xa42   :  { %vm2763_vm9 = vcmp.lt.s32.totalorder %v2760_v53, %v2762_v13  ;;  %v2734_v22 = vsel %vm2733_vm7, %v2731_v11, %v2732_v1 }
 0xa43   :  { %v2764_v61 = vsel %vm2763_vm9, %v2760_v53, %v2762_v13  ;;  %vm2774_vm2 = vcmp.lt.s32.totalorder %v2734_v22, 127 }
 0xa44   :  { %v2765_v44 = vrot.slane %v2764_v61, 4  ;;  %v2775_v24 = vsel %vm2774_vm2, %v2734_v22, 127 }
 0xa46   :  { %vm2766_vm15 = vcmp.lt.s32.totalorder %v2764_v61, %v2765_v44 }
 0xa47   :  { %v2767_v59 = vsel %vm2766_vm15, %v2764_v61, %v2765_v44 }
 0xa48   :  { %v2768_v20 = vrot.slane %v2767_v59, 2 }
 0xa4a   :  { %vm2769_vm11 = vcmp.lt.s32.totalorder %v2767_v59, %v2768_v20 }
 0xa4b   :  { %v2770_v27 = vsel %vm2769_vm11, %v2767_v59, %v2768_v20 }
 0xa4c   :  { %v2771_v35 = vrot.slane %v2770_v27, 1 }
 0xa4e   :  { %vm2772_vm3 = vcmp.lt.s32.totalorder %v2770_v27, %v2771_v35 }
 0xa4f   :  { %v2773_v60 = vsel %vm2772_vm3, %v2770_v27, %v2771_v35 }
 0xa50   :  { %vm2776_vm1 = vcmp.lt.s32.totalorder %v2773_v60, 127 }
 0xa51   :  { %v2777_v4 = vsel %vm2776_vm1, %v2773_v60, 127 }
 0xa52   :  { %v2778_v28 = vcombine.low %v2775_v24, %v2777_v4 }
 0xa54   :  { %v2785_v34 = vrot.slane %v2778_v28, %v5725_v19 }
 0xa56   :  { %v2792_v3 = vrot.slane %v2785_v34, %v5725_v19 }
 0xa58   :  { %2794 = vst.msk [vmem:[#allocation2 + $0x3] ss:$4 sm:$0x3] %vm4170_vm12, %v2792_v3 }
 0xa59   :  { %3397 = shalt.err (!%p3394_p4)
}
 0xa5a   :  { %s3398_s2 = scalar_lea.hbm %s5543_s5, 128 }
 0xa5b   :  { %p3399_p5 = scmp.ne.s32.totalorder %s5543_s5, %s3398_s2  ;;  %p3402_p6 = scmp.lt.u32.totalorder %s3398_s2, %s5543_s5 }
 0xa5d   :  { %p3404_p7 = pnand %p3402_p6, %p3399_p5 }
 0xa5f   :  { %3407 = shalt.err (!%p3404_p7)
}
 0xa60   :  { %2804 = dma.vmem_to_hbm [thread:$0]  %s2802_s22, 128, %s5543_s5, [#allocation3]  }
 0xa61   :  { %3408 = dma.done.wait [#allocation3], 128  }
 0xa62   :  { %3409 = vsyncadd [#allocation3], 4294967168 }
 0xa63   :  { %2808 = vsyncpa [#allocation3], 1 }

</bundles_post_ra>
